<compile_context>
chip_gen: v7x
topology: tpu7x:2x2x1
jax: 0.10.0
libtpu: 0.0.40
codegen_flags: <defaults>
</compile_context>

<pallas_src>
import functools

import jax
import jax.numpy as jnp
from jax.experimental import pallas as pl
from jax.experimental.pallas import tpu as pltpu

# ---- defaults mirroring Balanced_sinkhorn(__init__) ----
NUM_ITERS = 3          # inner Sinkhorn iterations
EPSILON = 0.05
LR_W = 0.1
MOMENTUM = 0.99
NUM_OUTER_ITERS = 10
GAMMA = 5.0
NUM_UNLABEL = 3        # K (= number of classes of the logits)
MAX_GRAD_NORM = 1.0

_DENOM_FLOOR = 1e-30   # guards 0/0 if a whole class/sample underflows in f32


# --------------------------------------------------------------------------
# Fused Pallas kernel: full Balanced_sinkhorn.forward
#   input : logits^T  (K, B)  float32   (batch on the lane axis)
#   output: Q         (K, B)  float32   (== torch `Q`, i.e. Q.t() of the return)
# --------------------------------------------------------------------------
def _balanced_sinkhorn_kernel(xT_ref, q_ref, *, eps, n_iters, n_outer, gamma,
                              lr, momentum, max_norm, num_classes, bsz):
    x = xT_ref[...].astype(jnp.float32)                      # (K, B)
    kf = float(num_classes)
    inv_b = 1.0 / float(bsz)

    # ---- hoisted, w-independent work: p0 = exp((x - max)/eps), normalised ----
    xmax = jnp.max(x, keepdims=True)                          # (1, 1)
    p0 = jnp.exp((x - xmax) * (1.0 / eps))
    p0 = p0 / jnp.sum(p0, keepdims=True)                      # Q /= sum_Q (once)

    # d(assignment loss)/dQ  = -(1/B) * logits^T   (fixed across outer iters)
    g_loss = x * (-inv_b)

    def softmax_col(w):                                       # w: (K, 1)
        e = jnp.exp(w - jnp.max(w, axis=0, keepdims=True))
        return e / jnp.sum(e, axis=0, keepdims=True)

    def sinkhorn_fwd(k2, save_residuals):
        """Inner Sinkhorn loop in (K, B) layout.

        Per iteration (== torch body, with the no-op /B, *B folded away):
            r = row sums (per class);  p *= k2/r ;  c = col sums (per sample);  p /= c
        Returns (p, residuals); residuals = [(a, m, inv_r, inv_c, p_out), ...]
        """
        p = p0
        res = []
        for _ in range(n_iters):
            r = jnp.maximum(jnp.sum(p, axis=1, keepdims=True), _DENOM_FLOOR)   # (K,1)
            if save_residuals:
                inv_r = pl.reciprocal(r, approx=True)
                m = k2 * inv_r                                                  # fused k2/r
                a = p * m                                                       # (K,B)
                c = jnp.maximum(jnp.sum(a, axis=0, keepdims=True), _DENOM_FLOOR)  # (1,B)
                inv_c = pl.reciprocal(c, approx=True)
                p = a * inv_c
                res.append((a, m, inv_r, inv_c, p))
            else:
                # single Q-producing pass: exact divisions (runs once)
                a = p * (k2 / r)
                c = jnp.maximum(jnp.sum(a, axis=0, keepdims=True), _DENOM_FLOOR)
                p = a / c
        return p, res

    def grad_w(k2):
        """d(total_loss)/dw via a hand-derived reverse pass (no second forward)."""
        _, res = sinkhorn_fwd(k2, True)
        g = g_loss                                             # grad wrt final Q
        s_total = jnp.zeros((num_classes, 1), jnp.float32)
        for t, (a, m, inv_r, inv_c, p_out) in reversed(list(enumerate(res))):
            d = jnp.sum(g * p_out, axis=0, keepdims=True)      # (1,B)
            g_a = (g - d) * inv_c                              # grad wrt a
            s = jnp.sum(g_a * a, axis=1, keepdims=True)        # (K,1); dL/dk2 = s/k2
            s_total = s_total + s
            if t > 0:                                          # grad wrt iteration input
                g = m * g_a - inv_r * s
        # softmax VJP folded analytically:  dL/dw = S - k2 * sum(S)
        gw = s_total - k2 * jnp.sum(s_total, axis=0, keepdims=True)
        # + gamma * d/dw KLDiv(log_softmax(w) || softmax(w0)=uniform), batchmean/K
        gw = gw + (gamma / kf) * (k2 - (1.0 / kf))
        return gw

    # parameters exactly as in __init__: w = ones/K, SGD(lr, momentum), buf = 0
    w = jnp.full((num_classes, 1), 1.0 / kf, jnp.float32)
    buf = jnp.zeros((num_classes, 1), jnp.float32)

    # Outer SGD loop. Only n_outer-1 updates are observable: the torch module
    # returns the Q computed in the last iteration *before* its (unused) step.
    # Short fixed trip count -> deliberately unrolled for scheduler visibility.
    for _ in range(n_outer - 1):
        k2 = softmax_col(w)
        g = grad_w(k2)
        # torch.nn.utils.clip_grad_norm_(params, 1)
        gn = jnp.sqrt(jnp.sum(g * g, keepdims=True))           # (1,1)
        g = g * jnp.minimum(1.0, max_norm / (gn + 1e-6))
        # torch.optim.SGD(lr, momentum)
        buf = momentum * buf + g
        w = w - lr * buf

    q, _ = sinkhorn_fwd(softmax_col(w), False)                 # Q of the final iter
    q_ref[...] = q


# --------------------------------------------------------------------------
# Wrapper: layout plumbing only (transpose in/out), one pallas_call
# --------------------------------------------------------------------------
@jax.jit
def balanced_sinkhorn_forward(features):
    features = jax.lax.stop_gradient(features).astype(jnp.float32)
    bsz, k = features.shape
    x_t = jnp.transpose(features)                              # (K, B): B on lanes

    kern = functools.partial(
        _balanced_sinkhorn_kernel,
        eps=EPSILON, n_iters=NUM_ITERS, n_outer=NUM_OUTER_ITERS, gamma=GAMMA,
        lr=LR_W, momentum=MOMENTUM, max_norm=MAX_GRAD_NORM,
        num_classes=k, bsz=bsz)

    q_t = pl.pallas_call(
        kern,
        out_shape=jax.ShapeDtypeStruct((k, bsz), jnp.float32),
        in_specs=[pl.BlockSpec(memory_space=pltpu.MemorySpace.VMEM)],
        out_specs=pl.BlockSpec(memory_space=pltpu.MemorySpace.VMEM),
        compiler_params=pltpu.CompilerParams(vmem_limit_bytes=32 * 1024 * 1024),
    )(x_t)
    return jnp.transpose(q_t)                                  # (B, K) == torch Q.t()


# --------------------------------------------------------------------------
# Pure-JAX (XLA, f32) replica of the torch module — test oracle only
# --------------------------------------------------------------------------
@jax.jit
def _reference_balanced_sinkhorn(features):
    x = features.astype(jnp.float32)
    b, k = x.shape
    w0 = jnp.ones((1, k), jnp.float32) / k

    def sk(w):
        k2 = jax.nn.softmax(w, axis=1)                         # (1, K)
        q = jnp.exp(x / EPSILON).T                             # (K, B)
        q = q / jnp.sum(q)
        for _ in range(NUM_ITERS):
            q = q / jnp.sum(q, axis=1, keepdims=True)
            q = q * k2.T
            q = q / jnp.sum(q, axis=0, keepdims=True)
            q = q / b
        q = q * b
        return q.T                                             # (B, K)

    def total_loss(w):
        q = sk(w)
        loss = -jnp.mean(jnp.sum(q * x, axis=1))
        inp = jax.nn.log_softmax(w, axis=1).T
        tgt = jax.nn.softmax(w0, axis=1).T
        reg = jnp.sum(tgt * (jnp.log(tgt) - inp)) / k
        return loss + GAMMA * reg

    w = jnp.ones((1, k), jnp.float32) / k
    buf = jnp.zeros_like(w)
    q = sk(w)
    for _ in range(NUM_OUTER_ITERS):
        q = sk(w)
        g = jax.grad(total_loss)(w)
        gn = jnp.sqrt(jnp.sum(g * g))
        g = g * jnp.minimum(1.0, MAX_GRAD_NORM / (gn + 1e-6))
        buf = MOMENTUM * buf + g
        w = w - LR_W * buf
    return q


if __name__ == "__main__":
    key = jax.random.PRNGKey(0)
    batch = 8
    features = jax.random.normal(key, (batch, NUM_UNLABEL), dtype=jnp.float32)

    q = balanced_sinkhorn_forward(features)
    q = jax.block_until_ready(q)

    assert q.shape == (batch, NUM_UNLABEL)
    assert bool(jnp.all(jnp.isfinite(q)))
    # each row of the returned assignment sums to 1 (final column normalisation)
    assert bool(jnp.allclose(jnp.sum(q, axis=1), 1.0, atol=1e-3))
    # cross-check against a pure-JAX f32 replica of the torch module
    q_ref = jax.block_until_ready(_reference_balanced_sinkhorn(features))
    assert bool(jnp.max(jnp.abs(q - q_ref)) < 5e-2), (q, q_ref)
    print("KERNEL_OK")
</pallas_src>

<mosaic_0001>
module attributes {stable_mosaic.version = 11 : i64} {
  func.func @_balanced_sinkhorn_kernel(%arg0: memref<3x8xf32, #tpu.memory_space<vmem>>, %arg1: memref<3x8xf32, #tpu.memory_space<vmem>>) attributes {dimension_semantics = [], scalar_prefetch = 0 : i64, scratch_operands = 0 : i64, tpu.core_type = #tpu.core_type<tc>} {
    %c0 = arith.constant 0 : index
    %c0_0 = arith.constant 0 : index
    %0 = vector.load %arg0[%c0, %c0_0] : memref<3x8xf32, #tpu.memory_space<vmem>>, vector<3x8xf32>
    %1 = vector.shape_cast %0 : vector<3x8xf32> to vector<1x3x8xf32>
    %cst = arith.constant dense<0xFF800000> : vector<1xf32>
    %2 = vector.multi_reduction <maximumf>, %1, %cst [1, 2] : vector<1x3x8xf32> to vector<1xf32>
    %3 = vector.shape_cast %2 : vector<1xf32> to vector<1x1x1xf32>
    %4 = vector.extract %3[0, 0, 0] : f32 from vector<1x1x1xf32>
    %5 = vector.broadcast %4 : f32 to vector<1x1xf32>
    %6 = vector.broadcast %5 : vector<1x1xf32> to vector<3x8xf32>
    %7 = arith.subf %0, %6 : vector<3x8xf32>
    %cst_1 = arith.constant 2.000000e+01 : f32
    %8 = vector.broadcast %cst_1 : f32 to vector<3x8xf32>
    %9 = arith.mulf %7, %8 : vector<3x8xf32>
    %10 = math.exp %9 : vector<3x8xf32>
    %11 = vector.shape_cast %10 : vector<3x8xf32> to vector<1x3x8xf32>
    %cst_2 = arith.constant dense<0.000000e+00> : vector<1xf32>
    %12 = vector.multi_reduction <add>, %11, %cst_2 [1, 2] : vector<1x3x8xf32> to vector<1xf32>
    %13 = vector.shape_cast %12 : vector<1xf32> to vector<1x1x1xf32>
    %14 = vector.extract %13[0, 0, 0] : f32 from vector<1x1x1xf32>
    %15 = vector.broadcast %14 : f32 to vector<1x1xf32>
    %16 = vector.broadcast %15 : vector<1x1xf32> to vector<3x8xf32>
    %17 = arith.divf %10, %16 : vector<3x8xf32>
    %cst_3 = arith.constant -1.250000e-01 : f32
    %18 = vector.broadcast %cst_3 : f32 to vector<3x8xf32>
    %19 = arith.mulf %0, %18 : vector<3x8xf32>
    %cst_4 = arith.constant 0.333333343 : f32
    %20 = vector.broadcast %cst_4 : f32 to vector<3x1xf32>
    %cst_5 = arith.constant 0.000000e+00 : f32
    %21 = vector.broadcast %cst_5 : f32 to vector<3x1xf32>
    %cst_6 = arith.constant dense<0xFF800000> : vector<1xf32>
    %22 = vector.multi_reduction <maximumf>, %20, %cst_6 [0] : vector<3x1xf32> to vector<1xf32>
    %23 = vector.shape_cast %22 : vector<1xf32> to vector<1x1xf32>
    %24 = vector.broadcast %23 : vector<1x1xf32> to vector<3x1xf32>
    %25 = arith.subf %20, %24 : vector<3x1xf32>
    %26 = math.exp %25 : vector<3x1xf32>
    %cst_7 = arith.constant dense<0.000000e+00> : vector<1xf32>
    %27 = vector.multi_reduction <add>, %26, %cst_7 [0] : vector<3x1xf32> to vector<1xf32>
    %28 = vector.shape_cast %27 : vector<1xf32> to vector<1x1xf32>
    %29 = vector.broadcast %28 : vector<1x1xf32> to vector<3x1xf32>
    %30 = arith.divf %26, %29 : vector<3x1xf32>
    %cst_8 = arith.constant dense<0.000000e+00> : vector<3xf32>
    %31 = vector.multi_reduction <add>, %17, %cst_8 [1] : vector<3x8xf32> to vector<3xf32>
    %32 = vector.shape_cast %31 : vector<3xf32> to vector<3x1xf32>
    %cst_9 = arith.constant 1.000000e-30 : f32
    %33 = vector.broadcast %cst_9 : f32 to vector<3x1xf32>
    %34 = arith.maximumf %32, %33 : vector<3x1xf32>
    %35 = tpu.reciprocal %34 {approx = true} : vector<3x1xf32> -> vector<3x1xf32>
    %36 = arith.mulf %30, %35 : vector<3x1xf32>
    %37 = vector.broadcast %36 : vector<3x1xf32> to vector<3x8xf32>
    %38 = arith.mulf %17, %37 : vector<3x8xf32>
    %cst_10 = arith.constant dense<0.000000e+00> : vector<8xf32>
    %39 = vector.multi_reduction <add>, %38, %cst_10 [0] : vector<3x8xf32> to vector<8xf32>
    %40 = vector.shape_cast %39 : vector<8xf32> to vector<1x8xf32>
    %cst_11 = arith.constant 1.000000e-30 : f32
    %41 = vector.broadcast %cst_11 : f32 to vector<1x8xf32>
    %42 = arith.maximumf %40, %41 : vector<1x8xf32>
    %43 = tpu.reciprocal %42 {approx = true} : vector<1x8xf32> -> vector<1x8xf32>
    %44 = vector.broadcast %43 : vector<1x8xf32> to vector<3x8xf32>
    %45 = arith.mulf %38, %44 : vector<3x8xf32>
    %cst_12 = arith.constant dense<0.000000e+00> : vector<3xf32>
    %46 = vector.multi_reduction <add>, %45, %cst_12 [1] : vector<3x8xf32> to vector<3xf32>
    %47 = vector.shape_cast %46 : vector<3xf32> to vector<3x1xf32>
    %cst_13 = arith.constant 1.000000e-30 : f32
    %48 = vector.broadcast %cst_13 : f32 to vector<3x1xf32>
    %49 = arith.maximumf %47, %48 : vector<3x1xf32>
    %50 = tpu.reciprocal %49 {approx = true} : vector<3x1xf32> -> vector<3x1xf32>
    %51 = arith.mulf %30, %50 : vector<3x1xf32>
    %52 = vector.broadcast %51 : vector<3x1xf32> to vector<3x8xf32>
    %53 = arith.mulf %45, %52 : vector<3x8xf32>
    %cst_14 = arith.constant dense<0.000000e+00> : vector<8xf32>
    %54 = vector.multi_reduction <add>, %53, %cst_14 [0] : vector<3x8xf32> to vector<8xf32>
    %55 = vector.shape_cast %54 : vector<8xf32> to vector<1x8xf32>
    %cst_15 = arith.constant 1.000000e-30 : f32
    %56 = vector.broadcast %cst_15 : f32 to vector<1x8xf32>
    %57 = arith.maximumf %55, %56 : vector<1x8xf32>
    %58 = tpu.reciprocal %57 {approx = true} : vector<1x8xf32> -> vector<1x8xf32>
    %59 = vector.broadcast %58 : vector<1x8xf32> to vector<3x8xf32>
    %60 = arith.mulf %53, %59 : vector<3x8xf32>
    %cst_16 = arith.constant dense<0.000000e+00> : vector<3xf32>
    %61 = vector.multi_reduction <add>, %60, %cst_16 [1] : vector<3x8xf32> to vector<3xf32>
    %62 = vector.shape_cast %61 : vector<3xf32> to vector<3x1xf32>
    %cst_17 = arith.constant 1.000000e-30 : f32
    %63 = vector.broadcast %cst_17 : f32 to vector<3x1xf32>
    %64 = arith.maximumf %62, %63 : vector<3x1xf32>
    %65 = tpu.reciprocal %64 {approx = true} : vector<3x1xf32> -> vector<3x1xf32>
    %66 = arith.mulf %30, %65 : vector<3x1xf32>
    %67 = vector.broadcast %66 : vector<3x1xf32> to vector<3x8xf32>
    %68 = arith.mulf %60, %67 : vector<3x8xf32>
    %cst_18 = arith.constant dense<0.000000e+00> : vector<8xf32>
    %69 = vector.multi_reduction <add>, %68, %cst_18 [0] : vector<3x8xf32> to vector<8xf32>
    %70 = vector.shape_cast %69 : vector<8xf32> to vector<1x8xf32>
    %cst_19 = arith.constant 1.000000e-30 : f32
    %71 = vector.broadcast %cst_19 : f32 to vector<1x8xf32>
    %72 = arith.maximumf %70, %71 : vector<1x8xf32>
    %73 = tpu.reciprocal %72 {approx = true} : vector<1x8xf32> -> vector<1x8xf32>
    %74 = vector.broadcast %73 : vector<1x8xf32> to vector<3x8xf32>
    %75 = arith.mulf %68, %74 : vector<3x8xf32>
    %cst_20 = arith.constant 0.000000e+00 : f32
    %76 = vector.broadcast %cst_20 : f32 to vector<3x1xf32>
    %77 = arith.mulf %19, %75 : vector<3x8xf32>
    %cst_21 = arith.constant dense<0.000000e+00> : vector<8xf32>
    %78 = vector.multi_reduction <add>, %77, %cst_21 [0] : vector<3x8xf32> to vector<8xf32>
    %79 = vector.shape_cast %78 : vector<8xf32> to vector<1x8xf32>
    %80 = vector.broadcast %79 : vector<1x8xf32> to vector<3x8xf32>
    %81 = arith.subf %19, %80 : vector<3x8xf32>
    %82 = vector.broadcast %73 : vector<1x8xf32> to vector<3x8xf32>
    %83 = arith.mulf %81, %82 : vector<3x8xf32>
    %84 = arith.mulf %83, %68 : vector<3x8xf32>
    %cst_22 = arith.constant dense<0.000000e+00> : vector<3xf32>
    %85 = vector.multi_reduction <add>, %84, %cst_22 [1] : vector<3x8xf32> to vector<3xf32>
    %86 = vector.shape_cast %85 : vector<3xf32> to vector<3x1xf32>
    %87 = arith.addf %76, %86 : vector<3x1xf32>
    %88 = vector.broadcast %66 : vector<3x1xf32> to vector<3x8xf32>
    %89 = arith.mulf %88, %83 : vector<3x8xf32>
    %90 = arith.mulf %65, %86 : vector<3x1xf32>
    %91 = vector.broadcast %90 : vector<3x1xf32> to vector<3x8xf32>
    %92 = arith.subf %89, %91 : vector<3x8xf32>
    %93 = arith.mulf %92, %60 : vector<3x8xf32>
    %cst_23 = arith.constant dense<0.000000e+00> : vector<8xf32>
    %94 = vector.multi_reduction <add>, %93, %cst_23 [0] : vector<3x8xf32> to vector<8xf32>
    %95 = vector.shape_cast %94 : vector<8xf32> to vector<1x8xf32>
    %96 = vector.broadcast %95 : vector<1x8xf32> to vector<3x8xf32>
    %97 = arith.subf %92, %96 : vector<3x8xf32>
    %98 = vector.broadcast %58 : vector<1x8xf32> to vector<3x8xf32>
    %99 = arith.mulf %97, %98 : vector<3x8xf32>
    %100 = arith.mulf %99, %53 : vector<3x8xf32>
    %cst_24 = arith.constant dense<0.000000e+00> : vector<3xf32>
    %101 = vector.multi_reduction <add>, %100, %cst_24 [1] : vector<3x8xf32> to vector<3xf32>
    %102 = vector.shape_cast %101 : vector<3xf32> to vector<3x1xf32>
    %103 = arith.addf %87, %102 : vector<3x1xf32>
    %104 = vector.broadcast %51 : vector<3x1xf32> to vector<3x8xf32>
    %105 = arith.mulf %104, %99 : vector<3x8xf32>
    %106 = arith.mulf %50, %102 : vector<3x1xf32>
    %107 = vector.broadcast %106 : vector<3x1xf32> to vector<3x8xf32>
    %108 = arith.subf %105, %107 : vector<3x8xf32>
    %109 = arith.mulf %108, %45 : vector<3x8xf32>
    %cst_25 = arith.constant dense<0.000000e+00> : vector<8xf32>
    %110 = vector.multi_reduction <add>, %109, %cst_25 [0] : vector<3x8xf32> to vector<8xf32>
    %111 = vector.shape_cast %110 : vector<8xf32> to vector<1x8xf32>
    %112 = vector.broadcast %111 : vector<1x8xf32> to vector<3x8xf32>
    %113 = arith.subf %108, %112 : vector<3x8xf32>
    %114 = vector.broadcast %43 : vector<1x8xf32> to vector<3x8xf32>
    %115 = arith.mulf %113, %114 : vector<3x8xf32>
    %116 = arith.mulf %115, %38 : vector<3x8xf32>
    %cst_26 = arith.constant dense<0.000000e+00> : vector<3xf32>
    %117 = vector.multi_reduction <add>, %116, %cst_26 [1] : vector<3x8xf32> to vector<3xf32>
    %118 = vector.shape_cast %117 : vector<3xf32> to vector<3x1xf32>
    %119 = arith.addf %103, %118 : vector<3x1xf32>
    %cst_27 = arith.constant dense<0.000000e+00> : vector<1xf32>
    %120 = vector.multi_reduction <add>, %119, %cst_27 [0] : vector<3x1xf32> to vector<1xf32>
    %121 = vector.shape_cast %120 : vector<1xf32> to vector<1x1xf32>
    %122 = vector.broadcast %121 : vector<1x1xf32> to vector<3x1xf32>
    %123 = arith.mulf %30, %122 : vector<3x1xf32>
    %124 = arith.subf %119, %123 : vector<3x1xf32>
    %cst_28 = arith.constant 0.333333343 : f32
    %125 = vector.broadcast %cst_28 : f32 to vector<3x1xf32>
    %126 = arith.subf %30, %125 : vector<3x1xf32>
    %cst_29 = arith.constant 1.66666663 : f32
    %127 = vector.broadcast %cst_29 : f32 to vector<3x1xf32>
    %128 = arith.mulf %127, %126 : vector<3x1xf32>
    %129 = arith.addf %124, %128 : vector<3x1xf32>
    %130 = arith.mulf %129, %129 : vector<3x1xf32>
    %131 = vector.shape_cast %130 : vector<3x1xf32> to vector<1x3x1xf32>
    %cst_30 = arith.constant dense<0.000000e+00> : vector<1xf32>
    %132 = vector.multi_reduction <add>, %131, %cst_30 [1, 2] : vector<1x3x1xf32> to vector<1xf32>
    %133 = vector.shape_cast %132 : vector<1xf32> to vector<1x1x1xf32>
    %134 = vector.extract %133[0, 0, 0] : f32 from vector<1x1x1xf32>
    %135 = vector.broadcast %134 : f32 to vector<1x1xf32>
    %136 = math.sqrt %135 : vector<1x1xf32>
    %cst_31 = arith.constant 9.99999997E-7 : f32
    %137 = vector.broadcast %cst_31 : f32 to vector<1x1xf32>
    %138 = arith.addf %136, %137 : vector<1x1xf32>
    %cst_32 = arith.constant 1.000000e+00 : f32
    %139 = vector.broadcast %cst_32 : f32 to vector<1x1xf32>
    %140 = arith.divf %139, %138 : vector<1x1xf32>
    %cst_33 = arith.constant 1.000000e+00 : f32
    %141 = vector.broadcast %cst_33 : f32 to vector<1x1xf32>
    %142 = arith.minimumf %141, %140 : vector<1x1xf32>
    %143 = vector.broadcast %142 : vector<1x1xf32> to vector<3x1xf32>
    %144 = arith.mulf %129, %143 : vector<3x1xf32>
    %cst_34 = arith.constant 9.900000e-01 : f32
    %145 = vector.broadcast %cst_34 : f32 to vector<3x1xf32>
    %146 = arith.mulf %145, %21 : vector<3x1xf32>
    %147 = arith.addf %146, %144 : vector<3x1xf32>
    %cst_35 = arith.constant 1.000000e-01 : f32
    %148 = vector.broadcast %cst_35 : f32 to vector<3x1xf32>
    %149 = arith.mulf %148, %147 : vector<3x1xf32>
    %150 = arith.subf %20, %149 : vector<3x1xf32>
    %cst_36 = arith.constant dense<0xFF800000> : vector<1xf32>
    %151 = vector.multi_reduction <maximumf>, %150, %cst_36 [0] : vector<3x1xf32> to vector<1xf32>
    %152 = vector.shape_cast %151 : vector<1xf32> to vector<1x1xf32>
    %153 = vector.broadcast %152 : vector<1x1xf32> to vector<3x1xf32>
    %154 = arith.subf %150, %153 : vector<3x1xf32>
    %155 = math.exp %154 : vector<3x1xf32>
    %cst_37 = arith.constant dense<0.000000e+00> : vector<1xf32>
    %156 = vector.multi_reduction <add>, %155, %cst_37 [0] : vector<3x1xf32> to vector<1xf32>
    %157 = vector.shape_cast %156 : vector<1xf32> to vector<1x1xf32>
    %158 = vector.broadcast %157 : vector<1x1xf32> to vector<3x1xf32>
    %159 = arith.divf %155, %158 : vector<3x1xf32>
    %cst_38 = arith.constant dense<0.000000e+00> : vector<3xf32>
    %160 = vector.multi_reduction <add>, %17, %cst_38 [1] : vector<3x8xf32> to vector<3xf32>
    %161 = vector.shape_cast %160 : vector<3xf32> to vector<3x1xf32>
    %cst_39 = arith.constant 1.000000e-30 : f32
    %162 = vector.broadcast %cst_39 : f32 to vector<3x1xf32>
    %163 = arith.maximumf %161, %162 : vector<3x1xf32>
    %164 = tpu.reciprocal %163 {approx = true} : vector<3x1xf32> -> vector<3x1xf32>
    %165 = arith.mulf %159, %164 : vector<3x1xf32>
    %166 = vector.broadcast %165 : vector<3x1xf32> to vector<3x8xf32>
    %167 = arith.mulf %17, %166 : vector<3x8xf32>
    %cst_40 = arith.constant dense<0.000000e+00> : vector<8xf32>
    %168 = vector.multi_reduction <add>, %167, %cst_40 [0] : vector<3x8xf32> to vector<8xf32>
    %169 = vector.shape_cast %168 : vector<8xf32> to vector<1x8xf32>
    %cst_41 = arith.constant 1.000000e-30 : f32
    %170 = vector.broadcast %cst_41 : f32 to vector<1x8xf32>
    %171 = arith.maximumf %169, %170 : vector<1x8xf32>
    %172 = tpu.reciprocal %171 {approx = true} : vector<1x8xf32> -> vector<1x8xf32>
    %173 = vector.broadcast %172 : vector<1x8xf32> to vector<3x8xf32>
    %174 = arith.mulf %167, %173 : vector<3x8xf32>
    %cst_42 = arith.constant dense<0.000000e+00> : vector<3xf32>
    %175 = vector.multi_reduction <add>, %174, %cst_42 [1] : vector<3x8xf32> to vector<3xf32>
    %176 = vector.shape_cast %175 : vector<3xf32> to vector<3x1xf32>
    %cst_43 = arith.constant 1.000000e-30 : f32
    %177 = vector.broadcast %cst_43 : f32 to vector<3x1xf32>
    %178 = arith.maximumf %176, %177 : vector<3x1xf32>
    %179 = tpu.reciprocal %178 {approx = true} : vector<3x1xf32> -> vector<3x1xf32>
    %180 = arith.mulf %159, %179 : vector<3x1xf32>
    %181 = vector.broadcast %180 : vector<3x1xf32> to vector<3x8xf32>
    %182 = arith.mulf %174, %181 : vector<3x8xf32>
    %cst_44 = arith.constant dense<0.000000e+00> : vector<8xf32>
    %183 = vector.multi_reduction <add>, %182, %cst_44 [0] : vector<3x8xf32> to vector<8xf32>
    %184 = vector.shape_cast %183 : vector<8xf32> to vector<1x8xf32>
    %cst_45 = arith.constant 1.000000e-30 : f32
    %185 = vector.broadcast %cst_45 : f32 to vector<1x8xf32>
    %186 = arith.maximumf %184, %185 : vector<1x8xf32>
    %187 = tpu.reciprocal %186 {approx = true} : vector<1x8xf32> -> vector<1x8xf32>
    %188 = vector.broadcast %187 : vector<1x8xf32> to vector<3x8xf32>
    %189 = arith.mulf %182, %188 : vector<3x8xf32>
    %cst_46 = arith.constant dense<0.000000e+00> : vector<3xf32>
    %190 = vector.multi_reduction <add>, %189, %cst_46 [1] : vector<3x8xf32> to vector<3xf32>
    %191 = vector.shape_cast %190 : vector<3xf32> to vector<3x1xf32>
    %cst_47 = arith.constant 1.000000e-30 : f32
    %192 = vector.broadcast %cst_47 : f32 to vector<3x1xf32>
    %193 = arith.maximumf %191, %192 : vector<3x1xf32>
    %194 = tpu.reciprocal %193 {approx = true} : vector<3x1xf32> -> vector<3x1xf32>
    %195 = arith.mulf %159, %194 : vector<3x1xf32>
    %196 = vector.broadcast %195 : vector<3x1xf32> to vector<3x8xf32>
    %197 = arith.mulf %189, %196 : vector<3x8xf32>
    %cst_48 = arith.constant dense<0.000000e+00> : vector<8xf32>
    %198 = vector.multi_reduction <add>, %197, %cst_48 [0] : vector<3x8xf32> to vector<8xf32>
    %199 = vector.shape_cast %198 : vector<8xf32> to vector<1x8xf32>
    %cst_49 = arith.constant 1.000000e-30 : f32
    %200 = vector.broadcast %cst_49 : f32 to vector<1x8xf32>
    %201 = arith.maximumf %199, %200 : vector<1x8xf32>
    %202 = tpu.reciprocal %201 {approx = true} : vector<1x8xf32> -> vector<1x8xf32>
    %203 = vector.broadcast %202 : vector<1x8xf32> to vector<3x8xf32>
    %204 = arith.mulf %197, %203 : vector<3x8xf32>
    %cst_50 = arith.constant 0.000000e+00 : f32
    %205 = vector.broadcast %cst_50 : f32 to vector<3x1xf32>
    %206 = arith.mulf %19, %204 : vector<3x8xf32>
    %cst_51 = arith.constant dense<0.000000e+00> : vector<8xf32>
    %207 = vector.multi_reduction <add>, %206, %cst_51 [0] : vector<3x8xf32> to vector<8xf32>
    %208 = vector.shape_cast %207 : vector<8xf32> to vector<1x8xf32>
    %209 = vector.broadcast %208 : vector<1x8xf32> to vector<3x8xf32>
    %210 = arith.subf %19, %209 : vector<3x8xf32>
    %211 = vector.broadcast %202 : vector<1x8xf32> to vector<3x8xf32>
    %212 = arith.mulf %210, %211 : vector<3x8xf32>
    %213 = arith.mulf %212, %197 : vector<3x8xf32>
    %cst_52 = arith.constant dense<0.000000e+00> : vector<3xf32>
    %214 = vector.multi_reduction <add>, %213, %cst_52 [1] : vector<3x8xf32> to vector<3xf32>
    %215 = vector.shape_cast %214 : vector<3xf32> to vector<3x1xf32>
    %216 = arith.addf %205, %215 : vector<3x1xf32>
    %217 = vector.broadcast %195 : vector<3x1xf32> to vector<3x8xf32>
    %218 = arith.mulf %217, %212 : vector<3x8xf32>
    %219 = arith.mulf %194, %215 : vector<3x1xf32>
    %220 = vector.broadcast %219 : vector<3x1xf32> to vector<3x8xf32>
    %221 = arith.subf %218, %220 : vector<3x8xf32>
    %222 = arith.mulf %221, %189 : vector<3x8xf32>
    %cst_53 = arith.constant dense<0.000000e+00> : vector<8xf32>
    %223 = vector.multi_reduction <add>, %222, %cst_53 [0] : vector<3x8xf32> to vector<8xf32>
    %224 = vector.shape_cast %223 : vector<8xf32> to vector<1x8xf32>
    %225 = vector.broadcast %224 : vector<1x8xf32> to vector<3x8xf32>
    %226 = arith.subf %221, %225 : vector<3x8xf32>
    %227 = vector.broadcast %187 : vector<1x8xf32> to vector<3x8xf32>
    %228 = arith.mulf %226, %227 : vector<3x8xf32>
    %229 = arith.mulf %228, %182 : vector<3x8xf32>
    %cst_54 = arith.constant dense<0.000000e+00> : vector<3xf32>
    %230 = vector.multi_reduction <add>, %229, %cst_54 [1] : vector<3x8xf32> to vector<3xf32>
    %231 = vector.shape_cast %230 : vector<3xf32> to vector<3x1xf32>
    %232 = arith.addf %216, %231 : vector<3x1xf32>
    %233 = vector.broadcast %180 : vector<3x1xf32> to vector<3x8xf32>
    %234 = arith.mulf %233, %228 : vector<3x8xf32>
    %235 = arith.mulf %179, %231 : vector<3x1xf32>
    %236 = vector.broadcast %235 : vector<3x1xf32> to vector<3x8xf32>
    %237 = arith.subf %234, %236 : vector<3x8xf32>
    %238 = arith.mulf %237, %174 : vector<3x8xf32>
    %cst_55 = arith.constant dense<0.000000e+00> : vector<8xf32>
    %239 = vector.multi_reduction <add>, %238, %cst_55 [0] : vector<3x8xf32> to vector<8xf32>
    %240 = vector.shape_cast %239 : vector<8xf32> to vector<1x8xf32>
    %241 = vector.broadcast %240 : vector<1x8xf32> to vector<3x8xf32>
    %242 = arith.subf %237, %241 : vector<3x8xf32>
    %243 = vector.broadcast %172 : vector<1x8xf32> to vector<3x8xf32>
    %244 = arith.mulf %242, %243 : vector<3x8xf32>
    %245 = arith.mulf %244, %167 : vector<3x8xf32>
    %cst_56 = arith.constant dense<0.000000e+00> : vector<3xf32>
    %246 = vector.multi_reduction <add>, %245, %cst_56 [1] : vector<3x8xf32> to vector<3xf32>
    %247 = vector.shape_cast %246 : vector<3xf32> to vector<3x1xf32>
    %248 = arith.addf %232, %247 : vector<3x1xf32>
    %cst_57 = arith.constant dense<0.000000e+00> : vector<1xf32>
    %249 = vector.multi_reduction <add>, %248, %cst_57 [0] : vector<3x1xf32> to vector<1xf32>
    %250 = vector.shape_cast %249 : vector<1xf32> to vector<1x1xf32>
    %251 = vector.broadcast %250 : vector<1x1xf32> to vector<3x1xf32>
    %252 = arith.mulf %159, %251 : vector<3x1xf32>
    %253 = arith.subf %248, %252 : vector<3x1xf32>
    %cst_58 = arith.constant 0.333333343 : f32
    %254 = vector.broadcast %cst_58 : f32 to vector<3x1xf32>
    %255 = arith.subf %159, %254 : vector<3x1xf32>
    %cst_59 = arith.constant 1.66666663 : f32
    %256 = vector.broadcast %cst_59 : f32 to vector<3x1xf32>
    %257 = arith.mulf %256, %255 : vector<3x1xf32>
    %258 = arith.addf %253, %257 : vector<3x1xf32>
    %259 = arith.mulf %258, %258 : vector<3x1xf32>
    %260 = vector.shape_cast %259 : vector<3x1xf32> to vector<1x3x1xf32>
    %cst_60 = arith.constant dense<0.000000e+00> : vector<1xf32>
    %261 = vector.multi_reduction <add>, %260, %cst_60 [1, 2] : vector<1x3x1xf32> to vector<1xf32>
    %262 = vector.shape_cast %261 : vector<1xf32> to vector<1x1x1xf32>
    %263 = vector.extract %262[0, 0, 0] : f32 from vector<1x1x1xf32>
    %264 = vector.broadcast %263 : f32 to vector<1x1xf32>
    %265 = math.sqrt %264 : vector<1x1xf32>
    %cst_61 = arith.constant 9.99999997E-7 : f32
    %266 = vector.broadcast %cst_61 : f32 to vector<1x1xf32>
    %267 = arith.addf %265, %266 : vector<1x1xf32>
    %cst_62 = arith.constant 1.000000e+00 : f32
    %268 = vector.broadcast %cst_62 : f32 to vector<1x1xf32>
    %269 = arith.divf %268, %267 : vector<1x1xf32>
    %cst_63 = arith.constant 1.000000e+00 : f32
    %270 = vector.broadcast %cst_63 : f32 to vector<1x1xf32>
    %271 = arith.minimumf %270, %269 : vector<1x1xf32>
    %272 = vector.broadcast %271 : vector<1x1xf32> to vector<3x1xf32>
    %273 = arith.mulf %258, %272 : vector<3x1xf32>
    %cst_64 = arith.constant 9.900000e-01 : f32
    %274 = vector.broadcast %cst_64 : f32 to vector<3x1xf32>
    %275 = arith.mulf %274, %147 : vector<3x1xf32>
    %276 = arith.addf %275, %273 : vector<3x1xf32>
    %cst_65 = arith.constant 1.000000e-01 : f32
    %277 = vector.broadcast %cst_65 : f32 to vector<3x1xf32>
    %278 = arith.mulf %277, %276 : vector<3x1xf32>
    %279 = arith.subf %150, %278 : vector<3x1xf32>
    %cst_66 = arith.constant dense<0xFF800000> : vector<1xf32>
    %280 = vector.multi_reduction <maximumf>, %279, %cst_66 [0] : vector<3x1xf32> to vector<1xf32>
    %281 = vector.shape_cast %280 : vector<1xf32> to vector<1x1xf32>
    %282 = vector.broadcast %281 : vector<1x1xf32> to vector<3x1xf32>
    %283 = arith.subf %279, %282 : vector<3x1xf32>
    %284 = math.exp %283 : vector<3x1xf32>
    %cst_67 = arith.constant dense<0.000000e+00> : vector<1xf32>
    %285 = vector.multi_reduction <add>, %284, %cst_67 [0] : vector<3x1xf32> to vector<1xf32>
    %286 = vector.shape_cast %285 : vector<1xf32> to vector<1x1xf32>
    %287 = vector.broadcast %286 : vector<1x1xf32> to vector<3x1xf32>
    %288 = arith.divf %284, %287 : vector<3x1xf32>
    %cst_68 = arith.constant dense<0.000000e+00> : vector<3xf32>
    %289 = vector.multi_reduction <add>, %17, %cst_68 [1] : vector<3x8xf32> to vector<3xf32>
    %290 = vector.shape_cast %289 : vector<3xf32> to vector<3x1xf32>
    %cst_69 = arith.constant 1.000000e-30 : f32
    %291 = vector.broadcast %cst_69 : f32 to vector<3x1xf32>
    %292 = arith.maximumf %290, %291 : vector<3x1xf32>
    %293 = tpu.reciprocal %292 {approx = true} : vector<3x1xf32> -> vector<3x1xf32>
    %294 = arith.mulf %288, %293 : vector<3x1xf32>
    %295 = vector.broadcast %294 : vector<3x1xf32> to vector<3x8xf32>
    %296 = arith.mulf %17, %295 : vector<3x8xf32>
    %cst_70 = arith.constant dense<0.000000e+00> : vector<8xf32>
    %297 = vector.multi_reduction <add>, %296, %cst_70 [0] : vector<3x8xf32> to vector<8xf32>
    %298 = vector.shape_cast %297 : vector<8xf32> to vector<1x8xf32>
    %cst_71 = arith.constant 1.000000e-30 : f32
    %299 = vector.broadcast %cst_71 : f32 to vector<1x8xf32>
    %300 = arith.maximumf %298, %299 : vector<1x8xf32>
    %301 = tpu.reciprocal %300 {approx = true} : vector<1x8xf32> -> vector<1x8xf32>
    %302 = vector.broadcast %301 : vector<1x8xf32> to vector<3x8xf32>
    %303 = arith.mulf %296, %302 : vector<3x8xf32>
    %cst_72 = arith.constant dense<0.000000e+00> : vector<3xf32>
    %304 = vector.multi_reduction <add>, %303, %cst_72 [1] : vector<3x8xf32> to vector<3xf32>
    %305 = vector.shape_cast %304 : vector<3xf32> to vector<3x1xf32>
    %cst_73 = arith.constant 1.000000e-30 : f32
    %306 = vector.broadcast %cst_73 : f32 to vector<3x1xf32>
    %307 = arith.maximumf %305, %306 : vector<3x1xf32>
    %308 = tpu.reciprocal %307 {approx = true} : vector<3x1xf32> -> vector<3x1xf32>
    %309 = arith.mulf %288, %308 : vector<3x1xf32>
    %310 = vector.broadcast %309 : vector<3x1xf32> to vector<3x8xf32>
    %311 = arith.mulf %303, %310 : vector<3x8xf32>
    %cst_74 = arith.constant dense<0.000000e+00> : vector<8xf32>
    %312 = vector.multi_reduction <add>, %311, %cst_74 [0] : vector<3x8xf32> to vector<8xf32>
    %313 = vector.shape_cast %312 : vector<8xf32> to vector<1x8xf32>
    %cst_75 = arith.constant 1.000000e-30 : f32
    %314 = vector.broadcast %cst_75 : f32 to vector<1x8xf32>
    %315 = arith.maximumf %313, %314 : vector<1x8xf32>
    %316 = tpu.reciprocal %315 {approx = true} : vector<1x8xf32> -> vector<1x8xf32>
    %317 = vector.broadcast %316 : vector<1x8xf32> to vector<3x8xf32>
    %318 = arith.mulf %311, %317 : vector<3x8xf32>
    %cst_76 = arith.constant dense<0.000000e+00> : vector<3xf32>
    %319 = vector.multi_reduction <add>, %318, %cst_76 [1] : vector<3x8xf32> to vector<3xf32>
    %320 = vector.shape_cast %319 : vector<3xf32> to vector<3x1xf32>
    %cst_77 = arith.constant 1.000000e-30 : f32
    %321 = vector.broadcast %cst_77 : f32 to vector<3x1xf32>
    %322 = arith.maximumf %320, %321 : vector<3x1xf32>
    %323 = tpu.reciprocal %322 {approx = true} : vector<3x1xf32> -> vector<3x1xf32>
    %324 = arith.mulf %288, %323 : vector<3x1xf32>
    %325 = vector.broadcast %324 : vector<3x1xf32> to vector<3x8xf32>
    %326 = arith.mulf %318, %325 : vector<3x8xf32>
    %cst_78 = arith.constant dense<0.000000e+00> : vector<8xf32>
    %327 = vector.multi_reduction <add>, %326, %cst_78 [0] : vector<3x8xf32> to vector<8xf32>
    %328 = vector.shape_cast %327 : vector<8xf32> to vector<1x8xf32>
    %cst_79 = arith.constant 1.000000e-30 : f32
    %329 = vector.broadcast %cst_79 : f32 to vector<1x8xf32>
    %330 = arith.maximumf %328, %329 : vector<1x8xf32>
    %331 = tpu.reciprocal %330 {approx = true} : vector<1x8xf32> -> vector<1x8xf32>
    %332 = vector.broadcast %331 : vector<1x8xf32> to vector<3x8xf32>
    %333 = arith.mulf %326, %332 : vector<3x8xf32>
    %cst_80 = arith.constant 0.000000e+00 : f32
    %334 = vector.broadcast %cst_80 : f32 to vector<3x1xf32>
    %335 = arith.mulf %19, %333 : vector<3x8xf32>
    %cst_81 = arith.constant dense<0.000000e+00> : vector<8xf32>
    %336 = vector.multi_reduction <add>, %335, %cst_81 [0] : vector<3x8xf32> to vector<8xf32>
    %337 = vector.shape_cast %336 : vector<8xf32> to vector<1x8xf32>
    %338 = vector.broadcast %337 : vector<1x8xf32> to vector<3x8xf32>
    %339 = arith.subf %19, %338 : vector<3x8xf32>
    %340 = vector.broadcast %331 : vector<1x8xf32> to vector<3x8xf32>
    %341 = arith.mulf %339, %340 : vector<3x8xf32>
    %342 = arith.mulf %341, %326 : vector<3x8xf32>
    %cst_82 = arith.constant dense<0.000000e+00> : vector<3xf32>
    %343 = vector.multi_reduction <add>, %342, %cst_82 [1] : vector<3x8xf32> to vector<3xf32>
    %344 = vector.shape_cast %343 : vector<3xf32> to vector<3x1xf32>
    %345 = arith.addf %334, %344 : vector<3x1xf32>
    %346 = vector.broadcast %324 : vector<3x1xf32> to vector<3x8xf32>
    %347 = arith.mulf %346, %341 : vector<3x8xf32>
    %348 = arith.mulf %323, %344 : vector<3x1xf32>
    %349 = vector.broadcast %348 : vector<3x1xf32> to vector<3x8xf32>
    %350 = arith.subf %347, %349 : vector<3x8xf32>
    %351 = arith.mulf %350, %318 : vector<3x8xf32>
    %cst_83 = arith.constant dense<0.000000e+00> : vector<8xf32>
    %352 = vector.multi_reduction <add>, %351, %cst_83 [0] : vector<3x8xf32> to vector<8xf32>
    %353 = vector.shape_cast %352 : vector<8xf32> to vector<1x8xf32>
    %354 = vector.broadcast %353 : vector<1x8xf32> to vector<3x8xf32>
    %355 = arith.subf %350, %354 : vector<3x8xf32>
    %356 = vector.broadcast %316 : vector<1x8xf32> to vector<3x8xf32>
    %357 = arith.mulf %355, %356 : vector<3x8xf32>
    %358 = arith.mulf %357, %311 : vector<3x8xf32>
    %cst_84 = arith.constant dense<0.000000e+00> : vector<3xf32>
    %359 = vector.multi_reduction <add>, %358, %cst_84 [1] : vector<3x8xf32> to vector<3xf32>
    %360 = vector.shape_cast %359 : vector<3xf32> to vector<3x1xf32>
    %361 = arith.addf %345, %360 : vector<3x1xf32>
    %362 = vector.broadcast %309 : vector<3x1xf32> to vector<3x8xf32>
    %363 = arith.mulf %362, %357 : vector<3x8xf32>
    %364 = arith.mulf %308, %360 : vector<3x1xf32>
    %365 = vector.broadcast %364 : vector<3x1xf32> to vector<3x8xf32>
    %366 = arith.subf %363, %365 : vector<3x8xf32>
    %367 = arith.mulf %366, %303 : vector<3x8xf32>
    %cst_85 = arith.constant dense<0.000000e+00> : vector<8xf32>
    %368 = vector.multi_reduction <add>, %367, %cst_85 [0] : vector<3x8xf32> to vector<8xf32>
    %369 = vector.shape_cast %368 : vector<8xf32> to vector<1x8xf32>
    %370 = vector.broadcast %369 : vector<1x8xf32> to vector<3x8xf32>
    %371 = arith.subf %366, %370 : vector<3x8xf32>
    %372 = vector.broadcast %301 : vector<1x8xf32> to vector<3x8xf32>
    %373 = arith.mulf %371, %372 : vector<3x8xf32>
    %374 = arith.mulf %373, %296 : vector<3x8xf32>
    %cst_86 = arith.constant dense<0.000000e+00> : vector<3xf32>
    %375 = vector.multi_reduction <add>, %374, %cst_86 [1] : vector<3x8xf32> to vector<3xf32>
    %376 = vector.shape_cast %375 : vector<3xf32> to vector<3x1xf32>
    %377 = arith.addf %361, %376 : vector<3x1xf32>
    %cst_87 = arith.constant dense<0.000000e+00> : vector<1xf32>
    %378 = vector.multi_reduction <add>, %377, %cst_87 [0] : vector<3x1xf32> to vector<1xf32>
    %379 = vector.shape_cast %378 : vector<1xf32> to vector<1x1xf32>
    %380 = vector.broadcast %379 : vector<1x1xf32> to vector<3x1xf32>
    %381 = arith.mulf %288, %380 : vector<3x1xf32>
    %382 = arith.subf %377, %381 : vector<3x1xf32>
    %cst_88 = arith.constant 0.333333343 : f32
    %383 = vector.broadcast %cst_88 : f32 to vector<3x1xf32>
    %384 = arith.subf %288, %383 : vector<3x1xf32>
    %cst_89 = arith.constant 1.66666663 : f32
    %385 = vector.broadcast %cst_89 : f32 to vector<3x1xf32>
    %386 = arith.mulf %385, %384 : vector<3x1xf32>
    %387 = arith.addf %382, %386 : vector<3x1xf32>
    %388 = arith.mulf %387, %387 : vector<3x1xf32>
    %389 = vector.shape_cast %388 : vector<3x1xf32> to vector<1x3x1xf32>
    %cst_90 = arith.constant dense<0.000000e+00> : vector<1xf32>
    %390 = vector.multi_reduction <add>, %389, %cst_90 [1, 2] : vector<1x3x1xf32> to vector<1xf32>
    %391 = vector.shape_cast %390 : vector<1xf32> to vector<1x1x1xf32>
    %392 = vector.extract %391[0, 0, 0] : f32 from vector<1x1x1xf32>
    %393 = vector.broadcast %392 : f32 to vector<1x1xf32>
    %394 = math.sqrt %393 : vector<1x1xf32>
    %cst_91 = arith.constant 9.99999997E-7 : f32
    %395 = vector.broadcast %cst_91 : f32 to vector<1x1xf32>
    %396 = arith.addf %394, %395 : vector<1x1xf32>
    %cst_92 = arith.constant 1.000000e+00 : f32
    %397 = vector.broadcast %cst_92 : f32 to vector<1x1xf32>
    %398 = arith.divf %397, %396 : vector<1x1xf32>
    %cst_93 = arith.constant 1.000000e+00 : f32
    %399 = vector.broadcast %cst_93 : f32 to vector<1x1xf32>
    %400 = arith.minimumf %399, %398 : vector<1x1xf32>
    %401 = vector.broadcast %400 : vector<1x1xf32> to vector<3x1xf32>
    %402 = arith.mulf %387, %401 : vector<3x1xf32>
    %cst_94 = arith.constant 9.900000e-01 : f32
    %403 = vector.broadcast %cst_94 : f32 to vector<3x1xf32>
    %404 = arith.mulf %403, %276 : vector<3x1xf32>
    %405 = arith.addf %404, %402 : vector<3x1xf32>
    %cst_95 = arith.constant 1.000000e-01 : f32
    %406 = vector.broadcast %cst_95 : f32 to vector<3x1xf32>
    %407 = arith.mulf %406, %405 : vector<3x1xf32>
    %408 = arith.subf %279, %407 : vector<3x1xf32>
    %cst_96 = arith.constant dense<0xFF800000> : vector<1xf32>
    %409 = vector.multi_reduction <maximumf>, %408, %cst_96 [0] : vector<3x1xf32> to vector<1xf32>
    %410 = vector.shape_cast %409 : vector<1xf32> to vector<1x1xf32>
    %411 = vector.broadcast %410 : vector<1x1xf32> to vector<3x1xf32>
    %412 = arith.subf %408, %411 : vector<3x1xf32>
    %413 = math.exp %412 : vector<3x1xf32>
    %cst_97 = arith.constant dense<0.000000e+00> : vector<1xf32>
    %414 = vector.multi_reduction <add>, %413, %cst_97 [0] : vector<3x1xf32> to vector<1xf32>
    %415 = vector.shape_cast %414 : vector<1xf32> to vector<1x1xf32>
    %416 = vector.broadcast %415 : vector<1x1xf32> to vector<3x1xf32>
    %417 = arith.divf %413, %416 : vector<3x1xf32>
    %cst_98 = arith.constant dense<0.000000e+00> : vector<3xf32>
    %418 = vector.multi_reduction <add>, %17, %cst_98 [1] : vector<3x8xf32> to vector<3xf32>
    %419 = vector.shape_cast %418 : vector<3xf32> to vector<3x1xf32>
    %cst_99 = arith.constant 1.000000e-30 : f32
    %420 = vector.broadcast %cst_99 : f32 to vector<3x1xf32>
    %421 = arith.maximumf %419, %420 : vector<3x1xf32>
    %422 = tpu.reciprocal %421 {approx = true} : vector<3x1xf32> -> vector<3x1xf32>
    %423 = arith.mulf %417, %422 : vector<3x1xf32>
    %424 = vector.broadcast %423 : vector<3x1xf32> to vector<3x8xf32>
    %425 = arith.mulf %17, %424 : vector<3x8xf32>
    %cst_100 = arith.constant dense<0.000000e+00> : vector<8xf32>
    %426 = vector.multi_reduction <add>, %425, %cst_100 [0] : vector<3x8xf32> to vector<8xf32>
    %427 = vector.shape_cast %426 : vector<8xf32> to vector<1x8xf32>
    %cst_101 = arith.constant 1.000000e-30 : f32
    %428 = vector.broadcast %cst_101 : f32 to vector<1x8xf32>
    %429 = arith.maximumf %427, %428 : vector<1x8xf32>
    %430 = tpu.reciprocal %429 {approx = true} : vector<1x8xf32> -> vector<1x8xf32>
    %431 = vector.broadcast %430 : vector<1x8xf32> to vector<3x8xf32>
    %432 = arith.mulf %425, %431 : vector<3x8xf32>
    %cst_102 = arith.constant dense<0.000000e+00> : vector<3xf32>
    %433 = vector.multi_reduction <add>, %432, %cst_102 [1] : vector<3x8xf32> to vector<3xf32>
    %434 = vector.shape_cast %433 : vector<3xf32> to vector<3x1xf32>
    %cst_103 = arith.constant 1.000000e-30 : f32
    %435 = vector.broadcast %cst_103 : f32 to vector<3x1xf32>
    %436 = arith.maximumf %434, %435 : vector<3x1xf32>
    %437 = tpu.reciprocal %436 {approx = true} : vector<3x1xf32> -> vector<3x1xf32>
    %438 = arith.mulf %417, %437 : vector<3x1xf32>
    %439 = vector.broadcast %438 : vector<3x1xf32> to vector<3x8xf32>
    %440 = arith.mulf %432, %439 : vector<3x8xf32>
    %cst_104 = arith.constant dense<0.000000e+00> : vector<8xf32>
    %441 = vector.multi_reduction <add>, %440, %cst_104 [0] : vector<3x8xf32> to vector<8xf32>
    %442 = vector.shape_cast %441 : vector<8xf32> to vector<1x8xf32>
    %cst_105 = arith.constant 1.000000e-30 : f32
    %443 = vector.broadcast %cst_105 : f32 to vector<1x8xf32>
    %444 = arith.maximumf %442, %443 : vector<1x8xf32>
    %445 = tpu.reciprocal %444 {approx = true} : vector<1x8xf32> -> vector<1x8xf32>
    %446 = vector.broadcast %445 : vector<1x8xf32> to vector<3x8xf32>
    %447 = arith.mulf %440, %446 : vector<3x8xf32>
    %cst_106 = arith.constant dense<0.000000e+00> : vector<3xf32>
    %448 = vector.multi_reduction <add>, %447, %cst_106 [1] : vector<3x8xf32> to vector<3xf32>
    %449 = vector.shape_cast %448 : vector<3xf32> to vector<3x1xf32>
    %cst_107 = arith.constant 1.000000e-30 : f32
    %450 = vector.broadcast %cst_107 : f32 to vector<3x1xf32>
    %451 = arith.maximumf %449, %450 : vector<3x1xf32>
    %452 = tpu.reciprocal %451 {approx = true} : vector<3x1xf32> -> vector<3x1xf32>
    %453 = arith.mulf %417, %452 : vector<3x1xf32>
    %454 = vector.broadcast %453 : vector<3x1xf32> to vector<3x8xf32>
    %455 = arith.mulf %447, %454 : vector<3x8xf32>
    %cst_108 = arith.constant dense<0.000000e+00> : vector<8xf32>
    %456 = vector.multi_reduction <add>, %455, %cst_108 [0] : vector<3x8xf32> to vector<8xf32>
    %457 = vector.shape_cast %456 : vector<8xf32> to vector<1x8xf32>
    %cst_109 = arith.constant 1.000000e-30 : f32
    %458 = vector.broadcast %cst_109 : f32 to vector<1x8xf32>
    %459 = arith.maximumf %457, %458 : vector<1x8xf32>
    %460 = tpu.reciprocal %459 {approx = true} : vector<1x8xf32> -> vector<1x8xf32>
    %461 = vector.broadcast %460 : vector<1x8xf32> to vector<3x8xf32>
    %462 = arith.mulf %455, %461 : vector<3x8xf32>
    %cst_110 = arith.constant 0.000000e+00 : f32
    %463 = vector.broadcast %cst_110 : f32 to vector<3x1xf32>
    %464 = arith.mulf %19, %462 : vector<3x8xf32>
    %cst_111 = arith.constant dense<0.000000e+00> : vector<8xf32>
    %465 = vector.multi_reduction <add>, %464, %cst_111 [0] : vector<3x8xf32> to vector<8xf32>
    %466 = vector.shape_cast %465 : vector<8xf32> to vector<1x8xf32>
    %467 = vector.broadcast %466 : vector<1x8xf32> to vector<3x8xf32>
    %468 = arith.subf %19, %467 : vector<3x8xf32>
    %469 = vector.broadcast %460 : vector<1x8xf32> to vector<3x8xf32>
    %470 = arith.mulf %468, %469 : vector<3x8xf32>
    %471 = arith.mulf %470, %455 : vector<3x8xf32>
    %cst_112 = arith.constant dense<0.000000e+00> : vector<3xf32>
    %472 = vector.multi_reduction <add>, %471, %cst_112 [1] : vector<3x8xf32> to vector<3xf32>
    %473 = vector.shape_cast %472 : vector<3xf32> to vector<3x1xf32>
    %474 = arith.addf %463, %473 : vector<3x1xf32>
    %475 = vector.broadcast %453 : vector<3x1xf32> to vector<3x8xf32>
    %476 = arith.mulf %475, %470 : vector<3x8xf32>
    %477 = arith.mulf %452, %473 : vector<3x1xf32>
    %478 = vector.broadcast %477 : vector<3x1xf32> to vector<3x8xf32>
    %479 = arith.subf %476, %478 : vector<3x8xf32>
    %480 = arith.mulf %479, %447 : vector<3x8xf32>
    %cst_113 = arith.constant dense<0.000000e+00> : vector<8xf32>
    %481 = vector.multi_reduction <add>, %480, %cst_113 [0] : vector<3x8xf32> to vector<8xf32>
    %482 = vector.shape_cast %481 : vector<8xf32> to vector<1x8xf32>
    %483 = vector.broadcast %482 : vector<1x8xf32> to vector<3x8xf32>
    %484 = arith.subf %479, %483 : vector<3x8xf32>
    %485 = vector.broadcast %445 : vector<1x8xf32> to vector<3x8xf32>
    %486 = arith.mulf %484, %485 : vector<3x8xf32>
    %487 = arith.mulf %486, %440 : vector<3x8xf32>
    %cst_114 = arith.constant dense<0.000000e+00> : vector<3xf32>
    %488 = vector.multi_reduction <add>, %487, %cst_114 [1] : vector<3x8xf32> to vector<3xf32>
    %489 = vector.shape_cast %488 : vector<3xf32> to vector<3x1xf32>
    %490 = arith.addf %474, %489 : vector<3x1xf32>
    %491 = vector.broadcast %438 : vector<3x1xf32> to vector<3x8xf32>
    %492 = arith.mulf %491, %486 : vector<3x8xf32>
    %493 = arith.mulf %437, %489 : vector<3x1xf32>
    %494 = vector.broadcast %493 : vector<3x1xf32> to vector<3x8xf32>
    %495 = arith.subf %492, %494 : vector<3x8xf32>
    %496 = arith.mulf %495, %432 : vector<3x8xf32>
    %cst_115 = arith.constant dense<0.000000e+00> : vector<8xf32>
    %497 = vector.multi_reduction <add>, %496, %cst_115 [0] : vector<3x8xf32> to vector<8xf32>
    %498 = vector.shape_cast %497 : vector<8xf32> to vector<1x8xf32>
    %499 = vector.broadcast %498 : vector<1x8xf32> to vector<3x8xf32>
    %500 = arith.subf %495, %499 : vector<3x8xf32>
    %501 = vector.broadcast %430 : vector<1x8xf32> to vector<3x8xf32>
    %502 = arith.mulf %500, %501 : vector<3x8xf32>
    %503 = arith.mulf %502, %425 : vector<3x8xf32>
    %cst_116 = arith.constant dense<0.000000e+00> : vector<3xf32>
    %504 = vector.multi_reduction <add>, %503, %cst_116 [1] : vector<3x8xf32> to vector<3xf32>
    %505 = vector.shape_cast %504 : vector<3xf32> to vector<3x1xf32>
    %506 = arith.addf %490, %505 : vector<3x1xf32>
    %cst_117 = arith.constant dense<0.000000e+00> : vector<1xf32>
    %507 = vector.multi_reduction <add>, %506, %cst_117 [0] : vector<3x1xf32> to vector<1xf32>
    %508 = vector.shape_cast %507 : vector<1xf32> to vector<1x1xf32>
    %509 = vector.broadcast %508 : vector<1x1xf32> to vector<3x1xf32>
    %510 = arith.mulf %417, %509 : vector<3x1xf32>
    %511 = arith.subf %506, %510 : vector<3x1xf32>
    %cst_118 = arith.constant 0.333333343 : f32
    %512 = vector.broadcast %cst_118 : f32 to vector<3x1xf32>
    %513 = arith.subf %417, %512 : vector<3x1xf32>
    %cst_119 = arith.constant 1.66666663 : f32
    %514 = vector.broadcast %cst_119 : f32 to vector<3x1xf32>
    %515 = arith.mulf %514, %513 : vector<3x1xf32>
    %516 = arith.addf %511, %515 : vector<3x1xf32>
    %517 = arith.mulf %516, %516 : vector<3x1xf32>
    %518 = vector.shape_cast %517 : vector<3x1xf32> to vector<1x3x1xf32>
    %cst_120 = arith.constant dense<0.000000e+00> : vector<1xf32>
    %519 = vector.multi_reduction <add>, %518, %cst_120 [1, 2] : vector<1x3x1xf32> to vector<1xf32>
    %520 = vector.shape_cast %519 : vector<1xf32> to vector<1x1x1xf32>
    %521 = vector.extract %520[0, 0, 0] : f32 from vector<1x1x1xf32>
    %522 = vector.broadcast %521 : f32 to vector<1x1xf32>
    %523 = math.sqrt %522 : vector<1x1xf32>
    %cst_121 = arith.constant 9.99999997E-7 : f32
    %524 = vector.broadcast %cst_121 : f32 to vector<1x1xf32>
    %525 = arith.addf %523, %524 : vector<1x1xf32>
    %cst_122 = arith.constant 1.000000e+00 : f32
    %526 = vector.broadcast %cst_122 : f32 to vector<1x1xf32>
    %527 = arith.divf %526, %525 : vector<1x1xf32>
    %cst_123 = arith.constant 1.000000e+00 : f32
    %528 = vector.broadcast %cst_123 : f32 to vector<1x1xf32>
    %529 = arith.minimumf %528, %527 : vector<1x1xf32>
    %530 = vector.broadcast %529 : vector<1x1xf32> to vector<3x1xf32>
    %531 = arith.mulf %516, %530 : vector<3x1xf32>
    %cst_124 = arith.constant 9.900000e-01 : f32
    %532 = vector.broadcast %cst_124 : f32 to vector<3x1xf32>
    %533 = arith.mulf %532, %405 : vector<3x1xf32>
    %534 = arith.addf %533, %531 : vector<3x1xf32>
    %cst_125 = arith.constant 1.000000e-01 : f32
    %535 = vector.broadcast %cst_125 : f32 to vector<3x1xf32>
    %536 = arith.mulf %535, %534 : vector<3x1xf32>
    %537 = arith.subf %408, %536 : vector<3x1xf32>
    %cst_126 = arith.constant dense<0xFF800000> : vector<1xf32>
    %538 = vector.multi_reduction <maximumf>, %537, %cst_126 [0] : vector<3x1xf32> to vector<1xf32>
    %539 = vector.shape_cast %538 : vector<1xf32> to vector<1x1xf32>
    %540 = vector.broadcast %539 : vector<1x1xf32> to vector<3x1xf32>
    %541 = arith.subf %537, %540 : vector<3x1xf32>
    %542 = math.exp %541 : vector<3x1xf32>
    %cst_127 = arith.constant dense<0.000000e+00> : vector<1xf32>
    %543 = vector.multi_reduction <add>, %542, %cst_127 [0] : vector<3x1xf32> to vector<1xf32>
    %544 = vector.shape_cast %543 : vector<1xf32> to vector<1x1xf32>
    %545 = vector.broadcast %544 : vector<1x1xf32> to vector<3x1xf32>
    %546 = arith.divf %542, %545 : vector<3x1xf32>
    %cst_128 = arith.constant dense<0.000000e+00> : vector<3xf32>
    %547 = vector.multi_reduction <add>, %17, %cst_128 [1] : vector<3x8xf32> to vector<3xf32>
    %548 = vector.shape_cast %547 : vector<3xf32> to vector<3x1xf32>
    %cst_129 = arith.constant 1.000000e-30 : f32
    %549 = vector.broadcast %cst_129 : f32 to vector<3x1xf32>
    %550 = arith.maximumf %548, %549 : vector<3x1xf32>
    %551 = tpu.reciprocal %550 {approx = true} : vector<3x1xf32> -> vector<3x1xf32>
    %552 = arith.mulf %546, %551 : vector<3x1xf32>
    %553 = vector.broadcast %552 : vector<3x1xf32> to vector<3x8xf32>
    %554 = arith.mulf %17, %553 : vector<3x8xf32>
    %cst_130 = arith.constant dense<0.000000e+00> : vector<8xf32>
    %555 = vector.multi_reduction <add>, %554, %cst_130 [0] : vector<3x8xf32> to vector<8xf32>
    %556 = vector.shape_cast %555 : vector<8xf32> to vector<1x8xf32>
    %cst_131 = arith.constant 1.000000e-30 : f32
    %557 = vector.broadcast %cst_131 : f32 to vector<1x8xf32>
    %558 = arith.maximumf %556, %557 : vector<1x8xf32>
    %559 = tpu.reciprocal %558 {approx = true} : vector<1x8xf32> -> vector<1x8xf32>
    %560 = vector.broadcast %559 : vector<1x8xf32> to vector<3x8xf32>
    %561 = arith.mulf %554, %560 : vector<3x8xf32>
    %cst_132 = arith.constant dense<0.000000e+00> : vector<3xf32>
    %562 = vector.multi_reduction <add>, %561, %cst_132 [1] : vector<3x8xf32> to vector<3xf32>
    %563 = vector.shape_cast %562 : vector<3xf32> to vector<3x1xf32>
    %cst_133 = arith.constant 1.000000e-30 : f32
    %564 = vector.broadcast %cst_133 : f32 to vector<3x1xf32>
    %565 = arith.maximumf %563, %564 : vector<3x1xf32>
    %566 = tpu.reciprocal %565 {approx = true} : vector<3x1xf32> -> vector<3x1xf32>
    %567 = arith.mulf %546, %566 : vector<3x1xf32>
    %568 = vector.broadcast %567 : vector<3x1xf32> to vector<3x8xf32>
    %569 = arith.mulf %561, %568 : vector<3x8xf32>
    %cst_134 = arith.constant dense<0.000000e+00> : vector<8xf32>
    %570 = vector.multi_reduction <add>, %569, %cst_134 [0] : vector<3x8xf32> to vector<8xf32>
    %571 = vector.shape_cast %570 : vector<8xf32> to vector<1x8xf32>
    %cst_135 = arith.constant 1.000000e-30 : f32
    %572 = vector.broadcast %cst_135 : f32 to vector<1x8xf32>
    %573 = arith.maximumf %571, %572 : vector<1x8xf32>
    %574 = tpu.reciprocal %573 {approx = true} : vector<1x8xf32> -> vector<1x8xf32>
    %575 = vector.broadcast %574 : vector<1x8xf32> to vector<3x8xf32>
    %576 = arith.mulf %569, %575 : vector<3x8xf32>
    %cst_136 = arith.constant dense<0.000000e+00> : vector<3xf32>
    %577 = vector.multi_reduction <add>, %576, %cst_136 [1] : vector<3x8xf32> to vector<3xf32>
    %578 = vector.shape_cast %577 : vector<3xf32> to vector<3x1xf32>
    %cst_137 = arith.constant 1.000000e-30 : f32
    %579 = vector.broadcast %cst_137 : f32 to vector<3x1xf32>
    %580 = arith.maximumf %578, %579 : vector<3x1xf32>
    %581 = tpu.reciprocal %580 {approx = true} : vector<3x1xf32> -> vector<3x1xf32>
    %582 = arith.mulf %546, %581 : vector<3x1xf32>
    %583 = vector.broadcast %582 : vector<3x1xf32> to vector<3x8xf32>
    %584 = arith.mulf %576, %583 : vector<3x8xf32>
    %cst_138 = arith.constant dense<0.000000e+00> : vector<8xf32>
    %585 = vector.multi_reduction <add>, %584, %cst_138 [0] : vector<3x8xf32> to vector<8xf32>
    %586 = vector.shape_cast %585 : vector<8xf32> to vector<1x8xf32>
    %cst_139 = arith.constant 1.000000e-30 : f32
    %587 = vector.broadcast %cst_139 : f32 to vector<1x8xf32>
    %588 = arith.maximumf %586, %587 : vector<1x8xf32>
    %589 = tpu.reciprocal %588 {approx = true} : vector<1x8xf32> -> vector<1x8xf32>
    %590 = vector.broadcast %589 : vector<1x8xf32> to vector<3x8xf32>
    %591 = arith.mulf %584, %590 : vector<3x8xf32>
    %cst_140 = arith.constant 0.000000e+00 : f32
    %592 = vector.broadcast %cst_140 : f32 to vector<3x1xf32>
    %593 = arith.mulf %19, %591 : vector<3x8xf32>
    %cst_141 = arith.constant dense<0.000000e+00> : vector<8xf32>
    %594 = vector.multi_reduction <add>, %593, %cst_141 [0] : vector<3x8xf32> to vector<8xf32>
    %595 = vector.shape_cast %594 : vector<8xf32> to vector<1x8xf32>
    %596 = vector.broadcast %595 : vector<1x8xf32> to vector<3x8xf32>
    %597 = arith.subf %19, %596 : vector<3x8xf32>
    %598 = vector.broadcast %589 : vector<1x8xf32> to vector<3x8xf32>
    %599 = arith.mulf %597, %598 : vector<3x8xf32>
    %600 = arith.mulf %599, %584 : vector<3x8xf32>
    %cst_142 = arith.constant dense<0.000000e+00> : vector<3xf32>
    %601 = vector.multi_reduction <add>, %600, %cst_142 [1] : vector<3x8xf32> to vector<3xf32>
    %602 = vector.shape_cast %601 : vector<3xf32> to vector<3x1xf32>
    %603 = arith.addf %592, %602 : vector<3x1xf32>
    %604 = vector.broadcast %582 : vector<3x1xf32> to vector<3x8xf32>
    %605 = arith.mulf %604, %599 : vector<3x8xf32>
    %606 = arith.mulf %581, %602 : vector<3x1xf32>
    %607 = vector.broadcast %606 : vector<3x1xf32> to vector<3x8xf32>
    %608 = arith.subf %605, %607 : vector<3x8xf32>
    %609 = arith.mulf %608, %576 : vector<3x8xf32>
    %cst_143 = arith.constant dense<0.000000e+00> : vector<8xf32>
    %610 = vector.multi_reduction <add>, %609, %cst_143 [0] : vector<3x8xf32> to vector<8xf32>
    %611 = vector.shape_cast %610 : vector<8xf32> to vector<1x8xf32>
    %612 = vector.broadcast %611 : vector<1x8xf32> to vector<3x8xf32>
    %613 = arith.subf %608, %612 : vector<3x8xf32>
    %614 = vector.broadcast %574 : vector<1x8xf32> to vector<3x8xf32>
    %615 = arith.mulf %613, %614 : vector<3x8xf32>
    %616 = arith.mulf %615, %569 : vector<3x8xf32>
    %cst_144 = arith.constant dense<0.000000e+00> : vector<3xf32>
    %617 = vector.multi_reduction <add>, %616, %cst_144 [1] : vector<3x8xf32> to vector<3xf32>
    %618 = vector.shape_cast %617 : vector<3xf32> to vector<3x1xf32>
    %619 = arith.addf %603, %618 : vector<3x1xf32>
    %620 = vector.broadcast %567 : vector<3x1xf32> to vector<3x8xf32>
    %621 = arith.mulf %620, %615 : vector<3x8xf32>
    %622 = arith.mulf %566, %618 : vector<3x1xf32>
    %623 = vector.broadcast %622 : vector<3x1xf32> to vector<3x8xf32>
    %624 = arith.subf %621, %623 : vector<3x8xf32>
    %625 = arith.mulf %624, %561 : vector<3x8xf32>
    %cst_145 = arith.constant dense<0.000000e+00> : vector<8xf32>
    %626 = vector.multi_reduction <add>, %625, %cst_145 [0] : vector<3x8xf32> to vector<8xf32>
    %627 = vector.shape_cast %626 : vector<8xf32> to vector<1x8xf32>
    %628 = vector.broadcast %627 : vector<1x8xf32> to vector<3x8xf32>
    %629 = arith.subf %624, %628 : vector<3x8xf32>
    %630 = vector.broadcast %559 : vector<1x8xf32> to vector<3x8xf32>
    %631 = arith.mulf %629, %630 : vector<3x8xf32>
    %632 = arith.mulf %631, %554 : vector<3x8xf32>
    %cst_146 = arith.constant dense<0.000000e+00> : vector<3xf32>
    %633 = vector.multi_reduction <add>, %632, %cst_146 [1] : vector<3x8xf32> to vector<3xf32>
    %634 = vector.shape_cast %633 : vector<3xf32> to vector<3x1xf32>
    %635 = arith.addf %619, %634 : vector<3x1xf32>
    %cst_147 = arith.constant dense<0.000000e+00> : vector<1xf32>
    %636 = vector.multi_reduction <add>, %635, %cst_147 [0] : vector<3x1xf32> to vector<1xf32>
    %637 = vector.shape_cast %636 : vector<1xf32> to vector<1x1xf32>
    %638 = vector.broadcast %637 : vector<1x1xf32> to vector<3x1xf32>
    %639 = arith.mulf %546, %638 : vector<3x1xf32>
    %640 = arith.subf %635, %639 : vector<3x1xf32>
    %cst_148 = arith.constant 0.333333343 : f32
    %641 = vector.broadcast %cst_148 : f32 to vector<3x1xf32>
    %642 = arith.subf %546, %641 : vector<3x1xf32>
    %cst_149 = arith.constant 1.66666663 : f32
    %643 = vector.broadcast %cst_149 : f32 to vector<3x1xf32>
    %644 = arith.mulf %643, %642 : vector<3x1xf32>
    %645 = arith.addf %640, %644 : vector<3x1xf32>
    %646 = arith.mulf %645, %645 : vector<3x1xf32>
    %647 = vector.shape_cast %646 : vector<3x1xf32> to vector<1x3x1xf32>
    %cst_150 = arith.constant dense<0.000000e+00> : vector<1xf32>
    %648 = vector.multi_reduction <add>, %647, %cst_150 [1, 2] : vector<1x3x1xf32> to vector<1xf32>
    %649 = vector.shape_cast %648 : vector<1xf32> to vector<1x1x1xf32>
    %650 = vector.extract %649[0, 0, 0] : f32 from vector<1x1x1xf32>
    %651 = vector.broadcast %650 : f32 to vector<1x1xf32>
    %652 = math.sqrt %651 : vector<1x1xf32>
    %cst_151 = arith.constant 9.99999997E-7 : f32
    %653 = vector.broadcast %cst_151 : f32 to vector<1x1xf32>
    %654 = arith.addf %652, %653 : vector<1x1xf32>
    %cst_152 = arith.constant 1.000000e+00 : f32
    %655 = vector.broadcast %cst_152 : f32 to vector<1x1xf32>
    %656 = arith.divf %655, %654 : vector<1x1xf32>
    %cst_153 = arith.constant 1.000000e+00 : f32
    %657 = vector.broadcast %cst_153 : f32 to vector<1x1xf32>
    %658 = arith.minimumf %657, %656 : vector<1x1xf32>
    %659 = vector.broadcast %658 : vector<1x1xf32> to vector<3x1xf32>
    %660 = arith.mulf %645, %659 : vector<3x1xf32>
    %cst_154 = arith.constant 9.900000e-01 : f32
    %661 = vector.broadcast %cst_154 : f32 to vector<3x1xf32>
    %662 = arith.mulf %661, %534 : vector<3x1xf32>
    %663 = arith.addf %662, %660 : vector<3x1xf32>
    %cst_155 = arith.constant 1.000000e-01 : f32
    %664 = vector.broadcast %cst_155 : f32 to vector<3x1xf32>
    %665 = arith.mulf %664, %663 : vector<3x1xf32>
    %666 = arith.subf %537, %665 : vector<3x1xf32>
    %cst_156 = arith.constant dense<0xFF800000> : vector<1xf32>
    %667 = vector.multi_reduction <maximumf>, %666, %cst_156 [0] : vector<3x1xf32> to vector<1xf32>
    %668 = vector.shape_cast %667 : vector<1xf32> to vector<1x1xf32>
    %669 = vector.broadcast %668 : vector<1x1xf32> to vector<3x1xf32>
    %670 = arith.subf %666, %669 : vector<3x1xf32>
    %671 = math.exp %670 : vector<3x1xf32>
    %cst_157 = arith.constant dense<0.000000e+00> : vector<1xf32>
    %672 = vector.multi_reduction <add>, %671, %cst_157 [0] : vector<3x1xf32> to vector<1xf32>
    %673 = vector.shape_cast %672 : vector<1xf32> to vector<1x1xf32>
    %674 = vector.broadcast %673 : vector<1x1xf32> to vector<3x1xf32>
    %675 = arith.divf %671, %674 : vector<3x1xf32>
    %cst_158 = arith.constant dense<0.000000e+00> : vector<3xf32>
    %676 = vector.multi_reduction <add>, %17, %cst_158 [1] : vector<3x8xf32> to vector<3xf32>
    %677 = vector.shape_cast %676 : vector<3xf32> to vector<3x1xf32>
    %cst_159 = arith.constant 1.000000e-30 : f32
    %678 = vector.broadcast %cst_159 : f32 to vector<3x1xf32>
    %679 = arith.maximumf %677, %678 : vector<3x1xf32>
    %680 = tpu.reciprocal %679 {approx = true} : vector<3x1xf32> -> vector<3x1xf32>
    %681 = arith.mulf %675, %680 : vector<3x1xf32>
    %682 = vector.broadcast %681 : vector<3x1xf32> to vector<3x8xf32>
    %683 = arith.mulf %17, %682 : vector<3x8xf32>
    %cst_160 = arith.constant dense<0.000000e+00> : vector<8xf32>
    %684 = vector.multi_reduction <add>, %683, %cst_160 [0] : vector<3x8xf32> to vector<8xf32>
    %685 = vector.shape_cast %684 : vector<8xf32> to vector<1x8xf32>
    %cst_161 = arith.constant 1.000000e-30 : f32
    %686 = vector.broadcast %cst_161 : f32 to vector<1x8xf32>
    %687 = arith.maximumf %685, %686 : vector<1x8xf32>
    %688 = tpu.reciprocal %687 {approx = true} : vector<1x8xf32> -> vector<1x8xf32>
    %689 = vector.broadcast %688 : vector<1x8xf32> to vector<3x8xf32>
    %690 = arith.mulf %683, %689 : vector<3x8xf32>
    %cst_162 = arith.constant dense<0.000000e+00> : vector<3xf32>
    %691 = vector.multi_reduction <add>, %690, %cst_162 [1] : vector<3x8xf32> to vector<3xf32>
    %692 = vector.shape_cast %691 : vector<3xf32> to vector<3x1xf32>
    %cst_163 = arith.constant 1.000000e-30 : f32
    %693 = vector.broadcast %cst_163 : f32 to vector<3x1xf32>
    %694 = arith.maximumf %692, %693 : vector<3x1xf32>
    %695 = tpu.reciprocal %694 {approx = true} : vector<3x1xf32> -> vector<3x1xf32>
    %696 = arith.mulf %675, %695 : vector<3x1xf32>
    %697 = vector.broadcast %696 : vector<3x1xf32> to vector<3x8xf32>
    %698 = arith.mulf %690, %697 : vector<3x8xf32>
    %cst_164 = arith.constant dense<0.000000e+00> : vector<8xf32>
    %699 = vector.multi_reduction <add>, %698, %cst_164 [0] : vector<3x8xf32> to vector<8xf32>
    %700 = vector.shape_cast %699 : vector<8xf32> to vector<1x8xf32>
    %cst_165 = arith.constant 1.000000e-30 : f32
    %701 = vector.broadcast %cst_165 : f32 to vector<1x8xf32>
    %702 = arith.maximumf %700, %701 : vector<1x8xf32>
    %703 = tpu.reciprocal %702 {approx = true} : vector<1x8xf32> -> vector<1x8xf32>
    %704 = vector.broadcast %703 : vector<1x8xf32> to vector<3x8xf32>
    %705 = arith.mulf %698, %704 : vector<3x8xf32>
    %cst_166 = arith.constant dense<0.000000e+00> : vector<3xf32>
    %706 = vector.multi_reduction <add>, %705, %cst_166 [1] : vector<3x8xf32> to vector<3xf32>
    %707 = vector.shape_cast %706 : vector<3xf32> to vector<3x1xf32>
    %cst_167 = arith.constant 1.000000e-30 : f32
    %708 = vector.broadcast %cst_167 : f32 to vector<3x1xf32>
    %709 = arith.maximumf %707, %708 : vector<3x1xf32>
    %710 = tpu.reciprocal %709 {approx = true} : vector<3x1xf32> -> vector<3x1xf32>
    %711 = arith.mulf %675, %710 : vector<3x1xf32>
    %712 = vector.broadcast %711 : vector<3x1xf32> to vector<3x8xf32>
    %713 = arith.mulf %705, %712 : vector<3x8xf32>
    %cst_168 = arith.constant dense<0.000000e+00> : vector<8xf32>
    %714 = vector.multi_reduction <add>, %713, %cst_168 [0] : vector<3x8xf32> to vector<8xf32>
    %715 = vector.shape_cast %714 : vector<8xf32> to vector<1x8xf32>
    %cst_169 = arith.constant 1.000000e-30 : f32
    %716 = vector.broadcast %cst_169 : f32 to vector<1x8xf32>
    %717 = arith.maximumf %715, %716 : vector<1x8xf32>
    %718 = tpu.reciprocal %717 {approx = true} : vector<1x8xf32> -> vector<1x8xf32>
    %719 = vector.broadcast %718 : vector<1x8xf32> to vector<3x8xf32>
    %720 = arith.mulf %713, %719 : vector<3x8xf32>
    %cst_170 = arith.constant 0.000000e+00 : f32
    %721 = vector.broadcast %cst_170 : f32 to vector<3x1xf32>
    %722 = arith.mulf %19, %720 : vector<3x8xf32>
    %cst_171 = arith.constant dense<0.000000e+00> : vector<8xf32>
    %723 = vector.multi_reduction <add>, %722, %cst_171 [0] : vector<3x8xf32> to vector<8xf32>
    %724 = vector.shape_cast %723 : vector<8xf32> to vector<1x8xf32>
    %725 = vector.broadcast %724 : vector<1x8xf32> to vector<3x8xf32>
    %726 = arith.subf %19, %725 : vector<3x8xf32>
    %727 = vector.broadcast %718 : vector<1x8xf32> to vector<3x8xf32>
    %728 = arith.mulf %726, %727 : vector<3x8xf32>
    %729 = arith.mulf %728, %713 : vector<3x8xf32>
    %cst_172 = arith.constant dense<0.000000e+00> : vector<3xf32>
    %730 = vector.multi_reduction <add>, %729, %cst_172 [1] : vector<3x8xf32> to vector<3xf32>
    %731 = vector.shape_cast %730 : vector<3xf32> to vector<3x1xf32>
    %732 = arith.addf %721, %731 : vector<3x1xf32>
    %733 = vector.broadcast %711 : vector<3x1xf32> to vector<3x8xf32>
    %734 = arith.mulf %733, %728 : vector<3x8xf32>
    %735 = arith.mulf %710, %731 : vector<3x1xf32>
    %736 = vector.broadcast %735 : vector<3x1xf32> to vector<3x8xf32>
    %737 = arith.subf %734, %736 : vector<3x8xf32>
    %738 = arith.mulf %737, %705 : vector<3x8xf32>
    %cst_173 = arith.constant dense<0.000000e+00> : vector<8xf32>
    %739 = vector.multi_reduction <add>, %738, %cst_173 [0] : vector<3x8xf32> to vector<8xf32>
    %740 = vector.shape_cast %739 : vector<8xf32> to vector<1x8xf32>
    %741 = vector.broadcast %740 : vector<1x8xf32> to vector<3x8xf32>
    %742 = arith.subf %737, %741 : vector<3x8xf32>
    %743 = vector.broadcast %703 : vector<1x8xf32> to vector<3x8xf32>
    %744 = arith.mulf %742, %743 : vector<3x8xf32>
    %745 = arith.mulf %744, %698 : vector<3x8xf32>
    %cst_174 = arith.constant dense<0.000000e+00> : vector<3xf32>
    %746 = vector.multi_reduction <add>, %745, %cst_174 [1] : vector<3x8xf32> to vector<3xf32>
    %747 = vector.shape_cast %746 : vector<3xf32> to vector<3x1xf32>
    %748 = arith.addf %732, %747 : vector<3x1xf32>
    %749 = vector.broadcast %696 : vector<3x1xf32> to vector<3x8xf32>
    %750 = arith.mulf %749, %744 : vector<3x8xf32>
    %751 = arith.mulf %695, %747 : vector<3x1xf32>
    %752 = vector.broadcast %751 : vector<3x1xf32> to vector<3x8xf32>
    %753 = arith.subf %750, %752 : vector<3x8xf32>
    %754 = arith.mulf %753, %690 : vector<3x8xf32>
    %cst_175 = arith.constant dense<0.000000e+00> : vector<8xf32>
    %755 = vector.multi_reduction <add>, %754, %cst_175 [0] : vector<3x8xf32> to vector<8xf32>
    %756 = vector.shape_cast %755 : vector<8xf32> to vector<1x8xf32>
    %757 = vector.broadcast %756 : vector<1x8xf32> to vector<3x8xf32>
    %758 = arith.subf %753, %757 : vector<3x8xf32>
    %759 = vector.broadcast %688 : vector<1x8xf32> to vector<3x8xf32>
    %760 = arith.mulf %758, %759 : vector<3x8xf32>
    %761 = arith.mulf %760, %683 : vector<3x8xf32>
    %cst_176 = arith.constant dense<0.000000e+00> : vector<3xf32>
    %762 = vector.multi_reduction <add>, %761, %cst_176 [1] : vector<3x8xf32> to vector<3xf32>
    %763 = vector.shape_cast %762 : vector<3xf32> to vector<3x1xf32>
    %764 = arith.addf %748, %763 : vector<3x1xf32>
    %cst_177 = arith.constant dense<0.000000e+00> : vector<1xf32>
    %765 = vector.multi_reduction <add>, %764, %cst_177 [0] : vector<3x1xf32> to vector<1xf32>
    %766 = vector.shape_cast %765 : vector<1xf32> to vector<1x1xf32>
    %767 = vector.broadcast %766 : vector<1x1xf32> to vector<3x1xf32>
    %768 = arith.mulf %675, %767 : vector<3x1xf32>
    %769 = arith.subf %764, %768 : vector<3x1xf32>
    %cst_178 = arith.constant 0.333333343 : f32
    %770 = vector.broadcast %cst_178 : f32 to vector<3x1xf32>
    %771 = arith.subf %675, %770 : vector<3x1xf32>
    %cst_179 = arith.constant 1.66666663 : f32
    %772 = vector.broadcast %cst_179 : f32 to vector<3x1xf32>
    %773 = arith.mulf %772, %771 : vector<3x1xf32>
    %774 = arith.addf %769, %773 : vector<3x1xf32>
    %775 = arith.mulf %774, %774 : vector<3x1xf32>
    %776 = vector.shape_cast %775 : vector<3x1xf32> to vector<1x3x1xf32>
    %cst_180 = arith.constant dense<0.000000e+00> : vector<1xf32>
    %777 = vector.multi_reduction <add>, %776, %cst_180 [1, 2] : vector<1x3x1xf32> to vector<1xf32>
    %778 = vector.shape_cast %777 : vector<1xf32> to vector<1x1x1xf32>
    %779 = vector.extract %778[0, 0, 0] : f32 from vector<1x1x1xf32>
    %780 = vector.broadcast %779 : f32 to vector<1x1xf32>
    %781 = math.sqrt %780 : vector<1x1xf32>
    %cst_181 = arith.constant 9.99999997E-7 : f32
    %782 = vector.broadcast %cst_181 : f32 to vector<1x1xf32>
    %783 = arith.addf %781, %782 : vector<1x1xf32>
    %cst_182 = arith.constant 1.000000e+00 : f32
    %784 = vector.broadcast %cst_182 : f32 to vector<1x1xf32>
    %785 = arith.divf %784, %783 : vector<1x1xf32>
    %cst_183 = arith.constant 1.000000e+00 : f32
    %786 = vector.broadcast %cst_183 : f32 to vector<1x1xf32>
    %787 = arith.minimumf %786, %785 : vector<1x1xf32>
    %788 = vector.broadcast %787 : vector<1x1xf32> to vector<3x1xf32>
    %789 = arith.mulf %774, %788 : vector<3x1xf32>
    %cst_184 = arith.constant 9.900000e-01 : f32
    %790 = vector.broadcast %cst_184 : f32 to vector<3x1xf32>
    %791 = arith.mulf %790, %663 : vector<3x1xf32>
    %792 = arith.addf %791, %789 : vector<3x1xf32>
    %cst_185 = arith.constant 1.000000e-01 : f32
    %793 = vector.broadcast %cst_185 : f32 to vector<3x1xf32>
    %794 = arith.mulf %793, %792 : vector<3x1xf32>
    %795 = arith.subf %666, %794 : vector<3x1xf32>
    %cst_186 = arith.constant dense<0xFF800000> : vector<1xf32>
    %796 = vector.multi_reduction <maximumf>, %795, %cst_186 [0] : vector<3x1xf32> to vector<1xf32>
    %797 = vector.shape_cast %796 : vector<1xf32> to vector<1x1xf32>
    %798 = vector.broadcast %797 : vector<1x1xf32> to vector<3x1xf32>
    %799 = arith.subf %795, %798 : vector<3x1xf32>
    %800 = math.exp %799 : vector<3x1xf32>
    %cst_187 = arith.constant dense<0.000000e+00> : vector<1xf32>
    %801 = vector.multi_reduction <add>, %800, %cst_187 [0] : vector<3x1xf32> to vector<1xf32>
    %802 = vector.shape_cast %801 : vector<1xf32> to vector<1x1xf32>
    %803 = vector.broadcast %802 : vector<1x1xf32> to vector<3x1xf32>
    %804 = arith.divf %800, %803 : vector<3x1xf32>
    %cst_188 = arith.constant dense<0.000000e+00> : vector<3xf32>
    %805 = vector.multi_reduction <add>, %17, %cst_188 [1] : vector<3x8xf32> to vector<3xf32>
    %806 = vector.shape_cast %805 : vector<3xf32> to vector<3x1xf32>
    %cst_189 = arith.constant 1.000000e-30 : f32
    %807 = vector.broadcast %cst_189 : f32 to vector<3x1xf32>
    %808 = arith.maximumf %806, %807 : vector<3x1xf32>
    %809 = tpu.reciprocal %808 {approx = true} : vector<3x1xf32> -> vector<3x1xf32>
    %810 = arith.mulf %804, %809 : vector<3x1xf32>
    %811 = vector.broadcast %810 : vector<3x1xf32> to vector<3x8xf32>
    %812 = arith.mulf %17, %811 : vector<3x8xf32>
    %cst_190 = arith.constant dense<0.000000e+00> : vector<8xf32>
    %813 = vector.multi_reduction <add>, %812, %cst_190 [0] : vector<3x8xf32> to vector<8xf32>
    %814 = vector.shape_cast %813 : vector<8xf32> to vector<1x8xf32>
    %cst_191 = arith.constant 1.000000e-30 : f32
    %815 = vector.broadcast %cst_191 : f32 to vector<1x8xf32>
    %816 = arith.maximumf %814, %815 : vector<1x8xf32>
    %817 = tpu.reciprocal %816 {approx = true} : vector<1x8xf32> -> vector<1x8xf32>
    %818 = vector.broadcast %817 : vector<1x8xf32> to vector<3x8xf32>
    %819 = arith.mulf %812, %818 : vector<3x8xf32>
    %cst_192 = arith.constant dense<0.000000e+00> : vector<3xf32>
    %820 = vector.multi_reduction <add>, %819, %cst_192 [1] : vector<3x8xf32> to vector<3xf32>
    %821 = vector.shape_cast %820 : vector<3xf32> to vector<3x1xf32>
    %cst_193 = arith.constant 1.000000e-30 : f32
    %822 = vector.broadcast %cst_193 : f32 to vector<3x1xf32>
    %823 = arith.maximumf %821, %822 : vector<3x1xf32>
    %824 = tpu.reciprocal %823 {approx = true} : vector<3x1xf32> -> vector<3x1xf32>
    %825 = arith.mulf %804, %824 : vector<3x1xf32>
    %826 = vector.broadcast %825 : vector<3x1xf32> to vector<3x8xf32>
    %827 = arith.mulf %819, %826 : vector<3x8xf32>
    %cst_194 = arith.constant dense<0.000000e+00> : vector<8xf32>
    %828 = vector.multi_reduction <add>, %827, %cst_194 [0] : vector<3x8xf32> to vector<8xf32>
    %829 = vector.shape_cast %828 : vector<8xf32> to vector<1x8xf32>
    %cst_195 = arith.constant 1.000000e-30 : f32
    %830 = vector.broadcast %cst_195 : f32 to vector<1x8xf32>
    %831 = arith.maximumf %829, %830 : vector<1x8xf32>
    %832 = tpu.reciprocal %831 {approx = true} : vector<1x8xf32> -> vector<1x8xf32>
    %833 = vector.broadcast %832 : vector<1x8xf32> to vector<3x8xf32>
    %834 = arith.mulf %827, %833 : vector<3x8xf32>
    %cst_196 = arith.constant dense<0.000000e+00> : vector<3xf32>
    %835 = vector.multi_reduction <add>, %834, %cst_196 [1] : vector<3x8xf32> to vector<3xf32>
    %836 = vector.shape_cast %835 : vector<3xf32> to vector<3x1xf32>
    %cst_197 = arith.constant 1.000000e-30 : f32
    %837 = vector.broadcast %cst_197 : f32 to vector<3x1xf32>
    %838 = arith.maximumf %836, %837 : vector<3x1xf32>
    %839 = tpu.reciprocal %838 {approx = true} : vector<3x1xf32> -> vector<3x1xf32>
    %840 = arith.mulf %804, %839 : vector<3x1xf32>
    %841 = vector.broadcast %840 : vector<3x1xf32> to vector<3x8xf32>
    %842 = arith.mulf %834, %841 : vector<3x8xf32>
    %cst_198 = arith.constant dense<0.000000e+00> : vector<8xf32>
    %843 = vector.multi_reduction <add>, %842, %cst_198 [0] : vector<3x8xf32> to vector<8xf32>
    %844 = vector.shape_cast %843 : vector<8xf32> to vector<1x8xf32>
    %cst_199 = arith.constant 1.000000e-30 : f32
    %845 = vector.broadcast %cst_199 : f32 to vector<1x8xf32>
    %846 = arith.maximumf %844, %845 : vector<1x8xf32>
    %847 = tpu.reciprocal %846 {approx = true} : vector<1x8xf32> -> vector<1x8xf32>
    %848 = vector.broadcast %847 : vector<1x8xf32> to vector<3x8xf32>
    %849 = arith.mulf %842, %848 : vector<3x8xf32>
    %cst_200 = arith.constant 0.000000e+00 : f32
    %850 = vector.broadcast %cst_200 : f32 to vector<3x1xf32>
    %851 = arith.mulf %19, %849 : vector<3x8xf32>
    %cst_201 = arith.constant dense<0.000000e+00> : vector<8xf32>
    %852 = vector.multi_reduction <add>, %851, %cst_201 [0] : vector<3x8xf32> to vector<8xf32>
    %853 = vector.shape_cast %852 : vector<8xf32> to vector<1x8xf32>
    %854 = vector.broadcast %853 : vector<1x8xf32> to vector<3x8xf32>
    %855 = arith.subf %19, %854 : vector<3x8xf32>
    %856 = vector.broadcast %847 : vector<1x8xf32> to vector<3x8xf32>
    %857 = arith.mulf %855, %856 : vector<3x8xf32>
    %858 = arith.mulf %857, %842 : vector<3x8xf32>
    %cst_202 = arith.constant dense<0.000000e+00> : vector<3xf32>
    %859 = vector.multi_reduction <add>, %858, %cst_202 [1] : vector<3x8xf32> to vector<3xf32>
    %860 = vector.shape_cast %859 : vector<3xf32> to vector<3x1xf32>
    %861 = arith.addf %850, %860 : vector<3x1xf32>
    %862 = vector.broadcast %840 : vector<3x1xf32> to vector<3x8xf32>
    %863 = arith.mulf %862, %857 : vector<3x8xf32>
    %864 = arith.mulf %839, %860 : vector<3x1xf32>
    %865 = vector.broadcast %864 : vector<3x1xf32> to vector<3x8xf32>
    %866 = arith.subf %863, %865 : vector<3x8xf32>
    %867 = arith.mulf %866, %834 : vector<3x8xf32>
    %cst_203 = arith.constant dense<0.000000e+00> : vector<8xf32>
    %868 = vector.multi_reduction <add>, %867, %cst_203 [0] : vector<3x8xf32> to vector<8xf32>
    %869 = vector.shape_cast %868 : vector<8xf32> to vector<1x8xf32>
    %870 = vector.broadcast %869 : vector<1x8xf32> to vector<3x8xf32>
    %871 = arith.subf %866, %870 : vector<3x8xf32>
    %872 = vector.broadcast %832 : vector<1x8xf32> to vector<3x8xf32>
    %873 = arith.mulf %871, %872 : vector<3x8xf32>
    %874 = arith.mulf %873, %827 : vector<3x8xf32>
    %cst_204 = arith.constant dense<0.000000e+00> : vector<3xf32>
    %875 = vector.multi_reduction <add>, %874, %cst_204 [1] : vector<3x8xf32> to vector<3xf32>
    %876 = vector.shape_cast %875 : vector<3xf32> to vector<3x1xf32>
    %877 = arith.addf %861, %876 : vector<3x1xf32>
    %878 = vector.broadcast %825 : vector<3x1xf32> to vector<3x8xf32>
    %879 = arith.mulf %878, %873 : vector<3x8xf32>
    %880 = arith.mulf %824, %876 : vector<3x1xf32>
    %881 = vector.broadcast %880 : vector<3x1xf32> to vector<3x8xf32>
    %882 = arith.subf %879, %881 : vector<3x8xf32>
    %883 = arith.mulf %882, %819 : vector<3x8xf32>
    %cst_205 = arith.constant dense<0.000000e+00> : vector<8xf32>
    %884 = vector.multi_reduction <add>, %883, %cst_205 [0] : vector<3x8xf32> to vector<8xf32>
    %885 = vector.shape_cast %884 : vector<8xf32> to vector<1x8xf32>
    %886 = vector.broadcast %885 : vector<1x8xf32> to vector<3x8xf32>
    %887 = arith.subf %882, %886 : vector<3x8xf32>
    %888 = vector.broadcast %817 : vector<1x8xf32> to vector<3x8xf32>
    %889 = arith.mulf %887, %888 : vector<3x8xf32>
    %890 = arith.mulf %889, %812 : vector<3x8xf32>
    %cst_206 = arith.constant dense<0.000000e+00> : vector<3xf32>
    %891 = vector.multi_reduction <add>, %890, %cst_206 [1] : vector<3x8xf32> to vector<3xf32>
    %892 = vector.shape_cast %891 : vector<3xf32> to vector<3x1xf32>
    %893 = arith.addf %877, %892 : vector<3x1xf32>
    %cst_207 = arith.constant dense<0.000000e+00> : vector<1xf32>
    %894 = vector.multi_reduction <add>, %893, %cst_207 [0] : vector<3x1xf32> to vector<1xf32>
    %895 = vector.shape_cast %894 : vector<1xf32> to vector<1x1xf32>
    %896 = vector.broadcast %895 : vector<1x1xf32> to vector<3x1xf32>
    %897 = arith.mulf %804, %896 : vector<3x1xf32>
    %898 = arith.subf %893, %897 : vector<3x1xf32>
    %cst_208 = arith.constant 0.333333343 : f32
    %899 = vector.broadcast %cst_208 : f32 to vector<3x1xf32>
    %900 = arith.subf %804, %899 : vector<3x1xf32>
    %cst_209 = arith.constant 1.66666663 : f32
    %901 = vector.broadcast %cst_209 : f32 to vector<3x1xf32>
    %902 = arith.mulf %901, %900 : vector<3x1xf32>
    %903 = arith.addf %898, %902 : vector<3x1xf32>
    %904 = arith.mulf %903, %903 : vector<3x1xf32>
    %905 = vector.shape_cast %904 : vector<3x1xf32> to vector<1x3x1xf32>
    %cst_210 = arith.constant dense<0.000000e+00> : vector<1xf32>
    %906 = vector.multi_reduction <add>, %905, %cst_210 [1, 2] : vector<1x3x1xf32> to vector<1xf32>
    %907 = vector.shape_cast %906 : vector<1xf32> to vector<1x1x1xf32>
    %908 = vector.extract %907[0, 0, 0] : f32 from vector<1x1x1xf32>
    %909 = vector.broadcast %908 : f32 to vector<1x1xf32>
    %910 = math.sqrt %909 : vector<1x1xf32>
    %cst_211 = arith.constant 9.99999997E-7 : f32
    %911 = vector.broadcast %cst_211 : f32 to vector<1x1xf32>
    %912 = arith.addf %910, %911 : vector<1x1xf32>
    %cst_212 = arith.constant 1.000000e+00 : f32
    %913 = vector.broadcast %cst_212 : f32 to vector<1x1xf32>
    %914 = arith.divf %913, %912 : vector<1x1xf32>
    %cst_213 = arith.constant 1.000000e+00 : f32
    %915 = vector.broadcast %cst_213 : f32 to vector<1x1xf32>
    %916 = arith.minimumf %915, %914 : vector<1x1xf32>
    %917 = vector.broadcast %916 : vector<1x1xf32> to vector<3x1xf32>
    %918 = arith.mulf %903, %917 : vector<3x1xf32>
    %cst_214 = arith.constant 9.900000e-01 : f32
    %919 = vector.broadcast %cst_214 : f32 to vector<3x1xf32>
    %920 = arith.mulf %919, %792 : vector<3x1xf32>
    %921 = arith.addf %920, %918 : vector<3x1xf32>
    %cst_215 = arith.constant 1.000000e-01 : f32
    %922 = vector.broadcast %cst_215 : f32 to vector<3x1xf32>
    %923 = arith.mulf %922, %921 : vector<3x1xf32>
    %924 = arith.subf %795, %923 : vector<3x1xf32>
    %cst_216 = arith.constant dense<0xFF800000> : vector<1xf32>
    %925 = vector.multi_reduction <maximumf>, %924, %cst_216 [0] : vector<3x1xf32> to vector<1xf32>
    %926 = vector.shape_cast %925 : vector<1xf32> to vector<1x1xf32>
    %927 = vector.broadcast %926 : vector<1x1xf32> to vector<3x1xf32>
    %928 = arith.subf %924, %927 : vector<3x1xf32>
    %929 = math.exp %928 : vector<3x1xf32>
    %cst_217 = arith.constant dense<0.000000e+00> : vector<1xf32>
    %930 = vector.multi_reduction <add>, %929, %cst_217 [0] : vector<3x1xf32> to vector<1xf32>
    %931 = vector.shape_cast %930 : vector<1xf32> to vector<1x1xf32>
    %932 = vector.broadcast %931 : vector<1x1xf32> to vector<3x1xf32>
    %933 = arith.divf %929, %932 : vector<3x1xf32>
    %cst_218 = arith.constant dense<0.000000e+00> : vector<3xf32>
    %934 = vector.multi_reduction <add>, %17, %cst_218 [1] : vector<3x8xf32> to vector<3xf32>
    %935 = vector.shape_cast %934 : vector<3xf32> to vector<3x1xf32>
    %cst_219 = arith.constant 1.000000e-30 : f32
    %936 = vector.broadcast %cst_219 : f32 to vector<3x1xf32>
    %937 = arith.maximumf %935, %936 : vector<3x1xf32>
    %938 = tpu.reciprocal %937 {approx = true} : vector<3x1xf32> -> vector<3x1xf32>
    %939 = arith.mulf %933, %938 : vector<3x1xf32>
    %940 = vector.broadcast %939 : vector<3x1xf32> to vector<3x8xf32>
    %941 = arith.mulf %17, %940 : vector<3x8xf32>
    %cst_220 = arith.constant dense<0.000000e+00> : vector<8xf32>
    %942 = vector.multi_reduction <add>, %941, %cst_220 [0] : vector<3x8xf32> to vector<8xf32>
    %943 = vector.shape_cast %942 : vector<8xf32> to vector<1x8xf32>
    %cst_221 = arith.constant 1.000000e-30 : f32
    %944 = vector.broadcast %cst_221 : f32 to vector<1x8xf32>
    %945 = arith.maximumf %943, %944 : vector<1x8xf32>
    %946 = tpu.reciprocal %945 {approx = true} : vector<1x8xf32> -> vector<1x8xf32>
    %947 = vector.broadcast %946 : vector<1x8xf32> to vector<3x8xf32>
    %948 = arith.mulf %941, %947 : vector<3x8xf32>
    %cst_222 = arith.constant dense<0.000000e+00> : vector<3xf32>
    %949 = vector.multi_reduction <add>, %948, %cst_222 [1] : vector<3x8xf32> to vector<3xf32>
    %950 = vector.shape_cast %949 : vector<3xf32> to vector<3x1xf32>
    %cst_223 = arith.constant 1.000000e-30 : f32
    %951 = vector.broadcast %cst_223 : f32 to vector<3x1xf32>
    %952 = arith.maximumf %950, %951 : vector<3x1xf32>
    %953 = tpu.reciprocal %952 {approx = true} : vector<3x1xf32> -> vector<3x1xf32>
    %954 = arith.mulf %933, %953 : vector<3x1xf32>
    %955 = vector.broadcast %954 : vector<3x1xf32> to vector<3x8xf32>
    %956 = arith.mulf %948, %955 : vector<3x8xf32>
    %cst_224 = arith.constant dense<0.000000e+00> : vector<8xf32>
    %957 = vector.multi_reduction <add>, %956, %cst_224 [0] : vector<3x8xf32> to vector<8xf32>
    %958 = vector.shape_cast %957 : vector<8xf32> to vector<1x8xf32>
    %cst_225 = arith.constant 1.000000e-30 : f32
    %959 = vector.broadcast %cst_225 : f32 to vector<1x8xf32>
    %960 = arith.maximumf %958, %959 : vector<1x8xf32>
    %961 = tpu.reciprocal %960 {approx = true} : vector<1x8xf32> -> vector<1x8xf32>
    %962 = vector.broadcast %961 : vector<1x8xf32> to vector<3x8xf32>
    %963 = arith.mulf %956, %962 : vector<3x8xf32>
    %cst_226 = arith.constant dense<0.000000e+00> : vector<3xf32>
    %964 = vector.multi_reduction <add>, %963, %cst_226 [1] : vector<3x8xf32> to vector<3xf32>
    %965 = vector.shape_cast %964 : vector<3xf32> to vector<3x1xf32>
    %cst_227 = arith.constant 1.000000e-30 : f32
    %966 = vector.broadcast %cst_227 : f32 to vector<3x1xf32>
    %967 = arith.maximumf %965, %966 : vector<3x1xf32>
    %968 = tpu.reciprocal %967 {approx = true} : vector<3x1xf32> -> vector<3x1xf32>
    %969 = arith.mulf %933, %968 : vector<3x1xf32>
    %970 = vector.broadcast %969 : vector<3x1xf32> to vector<3x8xf32>
    %971 = arith.mulf %963, %970 : vector<3x8xf32>
    %cst_228 = arith.constant dense<0.000000e+00> : vector<8xf32>
    %972 = vector.multi_reduction <add>, %971, %cst_228 [0] : vector<3x8xf32> to vector<8xf32>
    %973 = vector.shape_cast %972 : vector<8xf32> to vector<1x8xf32>
    %cst_229 = arith.constant 1.000000e-30 : f32
    %974 = vector.broadcast %cst_229 : f32 to vector<1x8xf32>
    %975 = arith.maximumf %973, %974 : vector<1x8xf32>
    %976 = tpu.reciprocal %975 {approx = true} : vector<1x8xf32> -> vector<1x8xf32>
    %977 = vector.broadcast %976 : vector<1x8xf32> to vector<3x8xf32>
    %978 = arith.mulf %971, %977 : vector<3x8xf32>
    %cst_230 = arith.constant 0.000000e+00 : f32
    %979 = vector.broadcast %cst_230 : f32 to vector<3x1xf32>
    %980 = arith.mulf %19, %978 : vector<3x8xf32>
    %cst_231 = arith.constant dense<0.000000e+00> : vector<8xf32>
    %981 = vector.multi_reduction <add>, %980, %cst_231 [0] : vector<3x8xf32> to vector<8xf32>
    %982 = vector.shape_cast %981 : vector<8xf32> to vector<1x8xf32>
    %983 = vector.broadcast %982 : vector<1x8xf32> to vector<3x8xf32>
    %984 = arith.subf %19, %983 : vector<3x8xf32>
    %985 = vector.broadcast %976 : vector<1x8xf32> to vector<3x8xf32>
    %986 = arith.mulf %984, %985 : vector<3x8xf32>
    %987 = arith.mulf %986, %971 : vector<3x8xf32>
    %cst_232 = arith.constant dense<0.000000e+00> : vector<3xf32>
    %988 = vector.multi_reduction <add>, %987, %cst_232 [1] : vector<3x8xf32> to vector<3xf32>
    %989 = vector.shape_cast %988 : vector<3xf32> to vector<3x1xf32>
    %990 = arith.addf %979, %989 : vector<3x1xf32>
    %991 = vector.broadcast %969 : vector<3x1xf32> to vector<3x8xf32>
    %992 = arith.mulf %991, %986 : vector<3x8xf32>
    %993 = arith.mulf %968, %989 : vector<3x1xf32>
    %994 = vector.broadcast %993 : vector<3x1xf32> to vector<3x8xf32>
    %995 = arith.subf %992, %994 : vector<3x8xf32>
    %996 = arith.mulf %995, %963 : vector<3x8xf32>
    %cst_233 = arith.constant dense<0.000000e+00> : vector<8xf32>
    %997 = vector.multi_reduction <add>, %996, %cst_233 [0] : vector<3x8xf32> to vector<8xf32>
    %998 = vector.shape_cast %997 : vector<8xf32> to vector<1x8xf32>
    %999 = vector.broadcast %998 : vector<1x8xf32> to vector<3x8xf32>
    %1000 = arith.subf %995, %999 : vector<3x8xf32>
    %1001 = vector.broadcast %961 : vector<1x8xf32> to vector<3x8xf32>
    %1002 = arith.mulf %1000, %1001 : vector<3x8xf32>
    %1003 = arith.mulf %1002, %956 : vector<3x8xf32>
    %cst_234 = arith.constant dense<0.000000e+00> : vector<3xf32>
    %1004 = vector.multi_reduction <add>, %1003, %cst_234 [1] : vector<3x8xf32> to vector<3xf32>
    %1005 = vector.shape_cast %1004 : vector<3xf32> to vector<3x1xf32>
    %1006 = arith.addf %990, %1005 : vector<3x1xf32>
    %1007 = vector.broadcast %954 : vector<3x1xf32> to vector<3x8xf32>
    %1008 = arith.mulf %1007, %1002 : vector<3x8xf32>
    %1009 = arith.mulf %953, %1005 : vector<3x1xf32>
    %1010 = vector.broadcast %1009 : vector<3x1xf32> to vector<3x8xf32>
    %1011 = arith.subf %1008, %1010 : vector<3x8xf32>
    %1012 = arith.mulf %1011, %948 : vector<3x8xf32>
    %cst_235 = arith.constant dense<0.000000e+00> : vector<8xf32>
    %1013 = vector.multi_reduction <add>, %1012, %cst_235 [0] : vector<3x8xf32> to vector<8xf32>
    %1014 = vector.shape_cast %1013 : vector<8xf32> to vector<1x8xf32>
    %1015 = vector.broadcast %1014 : vector<1x8xf32> to vector<3x8xf32>
    %1016 = arith.subf %1011, %1015 : vector<3x8xf32>
    %1017 = vector.broadcast %946 : vector<1x8xf32> to vector<3x8xf32>
    %1018 = arith.mulf %1016, %1017 : vector<3x8xf32>
    %1019 = arith.mulf %1018, %941 : vector<3x8xf32>
    %cst_236 = arith.constant dense<0.000000e+00> : vector<3xf32>
    %1020 = vector.multi_reduction <add>, %1019, %cst_236 [1] : vector<3x8xf32> to vector<3xf32>
    %1021 = vector.shape_cast %1020 : vector<3xf32> to vector<3x1xf32>
    %1022 = arith.addf %1006, %1021 : vector<3x1xf32>
    %cst_237 = arith.constant dense<0.000000e+00> : vector<1xf32>
    %1023 = vector.multi_reduction <add>, %1022, %cst_237 [0] : vector<3x1xf32> to vector<1xf32>
    %1024 = vector.shape_cast %1023 : vector<1xf32> to vector<1x1xf32>
    %1025 = vector.broadcast %1024 : vector<1x1xf32> to vector<3x1xf32>
    %1026 = arith.mulf %933, %1025 : vector<3x1xf32>
    %1027 = arith.subf %1022, %1026 : vector<3x1xf32>
    %cst_238 = arith.constant 0.333333343 : f32
    %1028 = vector.broadcast %cst_238 : f32 to vector<3x1xf32>
    %1029 = arith.subf %933, %1028 : vector<3x1xf32>
    %cst_239 = arith.constant 1.66666663 : f32
    %1030 = vector.broadcast %cst_239 : f32 to vector<3x1xf32>
    %1031 = arith.mulf %1030, %1029 : vector<3x1xf32>
    %1032 = arith.addf %1027, %1031 : vector<3x1xf32>
    %1033 = arith.mulf %1032, %1032 : vector<3x1xf32>
    %1034 = vector.shape_cast %1033 : vector<3x1xf32> to vector<1x3x1xf32>
    %cst_240 = arith.constant dense<0.000000e+00> : vector<1xf32>
    %1035 = vector.multi_reduction <add>, %1034, %cst_240 [1, 2] : vector<1x3x1xf32> to vector<1xf32>
    %1036 = vector.shape_cast %1035 : vector<1xf32> to vector<1x1x1xf32>
    %1037 = vector.extract %1036[0, 0, 0] : f32 from vector<1x1x1xf32>
    %1038 = vector.broadcast %1037 : f32 to vector<1x1xf32>
    %1039 = math.sqrt %1038 : vector<1x1xf32>
    %cst_241 = arith.constant 9.99999997E-7 : f32
    %1040 = vector.broadcast %cst_241 : f32 to vector<1x1xf32>
    %1041 = arith.addf %1039, %1040 : vector<1x1xf32>
    %cst_242 = arith.constant 1.000000e+00 : f32
    %1042 = vector.broadcast %cst_242 : f32 to vector<1x1xf32>
    %1043 = arith.divf %1042, %1041 : vector<1x1xf32>
    %cst_243 = arith.constant 1.000000e+00 : f32
    %1044 = vector.broadcast %cst_243 : f32 to vector<1x1xf32>
    %1045 = arith.minimumf %1044, %1043 : vector<1x1xf32>
    %1046 = vector.broadcast %1045 : vector<1x1xf32> to vector<3x1xf32>
    %1047 = arith.mulf %1032, %1046 : vector<3x1xf32>
    %cst_244 = arith.constant 9.900000e-01 : f32
    %1048 = vector.broadcast %cst_244 : f32 to vector<3x1xf32>
    %1049 = arith.mulf %1048, %921 : vector<3x1xf32>
    %1050 = arith.addf %1049, %1047 : vector<3x1xf32>
    %cst_245 = arith.constant 1.000000e-01 : f32
    %1051 = vector.broadcast %cst_245 : f32 to vector<3x1xf32>
    %1052 = arith.mulf %1051, %1050 : vector<3x1xf32>
    %1053 = arith.subf %924, %1052 : vector<3x1xf32>
    %cst_246 = arith.constant dense<0xFF800000> : vector<1xf32>
    %1054 = vector.multi_reduction <maximumf>, %1053, %cst_246 [0] : vector<3x1xf32> to vector<1xf32>
    %1055 = vector.shape_cast %1054 : vector<1xf32> to vector<1x1xf32>
    %1056 = vector.broadcast %1055 : vector<1x1xf32> to vector<3x1xf32>
    %1057 = arith.subf %1053, %1056 : vector<3x1xf32>
    %1058 = math.exp %1057 : vector<3x1xf32>
    %cst_247 = arith.constant dense<0.000000e+00> : vector<1xf32>
    %1059 = vector.multi_reduction <add>, %1058, %cst_247 [0] : vector<3x1xf32> to vector<1xf32>
    %1060 = vector.shape_cast %1059 : vector<1xf32> to vector<1x1xf32>
    %1061 = vector.broadcast %1060 : vector<1x1xf32> to vector<3x1xf32>
    %1062 = arith.divf %1058, %1061 : vector<3x1xf32>
    %cst_248 = arith.constant dense<0.000000e+00> : vector<3xf32>
    %1063 = vector.multi_reduction <add>, %17, %cst_248 [1] : vector<3x8xf32> to vector<3xf32>
    %1064 = vector.shape_cast %1063 : vector<3xf32> to vector<3x1xf32>
    %cst_249 = arith.constant 1.000000e-30 : f32
    %1065 = vector.broadcast %cst_249 : f32 to vector<3x1xf32>
    %1066 = arith.maximumf %1064, %1065 : vector<3x1xf32>
    %1067 = tpu.reciprocal %1066 {approx = true} : vector<3x1xf32> -> vector<3x1xf32>
    %1068 = arith.mulf %1062, %1067 : vector<3x1xf32>
    %1069 = vector.broadcast %1068 : vector<3x1xf32> to vector<3x8xf32>
    %1070 = arith.mulf %17, %1069 : vector<3x8xf32>
    %cst_250 = arith.constant dense<0.000000e+00> : vector<8xf32>
    %1071 = vector.multi_reduction <add>, %1070, %cst_250 [0] : vector<3x8xf32> to vector<8xf32>
    %1072 = vector.shape_cast %1071 : vector<8xf32> to vector<1x8xf32>
    %cst_251 = arith.constant 1.000000e-30 : f32
    %1073 = vector.broadcast %cst_251 : f32 to vector<1x8xf32>
    %1074 = arith.maximumf %1072, %1073 : vector<1x8xf32>
    %1075 = tpu.reciprocal %1074 {approx = true} : vector<1x8xf32> -> vector<1x8xf32>
    %1076 = vector.broadcast %1075 : vector<1x8xf32> to vector<3x8xf32>
    %1077 = arith.mulf %1070, %1076 : vector<3x8xf32>
    %cst_252 = arith.constant dense<0.000000e+00> : vector<3xf32>
    %1078 = vector.multi_reduction <add>, %1077, %cst_252 [1] : vector<3x8xf32> to vector<3xf32>
    %1079 = vector.shape_cast %1078 : vector<3xf32> to vector<3x1xf32>
    %cst_253 = arith.constant 1.000000e-30 : f32
    %1080 = vector.broadcast %cst_253 : f32 to vector<3x1xf32>
    %1081 = arith.maximumf %1079, %1080 : vector<3x1xf32>
    %1082 = tpu.reciprocal %1081 {approx = true} : vector<3x1xf32> -> vector<3x1xf32>
    %1083 = arith.mulf %1062, %1082 : vector<3x1xf32>
    %1084 = vector.broadcast %1083 : vector<3x1xf32> to vector<3x8xf32>
    %1085 = arith.mulf %1077, %1084 : vector<3x8xf32>
    %cst_254 = arith.constant dense<0.000000e+00> : vector<8xf32>
    %1086 = vector.multi_reduction <add>, %1085, %cst_254 [0] : vector<3x8xf32> to vector<8xf32>
    %1087 = vector.shape_cast %1086 : vector<8xf32> to vector<1x8xf32>
    %cst_255 = arith.constant 1.000000e-30 : f32
    %1088 = vector.broadcast %cst_255 : f32 to vector<1x8xf32>
    %1089 = arith.maximumf %1087, %1088 : vector<1x8xf32>
    %1090 = tpu.reciprocal %1089 {approx = true} : vector<1x8xf32> -> vector<1x8xf32>
    %1091 = vector.broadcast %1090 : vector<1x8xf32> to vector<3x8xf32>
    %1092 = arith.mulf %1085, %1091 : vector<3x8xf32>
    %cst_256 = arith.constant dense<0.000000e+00> : vector<3xf32>
    %1093 = vector.multi_reduction <add>, %1092, %cst_256 [1] : vector<3x8xf32> to vector<3xf32>
    %1094 = vector.shape_cast %1093 : vector<3xf32> to vector<3x1xf32>
    %cst_257 = arith.constant 1.000000e-30 : f32
    %1095 = vector.broadcast %cst_257 : f32 to vector<3x1xf32>
    %1096 = arith.maximumf %1094, %1095 : vector<3x1xf32>
    %1097 = tpu.reciprocal %1096 {approx = true} : vector<3x1xf32> -> vector<3x1xf32>
    %1098 = arith.mulf %1062, %1097 : vector<3x1xf32>
    %1099 = vector.broadcast %1098 : vector<3x1xf32> to vector<3x8xf32>
    %1100 = arith.mulf %1092, %1099 : vector<3x8xf32>
    %cst_258 = arith.constant dense<0.000000e+00> : vector<8xf32>
    %1101 = vector.multi_reduction <add>, %1100, %cst_258 [0] : vector<3x8xf32> to vector<8xf32>
    %1102 = vector.shape_cast %1101 : vector<8xf32> to vector<1x8xf32>
    %cst_259 = arith.constant 1.000000e-30 : f32
    %1103 = vector.broadcast %cst_259 : f32 to vector<1x8xf32>
    %1104 = arith.maximumf %1102, %1103 : vector<1x8xf32>
    %1105 = tpu.reciprocal %1104 {approx = true} : vector<1x8xf32> -> vector<1x8xf32>
    %1106 = vector.broadcast %1105 : vector<1x8xf32> to vector<3x8xf32>
    %1107 = arith.mulf %1100, %1106 : vector<3x8xf32>
    %cst_260 = arith.constant 0.000000e+00 : f32
    %1108 = vector.broadcast %cst_260 : f32 to vector<3x1xf32>
    %1109 = arith.mulf %19, %1107 : vector<3x8xf32>
    %cst_261 = arith.constant dense<0.000000e+00> : vector<8xf32>
    %1110 = vector.multi_reduction <add>, %1109, %cst_261 [0] : vector<3x8xf32> to vector<8xf32>
    %1111 = vector.shape_cast %1110 : vector<8xf32> to vector<1x8xf32>
    %1112 = vector.broadcast %1111 : vector<1x8xf32> to vector<3x8xf32>
    %1113 = arith.subf %19, %1112 : vector<3x8xf32>
    %1114 = vector.broadcast %1105 : vector<1x8xf32> to vector<3x8xf32>
    %1115 = arith.mulf %1113, %1114 : vector<3x8xf32>
    %1116 = arith.mulf %1115, %1100 : vector<3x8xf32>
    %cst_262 = arith.constant dense<0.000000e+00> : vector<3xf32>
    %1117 = vector.multi_reduction <add>, %1116, %cst_262 [1] : vector<3x8xf32> to vector<3xf32>
    %1118 = vector.shape_cast %1117 : vector<3xf32> to vector<3x1xf32>
    %1119 = arith.addf %1108, %1118 : vector<3x1xf32>
    %1120 = vector.broadcast %1098 : vector<3x1xf32> to vector<3x8xf32>
    %1121 = arith.mulf %1120, %1115 : vector<3x8xf32>
    %1122 = arith.mulf %1097, %1118 : vector<3x1xf32>
    %1123 = vector.broadcast %1122 : vector<3x1xf32> to vector<3x8xf32>
    %1124 = arith.subf %1121, %1123 : vector<3x8xf32>
    %1125 = arith.mulf %1124, %1092 : vector<3x8xf32>
    %cst_263 = arith.constant dense<0.000000e+00> : vector<8xf32>
    %1126 = vector.multi_reduction <add>, %1125, %cst_263 [0] : vector<3x8xf32> to vector<8xf32>
    %1127 = vector.shape_cast %1126 : vector<8xf32> to vector<1x8xf32>
    %1128 = vector.broadcast %1127 : vector<1x8xf32> to vector<3x8xf32>
    %1129 = arith.subf %1124, %1128 : vector<3x8xf32>
    %1130 = vector.broadcast %1090 : vector<1x8xf32> to vector<3x8xf32>
    %1131 = arith.mulf %1129, %1130 : vector<3x8xf32>
    %1132 = arith.mulf %1131, %1085 : vector<3x8xf32>
    %cst_264 = arith.constant dense<0.000000e+00> : vector<3xf32>
    %1133 = vector.multi_reduction <add>, %1132, %cst_264 [1] : vector<3x8xf32> to vector<3xf32>
    %1134 = vector.shape_cast %1133 : vector<3xf32> to vector<3x1xf32>
    %1135 = arith.addf %1119, %1134 : vector<3x1xf32>
    %1136 = vector.broadcast %1083 : vector<3x1xf32> to vector<3x8xf32>
    %1137 = arith.mulf %1136, %1131 : vector<3x8xf32>
    %1138 = arith.mulf %1082, %1134 : vector<3x1xf32>
    %1139 = vector.broadcast %1138 : vector<3x1xf32> to vector<3x8xf32>
    %1140 = arith.subf %1137, %1139 : vector<3x8xf32>
    %1141 = arith.mulf %1140, %1077 : vector<3x8xf32>
    %cst_265 = arith.constant dense<0.000000e+00> : vector<8xf32>
    %1142 = vector.multi_reduction <add>, %1141, %cst_265 [0] : vector<3x8xf32> to vector<8xf32>
    %1143 = vector.shape_cast %1142 : vector<8xf32> to vector<1x8xf32>
    %1144 = vector.broadcast %1143 : vector<1x8xf32> to vector<3x8xf32>
    %1145 = arith.subf %1140, %1144 : vector<3x8xf32>
    %1146 = vector.broadcast %1075 : vector<1x8xf32> to vector<3x8xf32>
    %1147 = arith.mulf %1145, %1146 : vector<3x8xf32>
    %1148 = arith.mulf %1147, %1070 : vector<3x8xf32>
    %cst_266 = arith.constant dense<0.000000e+00> : vector<3xf32>
    %1149 = vector.multi_reduction <add>, %1148, %cst_266 [1] : vector<3x8xf32> to vector<3xf32>
    %1150 = vector.shape_cast %1149 : vector<3xf32> to vector<3x1xf32>
    %1151 = arith.addf %1135, %1150 : vector<3x1xf32>
    %cst_267 = arith.constant dense<0.000000e+00> : vector<1xf32>
    %1152 = vector.multi_reduction <add>, %1151, %cst_267 [0] : vector<3x1xf32> to vector<1xf32>
    %1153 = vector.shape_cast %1152 : vector<1xf32> to vector<1x1xf32>
    %1154 = vector.broadcast %1153 : vector<1x1xf32> to vector<3x1xf32>
    %1155 = arith.mulf %1062, %1154 : vector<3x1xf32>
    %1156 = arith.subf %1151, %1155 : vector<3x1xf32>
    %cst_268 = arith.constant 0.333333343 : f32
    %1157 = vector.broadcast %cst_268 : f32 to vector<3x1xf32>
    %1158 = arith.subf %1062, %1157 : vector<3x1xf32>
    %cst_269 = arith.constant 1.66666663 : f32
    %1159 = vector.broadcast %cst_269 : f32 to vector<3x1xf32>
    %1160 = arith.mulf %1159, %1158 : vector<3x1xf32>
    %1161 = arith.addf %1156, %1160 : vector<3x1xf32>
    %1162 = arith.mulf %1161, %1161 : vector<3x1xf32>
    %1163 = vector.shape_cast %1162 : vector<3x1xf32> to vector<1x3x1xf32>
    %cst_270 = arith.constant dense<0.000000e+00> : vector<1xf32>
    %1164 = vector.multi_reduction <add>, %1163, %cst_270 [1, 2] : vector<1x3x1xf32> to vector<1xf32>
    %1165 = vector.shape_cast %1164 : vector<1xf32> to vector<1x1x1xf32>
    %1166 = vector.extract %1165[0, 0, 0] : f32 from vector<1x1x1xf32>
    %1167 = vector.broadcast %1166 : f32 to vector<1x1xf32>
    %1168 = math.sqrt %1167 : vector<1x1xf32>
    %cst_271 = arith.constant 9.99999997E-7 : f32
    %1169 = vector.broadcast %cst_271 : f32 to vector<1x1xf32>
    %1170 = arith.addf %1168, %1169 : vector<1x1xf32>
    %cst_272 = arith.constant 1.000000e+00 : f32
    %1171 = vector.broadcast %cst_272 : f32 to vector<1x1xf32>
    %1172 = arith.divf %1171, %1170 : vector<1x1xf32>
    %cst_273 = arith.constant 1.000000e+00 : f32
    %1173 = vector.broadcast %cst_273 : f32 to vector<1x1xf32>
    %1174 = arith.minimumf %1173, %1172 : vector<1x1xf32>
    %1175 = vector.broadcast %1174 : vector<1x1xf32> to vector<3x1xf32>
    %1176 = arith.mulf %1161, %1175 : vector<3x1xf32>
    %cst_274 = arith.constant 9.900000e-01 : f32
    %1177 = vector.broadcast %cst_274 : f32 to vector<3x1xf32>
    %1178 = arith.mulf %1177, %1050 : vector<3x1xf32>
    %1179 = arith.addf %1178, %1176 : vector<3x1xf32>
    %cst_275 = arith.constant 1.000000e-01 : f32
    %1180 = vector.broadcast %cst_275 : f32 to vector<3x1xf32>
    %1181 = arith.mulf %1180, %1179 : vector<3x1xf32>
    %1182 = arith.subf %1053, %1181 : vector<3x1xf32>
    %cst_276 = arith.constant dense<0xFF800000> : vector<1xf32>
    %1183 = vector.multi_reduction <maximumf>, %1182, %cst_276 [0] : vector<3x1xf32> to vector<1xf32>
    %1184 = vector.shape_cast %1183 : vector<1xf32> to vector<1x1xf32>
    %1185 = vector.broadcast %1184 : vector<1x1xf32> to vector<3x1xf32>
    %1186 = arith.subf %1182, %1185 : vector<3x1xf32>
    %1187 = math.exp %1186 : vector<3x1xf32>
    %cst_277 = arith.constant dense<0.000000e+00> : vector<1xf32>
    %1188 = vector.multi_reduction <add>, %1187, %cst_277 [0] : vector<3x1xf32> to vector<1xf32>
    %1189 = vector.shape_cast %1188 : vector<1xf32> to vector<1x1xf32>
    %1190 = vector.broadcast %1189 : vector<1x1xf32> to vector<3x1xf32>
    %1191 = arith.divf %1187, %1190 : vector<3x1xf32>
    %cst_278 = arith.constant dense<0.000000e+00> : vector<3xf32>
    %1192 = vector.multi_reduction <add>, %17, %cst_278 [1] : vector<3x8xf32> to vector<3xf32>
    %1193 = vector.shape_cast %1192 : vector<3xf32> to vector<3x1xf32>
    %cst_279 = arith.constant 1.000000e-30 : f32
    %1194 = vector.broadcast %cst_279 : f32 to vector<3x1xf32>
    %1195 = arith.maximumf %1193, %1194 : vector<3x1xf32>
    %1196 = arith.divf %1191, %1195 : vector<3x1xf32>
    %1197 = vector.broadcast %1196 : vector<3x1xf32> to vector<3x8xf32>
    %1198 = arith.mulf %17, %1197 : vector<3x8xf32>
    %cst_280 = arith.constant dense<0.000000e+00> : vector<8xf32>
    %1199 = vector.multi_reduction <add>, %1198, %cst_280 [0] : vector<3x8xf32> to vector<8xf32>
    %1200 = vector.shape_cast %1199 : vector<8xf32> to vector<1x8xf32>
    %cst_281 = arith.constant 1.000000e-30 : f32
    %1201 = vector.broadcast %cst_281 : f32 to vector<1x8xf32>
    %1202 = arith.maximumf %1200, %1201 : vector<1x8xf32>
    %1203 = vector.broadcast %1202 : vector<1x8xf32> to vector<3x8xf32>
    %1204 = arith.divf %1198, %1203 : vector<3x8xf32>
    %cst_282 = arith.constant dense<0.000000e+00> : vector<3xf32>
    %1205 = vector.multi_reduction <add>, %1204, %cst_282 [1] : vector<3x8xf32> to vector<3xf32>
    %1206 = vector.shape_cast %1205 : vector<3xf32> to vector<3x1xf32>
    %cst_283 = arith.constant 1.000000e-30 : f32
    %1207 = vector.broadcast %cst_283 : f32 to vector<3x1xf32>
    %1208 = arith.maximumf %1206, %1207 : vector<3x1xf32>
    %1209 = arith.divf %1191, %1208 : vector<3x1xf32>
    %1210 = vector.broadcast %1209 : vector<3x1xf32> to vector<3x8xf32>
    %1211 = arith.mulf %1204, %1210 : vector<3x8xf32>
    %cst_284 = arith.constant dense<0.000000e+00> : vector<8xf32>
    %1212 = vector.multi_reduction <add>, %1211, %cst_284 [0] : vector<3x8xf32> to vector<8xf32>
    %1213 = vector.shape_cast %1212 : vector<8xf32> to vector<1x8xf32>
    %cst_285 = arith.constant 1.000000e-30 : f32
    %1214 = vector.broadcast %cst_285 : f32 to vector<1x8xf32>
    %1215 = arith.maximumf %1213, %1214 : vector<1x8xf32>
    %1216 = vector.broadcast %1215 : vector<1x8xf32> to vector<3x8xf32>
    %1217 = arith.divf %1211, %1216 : vector<3x8xf32>
    %cst_286 = arith.constant dense<0.000000e+00> : vector<3xf32>
    %1218 = vector.multi_reduction <add>, %1217, %cst_286 [1] : vector<3x8xf32> to vector<3xf32>
    %1219 = vector.shape_cast %1218 : vector<3xf32> to vector<3x1xf32>
    %cst_287 = arith.constant 1.000000e-30 : f32
    %1220 = vector.broadcast %cst_287 : f32 to vector<3x1xf32>
    %1221 = arith.maximumf %1219, %1220 : vector<3x1xf32>
    %1222 = arith.divf %1191, %1221 : vector<3x1xf32>
    %1223 = vector.broadcast %1222 : vector<3x1xf32> to vector<3x8xf32>
    %1224 = arith.mulf %1217, %1223 : vector<3x8xf32>
    %cst_288 = arith.constant dense<0.000000e+00> : vector<8xf32>
    %1225 = vector.multi_reduction <add>, %1224, %cst_288 [0] : vector<3x8xf32> to vector<8xf32>
    %1226 = vector.shape_cast %1225 : vector<8xf32> to vector<1x8xf32>
    %cst_289 = arith.constant 1.000000e-30 : f32
    %1227 = vector.broadcast %cst_289 : f32 to vector<1x8xf32>
    %1228 = arith.maximumf %1226, %1227 : vector<1x8xf32>
    %1229 = vector.broadcast %1228 : vector<1x8xf32> to vector<3x8xf32>
    %1230 = arith.divf %1224, %1229 : vector<3x8xf32>
    %c0_290 = arith.constant 0 : index
    %c0_291 = arith.constant 0 : index
    %1231 = vector.load %arg1[%c0_290, %c0_291] : memref<3x8xf32, #tpu.memory_space<vmem>>, vector<3x8xf32>
    tpu.vector_store %arg1[%c0_290, %c0_291], %1230 {strides = array<i32>} : memref<3x8xf32, #tpu.memory_space<vmem>>, vector<3x8xf32>,
    return
  }
}

</mosaic_0001>

<bundles_post_ra>
// kernel: balanced_sinkhorn_forward.1
= control target key start
LH: loop header
LB: loop body
LE: loop exit
PB: predicated region body
PF: predicated region fallthrough
CT: control target
= control target key end

     0   :  { %6 = vsyncpa [#allocation3], 0  ;;  %s2361_s0 = inlined_call_operand.hbm [shape: f32[3,8], index: 0, kind: input, shape index: {}]   ;;  %s2362_s1 = inlined_call_operand.hbm [shape: f32[3,8], index: 1, kind: output, shape index: {}]  }
   0x1   :  { %7 = vsyncpa [#allocation4], 0  ;;  %s1796_s6 = smov [#allocation2]   ;;  %s1748_s10 = scalar_lea.hbm %s2361_s0, 64 }
   0x2   :  { %s14_s7 = sshll.u32 %s1796_s6, 4  ;;  %p1749_p0 = scmp.ne.s32.totalorder %s2361_s0, %s1748_s10  ;;  %s15_s7 = int_to_ptr.vmem [resolvable:$true] %s14_s7 }
   0x3   :  { %p1752_p1 = scmp.lt.u32.totalorder %s1748_s10, %s2361_s0 }
   0x5   :  { %p1754_p2 = pnand %p1752_p1, %p1749_p0 }
   0x7   :  { %1757 = shalt.err (!%p1754_p2)
}
   0x8   :  { %s1758_s15 = scalar_lea.vmem %s15_s7, 64  ;;  %p1763_p4 = scmp.lt.s32.totalorder %s15_s7, %s15_s7 }
   0x9   :  { %p1759_p3 = scmp.ne.s32.totalorder %s15_s7, %s1758_s15  ;;  %p1764_p5 = scmp.lt.s32.totalorder %s1758_s15, %s1758_s15 }
   0xb   :  { %p1765_p6 = por %p1764_p5, %p1763_p4 }
   0xd   :  { %p1766_p7 = pnand %p1765_p6, %p1759_p3 }
   0xf   :  { %1769 = shalt.err (!%p1766_p7)
}
  0x10   :  { %17 = dma.hbm_to_vmem [thread:$0]  %s2361_s0, 64, %s15_s7, [#allocation3]  }
  0x11   :  { %1792 = dma.done.wait [#allocation3], 64  }
  0x12   :  { %1793 = vsyncadd [#allocation3], 4294967232  ;;  %vm22_vm0 = vcmask 59392   ;;  %v1821_v0 = vld [vmem:[#allocation2] sm:$0x7]  ;;  %vm52_vm1 = vcmask 1042432  }
  0x13   :  { %v23_v1 = vsel %vm22_vm0, %v1821_v0, -inf  ;;  %v1797_v26 = vmov 0.0   ;;  %vm177_vm2 = vcmask 2048   ;;  %s1798_s28 = smov [#allocation5]  }
  0x14   :  { %24 = vmax.xlane.f32.xlu0 %v23_v1  ;;  %v53_v27 = vsel %vm52_vm1, 1.0, %v1797_v26  ;;  %s1525_s29 = sshll.u32 %s1798_s28, 4  ;;  %s1526_s29 = int_to_ptr.vmem [resolvable:$true] %s1525_s29 }
  0x15   :  { %v54_v28 = vrot.slane %v53_v27, 4  ;;  %s1770_s30 = scalar_lea.vmem %s1526_s29, 64  ;;  %p1775_p9 = scmp.lt.s32.totalorder %s1526_s29, %s1526_s29 }
  0x16   :  { %p1771_p8 = scmp.ne.s32.totalorder %s1526_s29, %s1770_s30  ;;  %p1776_p10 = scmp.lt.s32.totalorder %s1770_s30, %s1770_s30 }
  0x17   :  { %v55_v29 = vadd.f32 %v54_v28, %v53_v27 }
  0x18   :  { %p1777_p11 = por %p1776_p10, %p1775_p9 }
  0x19   :  { %v56_v30 = vrot.slane %v55_v29, 2 }
  0x1a   :  { %p1778_p12 = pnand %p1777_p11, %p1771_p8 }
  0x1b   :  { %v57_v31 = vadd.f32 %v56_v30, %v55_v29 }
  0x1d   :  { %v58_v32 = vrot.slane %v57_v31, 1 }
  0x1f   :  { %v59_v33 = vadd.f32 %v58_v32, %v57_v31 }
  0xa1   :  { %v25_v2 = vpop.xlane.xlu0 %24 }
  0xa2   :  { %v26_v3 = vrot.slane %v25_v2, 4 }
  0xa4   :  { %v27_v4 = vmax.f32 %v25_v2, %v26_v3 }
  0xa6   :  { %v28_v5 = vrot.slane %v27_v4, 2 }
  0xa8   :  { %v29_v6 = vmax.f32 %v27_v4, %v28_v5 }
  0xaa   :  { %v30_v7 = vrot.slane %v29_v6, 1 }
  0xac   :  { %v31_v8 = vmax.f32 %v29_v6, %v30_v7 }
  0xae   :  { %1543 = vpush %v31_v8 }
  0xdf   :  { %s1544_s18 = spop %1543 }
  0xe0   :  { %v33_v9 = vstv %s1544_s18 }
  0xe1   :  { %v34_v10 = vsub.f32 %v1821_v0, %v33_v9 }
  0xe3   :  { %v35_v11 = vmul.f32 20.0, %v34_v10 }
  0xe5   :  { %v36_v12 = vmul.f32 1.442695, %v35_v11 }
  0xe7   :  { %1568 = vpow2.f32 %v36_v12 }
  0xf1   :  { %v1569_v13 = vpop.eup %1568 }
  0xf2   :  { %v38_v14 = vsel %vm22_vm0, %v1569_v13, 0.0 }
  0xf3   :  { %39 = vadd.xlane.f32.xlu0 %v38_v14 }
 0x180   :  { %v40_v15 = vpop.xlane.xlu0 %39 }
 0x181   :  { %v41_v16 = vrot.slane %v40_v15, 4 }
 0x183   :  { %v42_v17 = vadd.f32 %v41_v16, %v40_v15 }
 0x185   :  { %v43_v18 = vrot.slane %v42_v17, 2 }
 0x187   :  { %v44_v19 = vadd.f32 %v43_v18, %v42_v17  ;;  %v1864_v17 = vmul.f32 -0.125, %v1821_v0 }
 0x189   :  { %v45_v20 = vrot.slane %v44_v19, 1 }
 0x18b   :  { %v46_v21 = vadd.f32 %v45_v20, %v44_v19 }
 0x18d   :  { %1545 = vpush %v46_v21 }
 0x1be   :  { %s1546_s0 = spop %1545 }
 0x1bf   :  { %v48_v22 = vstv %s1546_s0 }
 0x1c0   :  { %1570 = vrcp.f32 %v48_v22 }
 0x1c1   :  { %1572 = vrcp.f32 %v59_v33 }
 0x1ca   :  { %v1571_v23 = vpop.eup %1570 }
 0x1cb   :  { %v1827_v24 = vmul.f32 %v1571_v23, %v1569_v13  ;;  %v1832_v36 = vpop.eup %1572 }
 0x1cd   :  { %v62_v25 = vsel %vm22_vm0, %v1827_v24, 0.0 }
 0x1ce   :  { %63 = vadd.xlane.f32.xlu1 %v62_v25 }
 0x25b   :  { %v64_v34 = vpop.xlane.xlu1 %63 }
 0x25c   :  { %v65_v35 = vmax.f32 %v64_v34, 1e-30 }
 0x25e   :  { %1574 = vrcp.f32 %v65_v35 }
 0x268   :  { %v1834_v37 = vpop.eup %1574 }
 0x269   :  { %v67_v38 = vmul.f32 %v1834_v37, %v1832_v36 }
 0x26b   :  { %v1839_v39 = vmul.f32 %v67_v38, %v1827_v24 }
 0x26d   :  { %v69_v40 = vsel %vm22_vm0, %v1839_v39, 0.0 }
 0x26e   :  { %v70_v41 = vrot.slane %v69_v40, 4 }
 0x270   :  { %v71_v42 = vadd.f32 %v70_v41, %v69_v40 }
 0x272   :  { %v72_v43 = vrot.slane %v71_v42, 2 }
 0x274   :  { %v73_v44 = vadd.f32 %v72_v43, %v71_v42 }
 0x276   :  { %v74_v45 = vrot.slane %v73_v44, 1 }
 0x278   :  { %v75_v46 = vadd.f32 %v74_v45, %v73_v44 }
 0x27a   :  { %v76_v47 = vmax.f32 %v75_v46, 1e-30 }
 0x27c   :  { %1576 = vrcp.f32 %v76_v47 }
 0x286   :  { %v1843_v48 = vpop.eup %1576 }
 0x287   :  { %v1847_v49 = vmul.f32 %v1843_v48, %v1839_v39 }
 0x289   :  { %v79_v50 = vsel %vm22_vm0, %v1847_v49, 0.0 }
 0x28a   :  { %80 = vadd.xlane.f32.xlu1 %v79_v50 }
 0x317   :  { %v81_v51 = vpop.xlane.xlu1 %80 }
 0x318   :  { %v82_v52 = vmax.f32 %v81_v51, 1e-30 }
 0x31a   :  { %1578 = vrcp.f32 %v82_v52 }
 0x324   :  { %v1851_v53 = vpop.eup %1578 }
 0x325   :  { %v1855_v54 = vmul.f32 %v1851_v53, %v1832_v36 }
 0x327   :  { %v85_v55 = vmul.f32 %v1855_v54, %v1847_v49 }
 0x329   :  { %v86_v56 = vsel %vm22_vm0, %v85_v55, 0.0 }
 0x32a   :  { %v87_v57 = vrot.slane %v86_v56, 4 }
 0x32c   :  { %v88_v58 = vadd.f32 %v87_v57, %v86_v56 }
 0x32e   :  { %v89_v59 = vrot.slane %v88_v58, 2 }
 0x330   :  { %v90_v60 = vadd.f32 %v89_v59, %v88_v58 }
 0x332   :  { %v91_v61 = vrot.slane %v90_v60, 1 }
 0x334   :  { %v92_v62 = vadd.f32 %v91_v61, %v90_v60 }
 0x336   :  { %v93_v63 = vmax.f32 %v92_v62, 1e-30 }
 0x338   :  { %1580 = vrcp.f32 %v93_v63 }
 0x342   :  { %v1581_v1 = vpop.eup %1580 }
 0x343   :  { %v95_v2 = vmul.f32 %v1581_v1, %v85_v55 }
 0x345   :  { %v96_v3 = vsel %vm22_vm0, %v95_v2, 0.0 }
 0x346   :  { %97 = vadd.xlane.f32.xlu0 %v96_v3 }
 0x3d3   :  { %v98_v4 = vpop.xlane.xlu0 %97 }
 0x3d4   :  { %v99_v5 = vmax.f32 %v98_v4, 1e-30 }
 0x3d6   :  { %1582 = vrcp.f32 %v99_v5 }
 0x3e0   :  { %v1583_v6 = vpop.eup %1582 }
 0x3e1   :  { %v101_v7 = vmul.f32 %v1583_v6, %v1832_v36 }
 0x3e3   :  { %v102_v8 = vmul.f32 %v101_v7, %v95_v2 }
 0x3e5   :  { %v103_v9 = vsel %vm22_vm0, %v102_v8, 0.0 }
 0x3e6   :  { %v104_v10 = vrot.slane %v103_v9, 4 }
 0x3e8   :  { %v105_v11 = vadd.f32 %v104_v10, %v103_v9 }
 0x3ea   :  { %v106_v12 = vrot.slane %v105_v11, 2 }
 0x3ec   :  { %v107_v13 = vadd.f32 %v106_v12, %v105_v11 }
 0x3ee   :  { %v108_v14 = vrot.slane %v107_v13, 1 }
 0x3f0   :  { %v109_v15 = vadd.f32 %v108_v14, %v107_v13  ;;  %v1534_v14 = vadd.f32 -0.33333334, %v1832_v36 }
 0x3f2   :  { %v110_v16 = vmax.f32 %v109_v15, 1e-30 }
 0x3f4   :  { %1584 = vrcp.f32 %v110_v16  ;;  %v174_v16 = vmul.f32 1.6666666, %v1534_v14 }
 0x3fe   :  { %v1585_v18 = vpop.eup %1584 }
 0x3ff   :  { %v112_v19 = vmul.f32 %v1585_v18, %v102_v8 }
 0x401   :  { %v113_v20 = vmul.f32 %v112_v19, %v1864_v17 }
 0x403   :  { %v114_v21 = vsel %vm22_vm0, %v113_v20, 0.0 }
 0x404   :  { %v115_v22 = vrot.slane %v114_v21, 4 }
 0x406   :  { %v116_v23 = vadd.f32 %v115_v22, %v114_v21 }
 0x408   :  { %v117_v25 = vrot.slane %v116_v23, 2 }
 0x40a   :  { %v118_v26 = vadd.f32 %v117_v25, %v116_v23 }
 0x40c   :  { %v119_v27 = vrot.slane %v118_v26, 1 }
 0x40e   :  { %v120_v28 = vadd.f32 %v119_v27, %v118_v26 }
 0x410   :  { %v121_v29 = vsub.f32 %v1864_v17, %v120_v28 }
 0x412   :  { %v122_v30 = vmul.f32 %v1585_v18, %v121_v29 }
 0x414   :  { %v123_v31 = vmul.f32 %v122_v30, %v102_v8  ;;  %v128_v32 = vmul.f32 %v122_v30, %v101_v7 }
 0x416   :  { %v124_v0 = vsel %vm22_vm0, %v123_v31, 0.0 }
 0x417   :  { %125 = vadd.xlane.f32.xlu1 %v124_v0 }
 0x4a4   :  { %v126_v33 = vpop.xlane.xlu1 %125 }
 0x4a5   :  { %v129_v34 = vmul.f32 %v1583_v6, %v126_v33 }
 0x4a7   :  { %v130_v35 = vsub.f32 %v128_v32, %v129_v34 }
 0x4a9   :  { %v131_v38 = vmul.f32 %v130_v35, %v95_v2 }
 0x4ab   :  { %v132_v40 = vsel %vm22_vm0, %v131_v38, 0.0 }
 0x4ac   :  { %v133_v41 = vrot.slane %v132_v40, 4 }
 0x4ae   :  { %v134_v42 = vadd.f32 %v133_v41, %v132_v40 }
 0x4b0   :  { %v135_v43 = vrot.slane %v134_v42, 2 }
 0x4b2   :  { %v136_v44 = vadd.f32 %v135_v43, %v134_v42 }
 0x4b4   :  { %v137_v45 = vrot.slane %v136_v44, 1 }
 0x4b6   :  { %v138_v46 = vadd.f32 %v137_v45, %v136_v44 }
 0x4b8   :  { %v139_v47 = vsub.f32 %v130_v35, %v138_v46 }
 0x4ba   :  { %v140_v50 = vmul.f32 %v1581_v1, %v139_v47 }
 0x4bc   :  { %v141_v51 = vmul.f32 %v140_v50, %v85_v55  ;;  %v146_v57 = vmul.f32 %v140_v50, %v1855_v54 }
 0x4be   :  { %v142_v52 = vsel %vm22_vm0, %v141_v51, 0.0 }
 0x4bf   :  { %143 = vadd.xlane.f32.xlu0 %v142_v52 }
 0x54c   :  { %v144_v56 = vpop.xlane.xlu0 %143 }
 0x54d   :  { %v147_v58 = vmul.f32 %v1851_v53, %v144_v56  ;;  %v145_v53 = vadd.f32 %v144_v56, %v126_v33 }
 0x54f   :  { %v148_v59 = vsub.f32 %v146_v57, %v147_v58 }
 0x551   :  { %v149_v60 = vmul.f32 %v148_v59, %v1847_v49 }
 0x553   :  { %v150_v61 = vsel %vm22_vm0, %v149_v60, 0.0 }
 0x554   :  { %v151_v62 = vrot.slane %v150_v61, 4 }
 0x556   :  { %v152_v63 = vadd.f32 %v151_v62, %v150_v61 }
 0x558   :  { %v153_v2 = vrot.slane %v152_v63, 2 }
 0x55a   :  { %v154_v3 = vadd.f32 %v153_v2, %v152_v63 }
 0x55c   :  { %v155_v4 = vrot.slane %v154_v3, 1 }
 0x55e   :  { %v156_v1 = vadd.f32 %v155_v4, %v154_v3 }
 0x560   :  { %v157_v55 = vsub.f32 %v148_v59, %v156_v1 }
 0x562   :  { %v158_v5 = vmul.f32 %v1843_v48, %v157_v55 }
 0x564   :  { %v159_v6 = vmul.f32 %v158_v5, %v1839_v39 }
 0x566   :  { %v160_v54 = vsel %vm22_vm0, %v159_v6, 0.0 }
 0x567   :  { %161 = vadd.xlane.f32.xlu1 %v160_v54 }
 0x5f4   :  { %v162_v7 = vpop.xlane.xlu1 %161 }
 0x5f5   :  { %v163_v8 = vadd.f32 %v162_v7, %v145_v53 }
 0x5f7   :  { %v164_v49 = vsel %vm52_vm1, %v163_v8, 0.0 }
 0x5f8   :  { %v165_v9 = vrot.slane %v164_v49, 4 }
 0x5fa   :  { %v166_v10 = vadd.f32 %v165_v9, %v164_v49 }
 0x5fc   :  { %v167_v11 = vrot.slane %v166_v10, 2 }
 0x5fe   :  { %v168_v12 = vadd.f32 %v167_v11, %v166_v10 }
 0x600   :  { %v169_v13 = vrot.slane %v168_v12, 1 }
 0x602   :  { %v170_v15 = vadd.f32 %v169_v13, %v168_v12 }
 0x604   :  { %v171_v48 = vmul.f32 %v1832_v36, %v170_v15 }
 0x606   :  { %v172_v39 = vsub.f32 %v163_v8, %v171_v48 }
 0x608   :  { %v175_v18 = vadd.f32 %v174_v16, %v172_v39 }
 0x60a   :  { %v176_v19 = vmul.f32 %v175_v18, %v175_v18 }
 0x60c   :  { %v178_v20 = vsel %vm177_vm2, %v176_v19, 0.0 }
 0x60d   :  { %179 = vadd.xlane.f32.xlu0 %v178_v20 }
 0x69a   :  { %v180_v21 = vpop.xlane.xlu0 %179 }
 0x69b   :  { %v181_v22 = vrot.slane %v180_v21, 4 }
 0x69d   :  { %v182_v23 = vadd.f32 %v181_v22, %v180_v21 }
 0x69f   :  { %v183_v25 = vrot.slane %v182_v23, 2 }
 0x6a1   :  { %v184_v26 = vadd.f32 %v183_v25, %v182_v23 }
 0x6a3   :  { %v185_v27 = vrot.slane %v184_v26, 1 }
 0x6a5   :  { %v186_v28 = vadd.f32 %v185_v27, %v184_v26 }
 0x6a7   :  { %1547 = vpush %v186_v28 }
 0x6d8   :  { %s1548_s19 = spop %1547 }
 0x6d9   :  { %v188_v29 = vstv %s1548_s19 }
 0x6da   :  { %1586 = vrsqrt.f32 %v188_v29  ;;  %vm191_vm3 = vcmp.eq.f32.partialorder %v188_v29, inf  ;;  %v194_v31 = vand.u32 2147483648, %v188_v29  ;;  %vm193_vm4 = vcmp.eq.f32.partialorder %v188_v29, 0.0 }
 0x6e4   :  { %v1587_v36 = vpop.eup %1586 }
 0x6e5   :  { %v190_v30 = vmul.f32 %v1587_v36, %v188_v29 }
 0x6e7   :  { %v192_v32 = vsel %vm191_vm3, %v188_v29, %v190_v30 }
 0x6e8   :  { %v195_v0 = vsel %vm193_vm4, %v194_v31, %v192_v32 }
 0x6e9   :  { %v196_v33 = vadd.f32 1e-06, %v195_v0 }
 0x6eb   :  { %1588 = vrcp.f32 %v196_v33 }
 0x6f5   :  { %v1589_v34 = vpop.eup %1588 }
 0x6f6   :  { %v199_v35 = vmin.f32 %v1589_v34, 1.0 }
 0x6f8   :  { %v1883_v38 = vmul.f32 %v199_v35, %v175_v18 }
 0x6fa   :  { %v202_v40 = vmul.f32 0.1, %v1883_v38 }
 0x6fc   :  { %v1886_v41 = vsub.f32 0.33333334, %v202_v40 }
 0x6fe   :  { %v204_v42 = vsel %vm52_vm1, %v1886_v41, -inf }
 0x6ff   :  { %v205_v43 = vrot.slane %v204_v42, 4 }
 0x701   :  { %v206_v44 = vmax.f32 %v204_v42, %v205_v43 }
 0x703   :  { %v207_v45 = vrot.slane %v206_v44, 2 }
 0x705   :  { %v208_v46 = vmax.f32 %v206_v44, %v207_v45 }
 0x707   :  { %v209_v47 = vrot.slane %v208_v46, 1 }
 0x709   :  { %v210_v50 = vmax.f32 %v208_v46, %v209_v47 }
 0x70b   :  { %v211_v51 = vsub.f32 %v1886_v41, %v210_v50 }
 0x70d   :  { %v212_v52 = vmul.f32 1.442695, %v211_v51 }
 0x70f   :  { %1590 = vpow2.f32 %v212_v52 }
 0x719   :  { %v1591_v56 = vpop.eup %1590 }
 0x71a   :  { %v214_v57 = vsel %vm52_vm1, %v1591_v56, 0.0 }
 0x71b   :  { %v215_v58 = vrot.slane %v214_v57, 4 }
 0x71d   :  { %v216_v59 = vadd.f32 %v215_v58, %v214_v57 }
 0x71f   :  { %v217_v60 = vrot.slane %v216_v59, 2 }
 0x721   :  { %v218_v61 = vadd.f32 %v217_v60, %v216_v59 }
 0x723   :  { %v219_v62 = vrot.slane %v218_v61, 1 }
 0x725   :  { %v220_v63 = vadd.f32 %v219_v62, %v218_v61 }
 0x727   :  { %1592 = vrcp.f32 %v220_v63 }
 0x731   :  { %v1593_v2 = vpop.eup %1592 }
 0x732   :  { %v1892_v3 = vmul.f32 %v1593_v2, %v1591_v56 }
 0x734   :  { %v223_v4 = vmul.f32 %v1834_v37, %v1892_v3 }
 0x736   :  { %v1897_v1 = vmul.f32 %v223_v4, %v1827_v24 }
 0x738   :  { %v225_v55 = vsel %vm22_vm0, %v1897_v1, 0.0 }
 0x739   :  { %v226_v5 = vrot.slane %v225_v55, 4 }
 0x73b   :  { %v227_v6 = vadd.f32 %v226_v5, %v225_v55 }
 0x73d   :  { %v228_v54 = vrot.slane %v227_v6, 2 }
 0x73f   :  { %v229_v53 = vadd.f32 %v228_v54, %v227_v6 }
 0x741   :  { %v230_v7 = vrot.slane %v229_v53, 1 }
 0x743   :  { %v231_v8 = vadd.f32 %v230_v7, %v229_v53 }
 0x745   :  { %v232_v49 = vmax.f32 %v231_v8, 1e-30 }
 0x747   :  { %1594 = vrcp.f32 %v232_v49 }
 0x751   :  { %v1901_v9 = vpop.eup %1594 }
 0x752   :  { %v1905_v10 = vmul.f32 %v1901_v9, %v1897_v1 }
 0x754   :  { %v235_v11 = vsel %vm22_vm0, %v1905_v10, 0.0 }
 0x755   :  { %236 = vadd.xlane.f32.xlu1 %v235_v11 }
 0x7e2   :  { %v237_v12 = vpop.xlane.xlu1 %236 }
 0x7e3   :  { %v238_v13 = vmax.f32 %v237_v12, 1e-30 }
 0x7e5   :  { %1596 = vrcp.f32 %v238_v13 }
 0x7ef   :  { %v1909_v14 = vpop.eup %1596 }
 0x7f0   :  { %v1913_v15 = vmul.f32 %v1909_v14, %v1892_v3 }
 0x7f2   :  { %v241_v48 = vmul.f32 %v1913_v15, %v1905_v10 }
 0x7f4   :  { %v242_v16 = vsel %vm22_vm0, %v241_v48, 0.0 }
 0x7f5   :  { %v243_v39 = vrot.slane %v242_v16, 4 }
 0x7f7   :  { %v244_v18 = vadd.f32 %v243_v39, %v242_v16 }
 0x7f9   :  { %v245_v19 = vrot.slane %v244_v18, 2 }
 0x7fb   :  { %v246_v20 = vadd.f32 %v245_v19, %v244_v18 }
 0x7fd   :  { %v247_v21 = vrot.slane %v246_v20, 1 }
 0x7ff   :  { %v248_v22 = vadd.f32 %v247_v21, %v246_v20 }
 0x801   :  { %v249_v23 = vmax.f32 %v248_v22, 1e-30 }
 0x803   :  { %1598 = vrcp.f32 %v249_v23 }
 0x80d   :  { %v1599_v25 = vpop.eup %1598 }
 0x80e   :  { %v251_v26 = vmul.f32 %v1599_v25, %v241_v48 }
 0x810   :  { %v252_v27 = vsel %vm22_vm0, %v251_v26, 0.0 }
 0x811   :  { %253 = vadd.xlane.f32.xlu0 %v252_v27 }
 0x89e   :  { %v254_v28 = vpop.xlane.xlu0 %253 }
 0x89f   :  { %v255_v29 = vmax.f32 %v254_v28, 1e-30 }
 0x8a1   :  { %1600 = vrcp.f32 %v255_v29 }
 0x8ab   :  { %v1601_v36 = vpop.eup %1600 }
 0x8ac   :  { %v257_v30 = vmul.f32 %v1601_v36, %v1892_v3 }
 0x8ae   :  { %v258_v31 = vmul.f32 %v257_v30, %v251_v26 }
 0x8b0   :  { %v259_v32 = vsel %vm22_vm0, %v258_v31, 0.0 }
 0x8b1   :  { %v260_v0 = vrot.slane %v259_v32, 4 }
 0x8b3   :  { %v261_v33 = vadd.f32 %v260_v0, %v259_v32 }
 0x8b5   :  { %v262_v34 = vrot.slane %v261_v33, 2 }
 0x8b7   :  { %v263_v35 = vadd.f32 %v262_v34, %v261_v33 }
 0x8b9   :  { %v264_v40 = vrot.slane %v263_v35, 1 }
 0x8bb   :  { %v265_v42 = vadd.f32 %v264_v40, %v263_v35 }
 0x8bd   :  { %v266_v43 = vmax.f32 %v265_v42, 1e-30 }
 0x8bf   :  { %1602 = vrcp.f32 %v266_v43 }
 0x8c9   :  { %v1603_v44 = vpop.eup %1602 }
 0x8ca   :  { %v268_v45 = vmul.f32 %v1603_v44, %v258_v31 }
 0x8cc   :  { %v269_v46 = vmul.f32 %v268_v45, %v1864_v17 }
 0x8ce   :  { %v270_v47 = vsel %vm22_vm0, %v269_v46, 0.0 }
 0x8cf   :  { %v271_v50 = vrot.slane %v270_v47, 4 }
 0x8d1   :  { %v272_v51 = vadd.f32 %v271_v50, %v270_v47 }
 0x8d3   :  { %v273_v52 = vrot.slane %v272_v51, 2 }
 0x8d5   :  { %v274_v56 = vadd.f32 %v273_v52, %v272_v51 }
 0x8d7   :  { %v275_v57 = vrot.slane %v274_v56, 1 }
 0x8d9   :  { %v276_v58 = vadd.f32 %v275_v57, %v274_v56 }
 0x8db   :  { %v277_v59 = vsub.f32 %v1864_v17, %v276_v58 }
 0x8dd   :  { %v278_v60 = vmul.f32 %v1603_v44, %v277_v59  ;;  %v1535_v44 = vadd.f32 -0.33333334, %v1892_v3 }
 0x8df   :  { %v279_v61 = vmul.f32 %v278_v60, %v258_v31  ;;  %v284_v62 = vmul.f32 %v278_v60, %v257_v30 }
 0x8e1   :  { %v280_v63 = vsel %vm22_vm0, %v279_v61, 0.0 }
 0x8e2   :  { %281 = vadd.xlane.f32.xlu1 %v280_v63 }
 0x96f   :  { %v282_v2 = vpop.xlane.xlu1 %281 }
 0x970   :  { %v285_v4 = vmul.f32 %v1601_v36, %v282_v2 }
 0x972   :  { %v286_v55 = vsub.f32 %v284_v62, %v285_v4 }
 0x974   :  { %v287_v5 = vmul.f32 %v286_v55, %v251_v26 }
 0x976   :  { %v288_v6 = vsel %vm22_vm0, %v287_v5, 0.0 }
 0x977   :  { %v289_v54 = vrot.slane %v288_v6, 4 }
 0x979   :  { %v290_v53 = vadd.f32 %v289_v54, %v288_v6  ;;  %v356_v54 = vmul.f32 0.99, %v1883_v38 }
 0x97b   :  { %v291_v7 = vrot.slane %v290_v53, 2 }
 0x97d   :  { %v292_v8 = vadd.f32 %v291_v7, %v290_v53 }
 0x97f   :  { %v293_v49 = vrot.slane %v292_v8, 1 }
 0x981   :  { %v294_v11 = vadd.f32 %v293_v49, %v292_v8 }
 0x983   :  { %v295_v12 = vsub.f32 %v286_v55, %v294_v11 }
 0x985   :  { %v296_v13 = vmul.f32 %v1599_v25, %v295_v12 }
 0x987   :  { %v297_v16 = vmul.f32 %v296_v13, %v241_v48  ;;  %v302_v19 = vmul.f32 %v296_v13, %v1913_v15 }
 0x989   :  { %v298_v39 = vsel %vm22_vm0, %v297_v16, 0.0 }
 0x98a   :  { %299 = vadd.xlane.f32.xlu0 %v298_v39 }
 0xa17   :  { %v300_v18 = vpop.xlane.xlu0 %299 }
 0xa18   :  { %v303_v20 = vmul.f32 %v1909_v14, %v300_v18  ;;  %v301_v14 = vadd.f32 %v300_v18, %v282_v2 }
 0xa1a   :  { %v304_v21 = vsub.f32 %v302_v19, %v303_v20 }
 0xa1c   :  { %v305_v22 = vmul.f32 %v304_v21, %v1905_v10 }
 0xa1e   :  { %v306_v23 = vsel %vm22_vm0, %v305_v22, 0.0 }
 0xa1f   :  { %v307_v26 = vrot.slane %v306_v23, 4 }
 0xa21   :  { %v308_v27 = vadd.f32 %v307_v26, %v306_v23 }
 0xa23   :  { %v309_v28 = vrot.slane %v308_v27, 2 }
 0xa25   :  { %v310_v29 = vadd.f32 %v309_v28, %v308_v27 }
 0xa27   :  { %v311_v36 = vrot.slane %v310_v29, 1 }
 0xa29   :  { %v312_v25 = vadd.f32 %v311_v36, %v310_v29 }
 0xa2b   :  { %v313_v48 = vsub.f32 %v304_v21, %v312_v25 }
 0xa2d   :  { %v314_v30 = vmul.f32 %v1901_v9, %v313_v48 }
 0xa2f   :  { %v315_v31 = vmul.f32 %v314_v30, %v1897_v1  ;;  %v330_v1 = vmul.f32 1.6666666, %v1535_v44 }
 0xa31   :  { %v316_v15 = vsel %vm22_vm0, %v315_v31, 0.0 }
 0xa32   :  { %317 = vadd.xlane.f32.xlu1 %v316_v15 }
 0xabf   :  { %v318_v32 = vpop.xlane.xlu1 %317 }
 0xac0   :  { %v319_v0 = vadd.f32 %v318_v32, %v301_v14 }
 0xac2   :  { %v320_v10 = vsel %vm52_vm1, %v319_v0, 0.0 }
 0xac3   :  { %v321_v33 = vrot.slane %v320_v10, 4 }
 0xac5   :  { %v322_v34 = vadd.f32 %v321_v33, %v320_v10 }
 0xac7   :  { %v323_v35 = vrot.slane %v322_v34, 2 }
 0xac9   :  { %v324_v40 = vadd.f32 %v323_v35, %v322_v34 }
 0xacb   :  { %v325_v42 = vrot.slane %v324_v40, 1 }
 0xacd   :  { %v326_v43 = vadd.f32 %v325_v42, %v324_v40 }
 0xacf   :  { %v327_v9 = vmul.f32 %v326_v43, %v1892_v3 }
 0xad1   :  { %v328_v45 = vsub.f32 %v319_v0, %v327_v9 }
 0xad3   :  { %v331_v46 = vadd.f32 %v330_v1, %v328_v45 }
 0xad5   :  { %v332_v47 = vmul.f32 %v331_v46, %v331_v46 }
 0xad7   :  { %v333_v50 = vsel %vm177_vm2, %v332_v47, 0.0 }
 0xad8   :  { %334 = vadd.xlane.f32.xlu0 %v333_v50 }
 0xb65   :  { %v335_v51 = vpop.xlane.xlu0 %334 }
 0xb66   :  { %v336_v52 = vrot.slane %v335_v51, 4 }
 0xb68   :  { %v337_v56 = vadd.f32 %v336_v52, %v335_v51 }
 0xb6a   :  { %v338_v57 = vrot.slane %v337_v56, 2 }
 0xb6c   :  { %v339_v58 = vadd.f32 %v338_v57, %v337_v56 }
 0xb6e   :  { %v340_v59 = vrot.slane %v339_v58, 1 }
 0xb70   :  { %v341_v60 = vadd.f32 %v340_v59, %v339_v58 }
 0xb72   :  { %1549 = vpush %v341_v60 }
 0xba3   :  { %s1550_s20 = spop %1549 }
 0xba4   :  { %v343_v61 = vstv %s1550_s20 }
 0xba5   :  { %1604 = vrsqrt.f32 %v343_v61  ;;  %vm346_vm5 = vcmp.eq.f32.partialorder %v343_v61, inf  ;;  %v349_v63 = vand.u32 2147483648, %v343_v61  ;;  %vm348_vm6 = vcmp.eq.f32.partialorder %v343_v61, 0.0 }
 0xbaf   :  { %v1605_v62 = vpop.eup %1604 }
 0xbb0   :  { %v345_v3 = vmul.f32 %v1605_v62, %v343_v61 }
 0xbb2   :  { %v347_v2 = vsel %vm346_vm5, %v343_v61, %v345_v3 }
 0xbb3   :  { %v350_v4 = vsel %vm348_vm6, %v349_v63, %v347_v2 }
 0xbb4   :  { %v351_v55 = vadd.f32 1e-06, %v350_v4 }
 0xbb6   :  { %1606 = vrcp.f32 %v351_v55 }
 0xbc0   :  { %v1607_v5 = vpop.eup %1606 }
 0xbc1   :  { %v354_v6 = vmin.f32 %v1607_v5, 1.0 }
 0xbc3   :  { %v355_v53 = vmul.f32 %v354_v6, %v331_v46 }
 0xbc5   :  { %v1939_v7 = vadd.f32 %v356_v54, %v355_v53 }
 0xbc7   :  { %v358_v8 = vmul.f32 0.1, %v1939_v7 }
 0xbc9   :  { %v1943_v49 = vsub.f32 %v1886_v41, %v358_v8 }
 0xbcb   :  { %v360_v11 = vsel %vm52_vm1, %v1943_v49, -inf }
 0xbcc   :  { %v361_v12 = vrot.slane %v360_v11, 4 }
 0xbce   :  { %v362_v13 = vmax.f32 %v360_v11, %v361_v12 }
 0xbd0   :  { %v363_v16 = vrot.slane %v362_v13, 2 }
 0xbd2   :  { %v364_v39 = vmax.f32 %v362_v13, %v363_v16 }
 0xbd4   :  { %v365_v18 = vrot.slane %v364_v39, 1 }
 0xbd6   :  { %v366_v19 = vmax.f32 %v364_v39, %v365_v18 }
 0xbd8   :  { %v367_v20 = vsub.f32 %v1943_v49, %v366_v19 }
 0xbda   :  { %v368_v38 = vmul.f32 1.442695, %v367_v20 }
 0xbdc   :  { %1608 = vpow2.f32 %v368_v38 }
 0xbe6   :  { %v1609_v21 = vpop.eup %1608 }
 0xbe7   :  { %v370_v22 = vsel %vm52_vm1, %v1609_v21, 0.0 }
 0xbe8   :  { %v371_v23 = vrot.slane %v370_v22, 4 }
 0xbea   :  { %v372_v26 = vadd.f32 %v371_v23, %v370_v22 }
 0xbec   :  { %v373_v41 = vrot.slane %v372_v26, 2 }
 0xbee   :  { %v374_v27 = vadd.f32 %v373_v41, %v372_v26 }
 0xbf0   :  { %v375_v28 = vrot.slane %v374_v27, 1 }
 0xbf2   :  { %v376_v29 = vadd.f32 %v375_v28, %v374_v27 }
 0xbf4   :  { %1610 = vrcp.f32 %v376_v29 }
 0xbfe   :  { %v1611_v36 = vpop.eup %1610 }
 0xbff   :  { %v1949_v25 = vmul.f32 %v1611_v36, %v1609_v21 }
 0xc01   :  { %v379_v48 = vmul.f32 %v1834_v37, %v1949_v25 }
 0xc03   :  { %v1954_v30 = vmul.f32 %v379_v48, %v1827_v24 }
 0xc05   :  { %v381_v31 = vsel %vm22_vm0, %v1954_v30, 0.0 }
 0xc06   :  { %v382_v15 = vrot.slane %v381_v31, 4 }
 0xc08   :  { %v383_v14 = vadd.f32 %v382_v15, %v381_v31 }
 0xc0a   :  { %v384_v32 = vrot.slane %v383_v14, 2 }
 0xc0c   :  { %v385_v0 = vadd.f32 %v384_v32, %v383_v14 }
 0xc0e   :  { %v386_v10 = vrot.slane %v385_v0, 1 }
 0xc10   :  { %v387_v33 = vadd.f32 %v386_v10, %v385_v0 }
 0xc12   :  { %v388_v34 = vmax.f32 %v387_v33, 1e-30 }
 0xc14   :  { %1612 = vrcp.f32 %v388_v34 }
 0xc1e   :  { %v1958_v35 = vpop.eup %1612 }
 0xc1f   :  { %v1962_v40 = vmul.f32 %v1958_v35, %v1954_v30 }
 0xc21   :  { %v391_v42 = vsel %vm22_vm0, %v1962_v40, 0.0 }
 0xc22   :  { %392 = vadd.xlane.f32.xlu1 %v391_v42 }
 0xcaf   :  { %v393_v43 = vpop.xlane.xlu1 %392 }
 0xcb0   :  { %v394_v44 = vmax.f32 %v393_v43, 1e-30 }
 0xcb2   :  { %1614 = vrcp.f32 %v394_v44 }
 0xcbc   :  { %v1966_v9 = vpop.eup %1614 }
 0xcbd   :  { %v1970_v45 = vmul.f32 %v1966_v9, %v1949_v25 }
 0xcbf   :  { %v397_v1 = vmul.f32 %v1970_v45, %v1962_v40 }
 0xcc1   :  { %v398_v46 = vsel %vm22_vm0, %v397_v1, 0.0 }
 0xcc2   :  { %v399_v47 = vrot.slane %v398_v46, 4 }
 0xcc4   :  { %v400_v50 = vadd.f32 %v399_v47, %v398_v46 }
 0xcc6   :  { %v401_v51 = vrot.slane %v400_v50, 2 }
 0xcc8   :  { %v402_v52 = vadd.f32 %v401_v51, %v400_v50 }
 0xcca   :  { %v403_v56 = vrot.slane %v402_v52, 1 }
 0xccc   :  { %v404_v57 = vadd.f32 %v403_v56, %v402_v52 }
 0xcce   :  { %v405_v58 = vmax.f32 %v404_v57, 1e-30 }
 0xcd0   :  { %1616 = vrcp.f32 %v405_v58 }
 0xcda   :  { %v1617_v59 = vpop.eup %1616 }
 0xcdb   :  { %v407_v60 = vmul.f32 %v1617_v59, %v397_v1 }
 0xcdd   :  { %v408_v61 = vsel %vm22_vm0, %v407_v60, 0.0 }
 0xcde   :  { %409 = vadd.xlane.f32.xlu0 %v408_v61 }
 0xd6b   :  { %v410_v62 = vpop.xlane.xlu0 %409 }
 0xd6c   :  { %v411_v3 = vmax.f32 %v410_v62, 1e-30 }
 0xd6e   :  { %1618 = vrcp.f32 %v411_v3 }
 0xd78   :  { %v1619_v63 = vpop.eup %1618 }
 0xd79   :  { %v413_v2 = vmul.f32 %v1619_v63, %v1949_v25 }
 0xd7b   :  { %v414_v4 = vmul.f32 %v413_v2, %v407_v60 }
 0xd7d   :  { %v415_v55 = vsel %vm22_vm0, %v414_v4, 0.0 }
 0xd7e   :  { %v416_v5 = vrot.slane %v415_v55, 4 }
 0xd80   :  { %v417_v6 = vadd.f32 %v416_v5, %v415_v55 }
 0xd82   :  { %v418_v54 = vrot.slane %v417_v6, 2 }
 0xd84   :  { %v419_v53 = vadd.f32 %v418_v54, %v417_v6 }
 0xd86   :  { %v420_v8 = vrot.slane %v419_v53, 1 }
 0xd88   :  { %v421_v11 = vadd.f32 %v420_v8, %v419_v53 }
 0xd8a   :  { %v422_v12 = vmax.f32 %v421_v11, 1e-30 }
 0xd8c   :  { %1620 = vrcp.f32 %v422_v12 }
 0xd96   :  { %v1621_v13 = vpop.eup %1620 }
 0xd97   :  { %v424_v16 = vmul.f32 %v1621_v13, %v414_v4 }
 0xd99   :  { %v425_v39 = vmul.f32 %v424_v16, %v1864_v17 }
 0xd9b   :  { %v426_v18 = vsel %vm22_vm0, %v425_v39, 0.0 }
 0xd9c   :  { %v427_v19 = vrot.slane %v426_v18, 4 }
 0xd9e   :  { %v428_v20 = vadd.f32 %v427_v19, %v426_v18 }
 0xda0   :  { %v429_v38 = vrot.slane %v428_v20, 2 }
 0xda2   :  { %v430_v21 = vadd.f32 %v429_v38, %v428_v20 }
 0xda4   :  { %v431_v22 = vrot.slane %v430_v21, 1 }
 0xda6   :  { %v432_v23 = vadd.f32 %v431_v22, %v430_v21 }
 0xda8   :  { %v433_v26 = vsub.f32 %v1864_v17, %v432_v23 }
 0xdaa   :  { %v434_v41 = vmul.f32 %v1621_v13, %v433_v26  ;;  %v1536_v13 = vadd.f32 -0.33333334, %v1949_v25 }
 0xdac   :  { %v435_v27 = vmul.f32 %v434_v41, %v414_v4  ;;  %v440_v28 = vmul.f32 %v434_v41, %v413_v2 }
 0xdae   :  { %v436_v29 = vsel %vm22_vm0, %v435_v27, 0.0 }
 0xdaf   :  { %437 = vadd.xlane.f32.xlu1 %v436_v29 }
 0xe3c   :  { %v438_v36 = vpop.xlane.xlu1 %437 }
 0xe3d   :  { %v441_v48 = vmul.f32 %v1619_v63, %v438_v36 }
 0xe3f   :  { %v442_v31 = vsub.f32 %v440_v28, %v441_v48 }
 0xe41   :  { %v443_v15 = vmul.f32 %v442_v31, %v407_v60 }
 0xe43   :  { %v444_v14 = vsel %vm22_vm0, %v443_v15, 0.0 }
 0xe44   :  { %v445_v32 = vrot.slane %v444_v14, 4 }
 0xe46   :  { %v446_v0 = vadd.f32 %v445_v32, %v444_v14 }
 0xe48   :  { %v447_v10 = vrot.slane %v446_v0, 2 }
 0xe4a   :  { %v448_v33 = vadd.f32 %v447_v10, %v446_v0  ;;  %v512_v0 = vmul.f32 0.99, %v1939_v7 }
 0xe4c   :  { %v449_v34 = vrot.slane %v448_v33, 1 }
 0xe4e   :  { %v450_v42 = vadd.f32 %v449_v34, %v448_v33 }
 0xe50   :  { %v451_v43 = vsub.f32 %v442_v31, %v450_v42 }
 0xe52   :  { %v452_v44 = vmul.f32 %v1617_v59, %v451_v43 }
 0xe54   :  { %v453_v46 = vmul.f32 %v452_v44, %v397_v1  ;;  %v458_v51 = vmul.f32 %v452_v44, %v1970_v45 }
 0xe56   :  { %v454_v47 = vsel %vm22_vm0, %v453_v46, 0.0 }
 0xe57   :  { %455 = vadd.xlane.f32.xlu0 %v454_v47 }
 0xee4   :  { %v456_v50 = vpop.xlane.xlu0 %455 }
 0xee5   :  { %v459_v52 = vmul.f32 %v1966_v9, %v456_v50  ;;  %v457_v9 = vadd.f32 %v456_v50, %v438_v36 }
 0xee7   :  { %v460_v56 = vsub.f32 %v458_v51, %v459_v52 }
 0xee9   :  { %v461_v57 = vmul.f32 %v460_v56, %v1962_v40 }
 0xeeb   :  { %v462_v58 = vsel %vm22_vm0, %v461_v57, 0.0 }
 0xeec   :  { %v463_v60 = vrot.slane %v462_v58, 4 }
 0xeee   :  { %v464_v61 = vadd.f32 %v463_v60, %v462_v58 }
 0xef0   :  { %v465_v62 = vrot.slane %v464_v61, 2 }
 0xef2   :  { %v466_v3 = vadd.f32 %v465_v62, %v464_v61 }
 0xef4   :  { %v467_v63 = vrot.slane %v466_v3, 1 }
 0xef6   :  { %v468_v59 = vadd.f32 %v467_v63, %v466_v3 }
 0xef8   :  { %v469_v1 = vsub.f32 %v460_v56, %v468_v59 }
 0xefa   :  { %v470_v2 = vmul.f32 %v1958_v35, %v469_v1 }
 0xefc   :  { %v471_v4 = vmul.f32 %v470_v2, %v1954_v30  ;;  %v486_v30 = vmul.f32 1.6666666, %v1536_v13 }
 0xefe   :  { %v472_v45 = vsel %vm22_vm0, %v471_v4, 0.0 }
 0xeff   :  { %473 = vadd.xlane.f32.xlu1 %v472_v45 }
 0xf8c   :  { %v474_v55 = vpop.xlane.xlu1 %473 }
 0xf8d   :  { %v475_v5 = vadd.f32 %v474_v55, %v457_v9 }
 0xf8f   :  { %v476_v40 = vsel %vm52_vm1, %v475_v5, 0.0 }
 0xf90   :  { %v477_v6 = vrot.slane %v476_v40, 4 }
 0xf92   :  { %v478_v54 = vadd.f32 %v477_v6, %v476_v40 }
 0xf94   :  { %v479_v53 = vrot.slane %v478_v54, 2 }
 0xf96   :  { %v480_v8 = vadd.f32 %v479_v53, %v478_v54 }
 0xf98   :  { %v481_v11 = vrot.slane %v480_v8, 1 }
 0xf9a   :  { %v482_v12 = vadd.f32 %v481_v11, %v480_v8 }
 0xf9c   :  { %v483_v35 = vmul.f32 %v482_v12, %v1949_v25 }
 0xf9e   :  { %v484_v16 = vsub.f32 %v475_v5, %v483_v35 }
 0xfa0   :  { %v487_v39 = vadd.f32 %v486_v30, %v484_v16 }
 0xfa2   :  { %v488_v18 = vmul.f32 %v487_v39, %v487_v39 }
 0xfa4   :  { %v489_v19 = vsel %vm177_vm2, %v488_v18, 0.0 }
 0xfa5   :  { %490 = vadd.xlane.f32.xlu0 %v489_v19 }
0x1032   :  { %v491_v20 = vpop.xlane.xlu0 %490 }
0x1033   :  { %v492_v38 = vrot.slane %v491_v20, 4 }
0x1035   :  { %v493_v21 = vadd.f32 %v492_v38, %v491_v20 }
0x1037   :  { %v494_v22 = vrot.slane %v493_v21, 2 }
0x1039   :  { %v495_v23 = vadd.f32 %v494_v22, %v493_v21 }
0x103b   :  { %v496_v26 = vrot.slane %v495_v23, 1 }
0x103d   :  { %v497_v41 = vadd.f32 %v496_v26, %v495_v23 }
0x103f   :  { %1551 = vpush %v497_v41 }
0x1070   :  { %s1552_s21 = spop %1551 }
0x1071   :  { %v499_v27 = vstv %s1552_s21 }
0x1072   :  { %1622 = vrsqrt.f32 %v499_v27  ;;  %vm502_vm7 = vcmp.eq.f32.partialorder %v499_v27, inf  ;;  %v505_v29 = vand.u32 2147483648, %v499_v27  ;;  %vm504_vm8 = vcmp.eq.f32.partialorder %v499_v27, 0.0 }
0x107c   :  { %v1623_v28 = vpop.eup %1622 }
0x107d   :  { %v501_v25 = vmul.f32 %v1623_v28, %v499_v27 }
0x107f   :  { %v503_v36 = vsel %vm502_vm7, %v499_v27, %v501_v25 }
0x1080   :  { %v506_v48 = vsel %vm504_vm8, %v505_v29, %v503_v36 }
0x1081   :  { %v507_v31 = vadd.f32 1e-06, %v506_v48 }
0x1083   :  { %1624 = vrcp.f32 %v507_v31 }
0x108d   :  { %v1625_v15 = vpop.eup %1624 }
0x108e   :  { %v510_v14 = vmin.f32 %v1625_v15, 1.0 }
0x1090   :  { %v511_v32 = vmul.f32 %v510_v14, %v487_v39 }
0x1092   :  { %v1996_v10 = vadd.f32 %v512_v0, %v511_v32 }
0x1094   :  { %v514_v33 = vmul.f32 0.1, %v1996_v10 }
0x1096   :  { %v2000_v34 = vsub.f32 %v1943_v49, %v514_v33 }
0x1098   :  { %v516_v42 = vsel %vm52_vm1, %v2000_v34, -inf }
0x1099   :  { %v517_v43 = vrot.slane %v516_v42, 4 }
0x109b   :  { %v518_v44 = vmax.f32 %v516_v42, %v517_v43 }
0x109d   :  { %v519_v46 = vrot.slane %v518_v44, 2 }
0x109f   :  { %v520_v47 = vmax.f32 %v518_v44, %v519_v46 }
0x10a1   :  { %v521_v50 = vrot.slane %v520_v47, 1 }
0x10a3   :  { %v522_v51 = vmax.f32 %v520_v47, %v521_v50 }
0x10a5   :  { %v523_v52 = vsub.f32 %v2000_v34, %v522_v51 }
0x10a7   :  { %v524_v56 = vmul.f32 1.442695, %v523_v52 }
0x10a9   :  { %1626 = vpow2.f32 %v524_v56 }
0x10b3   :  { %v1627_v7 = vpop.eup %1626 }
0x10b4   :  { %v526_v57 = vsel %vm52_vm1, %v1627_v7, 0.0 }
0x10b5   :  { %v527_v58 = vrot.slane %v526_v57, 4 }
0x10b7   :  { %v528_v60 = vadd.f32 %v527_v58, %v526_v57 }
0x10b9   :  { %v529_v49 = vrot.slane %v528_v60, 2 }
0x10bb   :  { %v530_v61 = vadd.f32 %v529_v49, %v528_v60 }
0x10bd   :  { %v531_v62 = vrot.slane %v530_v61, 1 }
0x10bf   :  { %v532_v3 = vadd.f32 %v531_v62, %v530_v61 }
0x10c1   :  { %1628 = vrcp.f32 %v532_v3 }
0x10cb   :  { %v1629_v63 = vpop.eup %1628 }
0x10cc   :  { %v2006_v59 = vmul.f32 %v1629_v63, %v1627_v7 }
0x10ce   :  { %v535_v1 = vmul.f32 %v1834_v37, %v2006_v59 }
0x10d0   :  { %v2011_v2 = vmul.f32 %v535_v1, %v1827_v24 }
0x10d2   :  { %v537_v4 = vsel %vm22_vm0, %v2011_v2, 0.0 }
0x10d3   :  { %v538_v45 = vrot.slane %v537_v4, 4 }
0x10d5   :  { %v539_v9 = vadd.f32 %v538_v45, %v537_v4 }
0x10d7   :  { %v540_v55 = vrot.slane %v539_v9, 2 }
0x10d9   :  { %v541_v5 = vadd.f32 %v540_v55, %v539_v9 }
0x10db   :  { %v542_v40 = vrot.slane %v541_v5, 1 }
0x10dd   :  { %v543_v6 = vadd.f32 %v542_v40, %v541_v5 }
0x10df   :  { %v544_v54 = vmax.f32 %v543_v6, 1e-30 }
0x10e1   :  { %1630 = vrcp.f32 %v544_v54 }
0x10eb   :  { %v2015_v53 = vpop.eup %1630 }
0x10ec   :  { %v2019_v8 = vmul.f32 %v2015_v53, %v2011_v2 }
0x10ee   :  { %v547_v11 = vsel %vm22_vm0, %v2019_v8, 0.0 }
0x10ef   :  { %548 = vadd.xlane.f32.xlu1 %v547_v11 }
0x117c   :  { %v549_v12 = vpop.xlane.xlu1 %548 }
0x117d   :  { %v550_v13 = vmax.f32 %v549_v12, 1e-30 }
0x117f   :  { %1632 = vrcp.f32 %v550_v13 }
0x1189   :  { %v2023_v35 = vpop.eup %1632 }
0x118a   :  { %v2027_v16 = vmul.f32 %v2023_v35, %v2006_v59 }
0x118c   :  { %v553_v30 = vmul.f32 %v2027_v16, %v2019_v8 }
0x118e   :  { %v554_v39 = vsel %vm22_vm0, %v553_v30, 0.0 }
0x118f   :  { %v555_v18 = vrot.slane %v554_v39, 4 }
0x1191   :  { %v556_v19 = vadd.f32 %v555_v18, %v554_v39 }
0x1193   :  { %v557_v20 = vrot.slane %v556_v19, 2 }
0x1195   :  { %v558_v38 = vadd.f32 %v557_v20, %v556_v19 }
0x1197   :  { %v559_v21 = vrot.slane %v558_v38, 1 }
0x1199   :  { %v560_v22 = vadd.f32 %v559_v21, %v558_v38 }
0x119b   :  { %v561_v23 = vmax.f32 %v560_v22, 1e-30 }
0x119d   :  { %1634 = vrcp.f32 %v561_v23 }
0x11a7   :  { %v1635_v26 = vpop.eup %1634 }
0x11a8   :  { %v563_v41 = vmul.f32 %v1635_v26, %v553_v30 }
0x11aa   :  { %v564_v27 = vsel %vm22_vm0, %v563_v41, 0.0 }
0x11ab   :  { %565 = vadd.xlane.f32.xlu0 %v564_v27 }
0x1238   :  { %v566_v28 = vpop.xlane.xlu0 %565 }
0x1239   :  { %v567_v25 = vmax.f32 %v566_v28, 1e-30 }
0x123b   :  { %1636 = vrcp.f32 %v567_v25 }
0x1245   :  { %v1637_v29 = vpop.eup %1636 }
0x1246   :  { %v569_v36 = vmul.f32 %v1637_v29, %v2006_v59 }
0x1248   :  { %v570_v48 = vmul.f32 %v569_v36, %v563_v41 }
0x124a   :  { %v571_v31 = vsel %vm22_vm0, %v570_v48, 0.0 }
0x124b   :  { %v572_v15 = vrot.slane %v571_v31, 4 }
0x124d   :  { %v573_v14 = vadd.f32 %v572_v15, %v571_v31 }
0x124f   :  { %v574_v32 = vrot.slane %v573_v14, 2 }
0x1251   :  { %v575_v0 = vadd.f32 %v574_v32, %v573_v14 }
0x1253   :  { %v576_v33 = vrot.slane %v575_v0, 1 }
0x1255   :  { %v577_v42 = vadd.f32 %v576_v33, %v575_v0 }
0x1257   :  { %v578_v43 = vmax.f32 %v577_v42, 1e-30 }
0x1259   :  { %1638 = vrcp.f32 %v578_v43 }
0x1263   :  { %v1639_v44 = vpop.eup %1638 }
0x1264   :  { %v580_v46 = vmul.f32 %v1639_v44, %v570_v48 }
0x1266   :  { %v581_v47 = vmul.f32 %v580_v46, %v1864_v17 }
0x1268   :  { %v582_v50 = vsel %vm22_vm0, %v581_v47, 0.0 }
0x1269   :  { %v583_v51 = vrot.slane %v582_v50, 4 }
0x126b   :  { %v584_v52 = vadd.f32 %v583_v51, %v582_v50 }
0x126d   :  { %v585_v56 = vrot.slane %v584_v52, 2 }
0x126f   :  { %v586_v7 = vadd.f32 %v585_v56, %v584_v52 }
0x1271   :  { %v587_v57 = vrot.slane %v586_v7, 1 }
0x1273   :  { %v588_v58 = vadd.f32 %v587_v57, %v586_v7 }
0x1275   :  { %v589_v60 = vsub.f32 %v1864_v17, %v588_v58 }
0x1277   :  { %v590_v49 = vmul.f32 %v1639_v44, %v589_v60  ;;  %v1537_v44 = vadd.f32 -0.33333334, %v2006_v59 }
0x1279   :  { %v591_v61 = vmul.f32 %v590_v49, %v570_v48  ;;  %v596_v62 = vmul.f32 %v590_v49, %v569_v36 }
0x127b   :  { %v592_v3 = vsel %vm22_vm0, %v591_v61, 0.0 }
0x127c   :  { %593 = vadd.xlane.f32.xlu1 %v592_v3 }
0x1309   :  { %v594_v63 = vpop.xlane.xlu1 %593 }
0x130a   :  { %v597_v1 = vmul.f32 %v1637_v29, %v594_v63 }
0x130c   :  { %v598_v4 = vsub.f32 %v596_v62, %v597_v1 }
0x130e   :  { %v599_v45 = vmul.f32 %v598_v4, %v563_v41 }
0x1310   :  { %v600_v9 = vsel %vm22_vm0, %v599_v45, 0.0 }
0x1311   :  { %v601_v55 = vrot.slane %v600_v9, 4 }
0x1313   :  { %v602_v5 = vadd.f32 %v601_v55, %v600_v9 }
0x1315   :  { %v603_v40 = vrot.slane %v602_v5, 2 }
0x1317   :  { %v604_v6 = vadd.f32 %v603_v40, %v602_v5  ;;  %v668_v5 = vmul.f32 0.99, %v1996_v10 }
0x1319   :  { %v605_v54 = vrot.slane %v604_v6, 1 }
0x131b   :  { %v606_v11 = vadd.f32 %v605_v54, %v604_v6 }
0x131d   :  { %v607_v12 = vsub.f32 %v598_v4, %v606_v11 }
0x131f   :  { %v608_v13 = vmul.f32 %v1635_v26, %v607_v12 }
0x1321   :  { %v609_v39 = vmul.f32 %v608_v13, %v553_v30  ;;  %v614_v20 = vmul.f32 %v608_v13, %v2027_v16 }
0x1323   :  { %v610_v18 = vsel %vm22_vm0, %v609_v39, 0.0 }
0x1324   :  { %611 = vadd.xlane.f32.xlu0 %v610_v18 }
0x13b1   :  { %v612_v19 = vpop.xlane.xlu0 %611 }
0x13b2   :  { %v615_v38 = vmul.f32 %v2023_v35, %v612_v19  ;;  %v613_v35 = vadd.f32 %v612_v19, %v594_v63 }
0x13b4   :  { %v616_v21 = vsub.f32 %v614_v20, %v615_v38 }
0x13b6   :  { %v617_v22 = vmul.f32 %v616_v21, %v2019_v8 }
0x13b8   :  { %v618_v23 = vsel %vm22_vm0, %v617_v22, 0.0 }
0x13b9   :  { %v619_v41 = vrot.slane %v618_v23, 4 }
0x13bb   :  { %v620_v27 = vadd.f32 %v619_v41, %v618_v23 }
0x13bd   :  { %v621_v28 = vrot.slane %v620_v27, 2 }
0x13bf   :  { %v622_v25 = vadd.f32 %v621_v28, %v620_v27 }
0x13c1   :  { %v623_v29 = vrot.slane %v622_v25, 1 }
0x13c3   :  { %v624_v26 = vadd.f32 %v623_v29, %v622_v25 }
0x13c5   :  { %v625_v30 = vsub.f32 %v616_v21, %v624_v26 }
0x13c7   :  { %v626_v36 = vmul.f32 %v2015_v53, %v625_v30 }
0x13c9   :  { %v627_v48 = vmul.f32 %v626_v36, %v2011_v2  ;;  %v642_v2 = vmul.f32 1.6666666, %v1537_v44 }
0x13cb   :  { %v628_v16 = vsel %vm22_vm0, %v627_v48, 0.0 }
0x13cc   :  { %629 = vadd.xlane.f32.xlu1 %v628_v16 }
0x1459   :  { %v630_v31 = vpop.xlane.xlu1 %629 }
0x145a   :  { %v631_v15 = vadd.f32 %v630_v31, %v613_v35 }
0x145c   :  { %v632_v8 = vsel %vm52_vm1, %v631_v15, 0.0 }
0x145d   :  { %v633_v14 = vrot.slane %v632_v8, 4 }
0x145f   :  { %v634_v32 = vadd.f32 %v633_v14, %v632_v8 }
0x1461   :  { %v635_v0 = vrot.slane %v634_v32, 2 }
0x1463   :  { %v636_v33 = vadd.f32 %v635_v0, %v634_v32 }
0x1465   :  { %v637_v42 = vrot.slane %v636_v33, 1 }
0x1467   :  { %v638_v43 = vadd.f32 %v637_v42, %v636_v33 }
0x1469   :  { %v639_v53 = vmul.f32 %v638_v43, %v2006_v59 }
0x146b   :  { %v640_v46 = vsub.f32 %v631_v15, %v639_v53 }
0x146d   :  { %v643_v47 = vadd.f32 %v642_v2, %v640_v46 }
0x146f   :  { %v644_v50 = vmul.f32 %v643_v47, %v643_v47 }
0x1471   :  { %v645_v51 = vsel %vm177_vm2, %v644_v50, 0.0 }
0x1472   :  { %646 = vadd.xlane.f32.xlu0 %v645_v51 }
0x14ff   :  { %v647_v52 = vpop.xlane.xlu0 %646 }
0x1500   :  { %v648_v56 = vrot.slane %v647_v52, 4 }
0x1502   :  { %v649_v7 = vadd.f32 %v648_v56, %v647_v52 }
0x1504   :  { %v650_v57 = vrot.slane %v649_v7, 2 }
0x1506   :  { %v651_v58 = vadd.f32 %v650_v57, %v649_v7 }
0x1508   :  { %v652_v60 = vrot.slane %v651_v58, 1 }
0x150a   :  { %v653_v49 = vadd.f32 %v652_v60, %v651_v58 }
0x150c   :  { %1553 = vpush %v653_v49 }
0x153d   :  { %s1554_s22 = spop %1553 }
0x153e   :  { %v655_v61 = vstv %s1554_s22 }
0x153f   :  { %1640 = vrsqrt.f32 %v655_v61  ;;  %vm658_vm9 = vcmp.eq.f32.partialorder %v655_v61, inf  ;;  %v661_v3 = vand.u32 2147483648, %v655_v61  ;;  %vm660_vm10 = vcmp.eq.f32.partialorder %v655_v61, 0.0 }
0x1549   :  { %v1641_v62 = vpop.eup %1640 }
0x154a   :  { %v657_v59 = vmul.f32 %v1641_v62, %v655_v61 }
0x154c   :  { %v659_v63 = vsel %vm658_vm9, %v655_v61, %v657_v59 }
0x154d   :  { %v662_v1 = vsel %vm660_vm10, %v661_v3, %v659_v63 }
0x154e   :  { %v663_v4 = vadd.f32 1e-06, %v662_v1 }
0x1550   :  { %1642 = vrcp.f32 %v663_v4 }
0x155a   :  { %v1643_v45 = vpop.eup %1642 }
0x155b   :  { %v666_v9 = vmin.f32 %v1643_v45, 1.0 }
0x155d   :  { %v667_v55 = vmul.f32 %v666_v9, %v643_v47 }
0x155f   :  { %v2053_v40 = vadd.f32 %v668_v5, %v667_v55 }
0x1561   :  { %v670_v6 = vmul.f32 0.1, %v2053_v40 }
0x1563   :  { %v2057_v54 = vsub.f32 %v2000_v34, %v670_v6 }
0x1565   :  { %v672_v11 = vsel %vm52_vm1, %v2057_v54, -inf }
0x1566   :  { %v673_v12 = vrot.slane %v672_v11, 4 }
0x1568   :  { %v674_v13 = vmax.f32 %v672_v11, %v673_v12 }
0x156a   :  { %v675_v39 = vrot.slane %v674_v13, 2 }
0x156c   :  { %v676_v18 = vmax.f32 %v674_v13, %v675_v39 }
0x156e   :  { %v677_v19 = vrot.slane %v676_v18, 1 }
0x1570   :  { %v678_v20 = vmax.f32 %v676_v18, %v677_v19 }
0x1572   :  { %v679_v38 = vsub.f32 %v2057_v54, %v678_v20 }
0x1574   :  { %v680_v21 = vmul.f32 1.442695, %v679_v38 }
0x1576   :  { %1644 = vpow2.f32 %v680_v21 }
0x1580   :  { %v1645_v10 = vpop.eup %1644 }
0x1581   :  { %v682_v22 = vsel %vm52_vm1, %v1645_v10, 0.0 }
0x1582   :  { %v683_v23 = vrot.slane %v682_v22, 4 }
0x1584   :  { %v684_v41 = vadd.f32 %v683_v23, %v682_v22 }
0x1586   :  { %v685_v34 = vrot.slane %v684_v41, 2 }
0x1588   :  { %v686_v27 = vadd.f32 %v685_v34, %v684_v41 }
0x158a   :  { %v687_v28 = vrot.slane %v686_v27, 1 }
0x158c   :  { %v688_v25 = vadd.f32 %v687_v28, %v686_v27 }
0x158e   :  { %1646 = vrcp.f32 %v688_v25 }
0x1598   :  { %v1647_v29 = vpop.eup %1646 }
0x1599   :  { %v2063_v26 = vmul.f32 %v1647_v29, %v1645_v10 }
0x159b   :  { %v691_v30 = vmul.f32 %v1834_v37, %v2063_v26 }
0x159d   :  { %v2068_v36 = vmul.f32 %v691_v30, %v1827_v24 }
0x159f   :  { %v693_v48 = vsel %vm22_vm0, %v2068_v36, 0.0 }
0x15a0   :  { %v694_v16 = vrot.slane %v693_v48, 4 }
0x15a2   :  { %v695_v35 = vadd.f32 %v694_v16, %v693_v48 }
0x15a4   :  { %v696_v31 = vrot.slane %v695_v35, 2 }
0x15a6   :  { %v697_v15 = vadd.f32 %v696_v31, %v695_v35 }
0x15a8   :  { %v698_v8 = vrot.slane %v697_v15, 1 }
0x15aa   :  { %v699_v14 = vadd.f32 %v698_v8, %v697_v15 }
0x15ac   :  { %v700_v32 = vmax.f32 %v699_v14, 1e-30 }
0x15ae   :  { %1648 = vrcp.f32 %v700_v32 }
0x15b8   :  { %v2072_v0 = vpop.eup %1648 }
0x15b9   :  { %v2076_v33 = vmul.f32 %v2072_v0, %v2068_v36 }
0x15bb   :  { %v703_v42 = vsel %vm22_vm0, %v2076_v33, 0.0 }
0x15bc   :  { %704 = vadd.xlane.f32.xlu1 %v703_v42 }
0x1649   :  { %v705_v43 = vpop.xlane.xlu1 %704 }
0x164a   :  { %v706_v44 = vmax.f32 %v705_v43, 1e-30 }
0x164c   :  { %1650 = vrcp.f32 %v706_v44 }
0x1656   :  { %v2080_v53 = vpop.eup %1650 }
0x1657   :  { %v2084_v46 = vmul.f32 %v2080_v53, %v2063_v26 }
0x1659   :  { %v709_v2 = vmul.f32 %v2084_v46, %v2076_v33 }
0x165b   :  { %v710_v47 = vsel %vm22_vm0, %v709_v2, 0.0 }
0x165c   :  { %v711_v50 = vrot.slane %v710_v47, 4 }
0x165e   :  { %v712_v51 = vadd.f32 %v711_v50, %v710_v47 }
0x1660   :  { %v713_v52 = vrot.slane %v712_v51, 2 }
0x1662   :  { %v714_v56 = vadd.f32 %v713_v52, %v712_v51 }
0x1664   :  { %v715_v7 = vrot.slane %v714_v56, 1 }
0x1666   :  { %v716_v57 = vadd.f32 %v715_v7, %v714_v56 }
0x1668   :  { %v717_v58 = vmax.f32 %v716_v57, 1e-30 }
0x166a   :  { %1652 = vrcp.f32 %v717_v58 }
0x1674   :  { %v1653_v60 = vpop.eup %1652 }
0x1675   :  { %v719_v49 = vmul.f32 %v1653_v60, %v709_v2 }
0x1677   :  { %v720_v61 = vsel %vm22_vm0, %v719_v49, 0.0 }
0x1678   :  { %721 = vadd.xlane.f32.xlu0 %v720_v61 }
0x1705   :  { %v722_v62 = vpop.xlane.xlu0 %721 }
0x1706   :  { %v723_v59 = vmax.f32 %v722_v62, 1e-30 }
0x1708   :  { %1654 = vrcp.f32 %v723_v59 }
0x1712   :  { %v1655_v3 = vpop.eup %1654 }
0x1713   :  { %v725_v63 = vmul.f32 %v1655_v3, %v2063_v26 }
0x1715   :  { %v726_v1 = vmul.f32 %v725_v63, %v719_v49 }
0x1717   :  { %v727_v4 = vsel %vm22_vm0, %v726_v1, 0.0 }
0x1718   :  { %v728_v45 = vrot.slane %v727_v4, 4 }
0x171a   :  { %v729_v9 = vadd.f32 %v728_v45, %v727_v4 }
0x171c   :  { %v730_v55 = vrot.slane %v729_v9, 2 }
0x171e   :  { %v731_v5 = vadd.f32 %v730_v55, %v729_v9 }
0x1720   :  { %v732_v6 = vrot.slane %v731_v5, 1 }
0x1722   :  { %v733_v11 = vadd.f32 %v732_v6, %v731_v5 }
0x1724   :  { %v734_v12 = vmax.f32 %v733_v11, 1e-30 }
0x1726   :  { %1656 = vrcp.f32 %v734_v12 }
0x1730   :  { %v1657_v13 = vpop.eup %1656 }
0x1731   :  { %v736_v39 = vmul.f32 %v1657_v13, %v726_v1 }
0x1733   :  { %v737_v18 = vmul.f32 %v736_v39, %v1864_v17 }
0x1735   :  { %v738_v19 = vsel %vm22_vm0, %v737_v18, 0.0 }
0x1736   :  { %v739_v20 = vrot.slane %v738_v19, 4 }
0x1738   :  { %v740_v38 = vadd.f32 %v739_v20, %v738_v19 }
0x173a   :  { %v741_v21 = vrot.slane %v740_v38, 2 }
0x173c   :  { %v742_v10 = vadd.f32 %v741_v21, %v740_v38 }
0x173e   :  { %v743_v22 = vrot.slane %v742_v10, 1 }
0x1740   :  { %v744_v23 = vadd.f32 %v743_v22, %v742_v10 }
0x1742   :  { %v745_v41 = vsub.f32 %v1864_v17, %v744_v23 }
0x1744   :  { %v746_v34 = vmul.f32 %v1657_v13, %v745_v41  ;;  %v1538_v13 = vadd.f32 -0.33333334, %v2063_v26 }
0x1746   :  { %v747_v27 = vmul.f32 %v746_v34, %v726_v1  ;;  %v752_v28 = vmul.f32 %v746_v34, %v725_v63 }
0x1748   :  { %v748_v25 = vsel %vm22_vm0, %v747_v27, 0.0 }
0x1749   :  { %749 = vadd.xlane.f32.xlu1 %v748_v25 }
0x17d6   :  { %v750_v29 = vpop.xlane.xlu1 %749 }
0x17d7   :  { %v753_v30 = vmul.f32 %v1655_v3, %v750_v29 }
0x17d9   :  { %v754_v48 = vsub.f32 %v752_v28, %v753_v30 }
0x17db   :  { %v755_v16 = vmul.f32 %v754_v48, %v719_v49 }
0x17dd   :  { %v756_v35 = vsel %vm22_vm0, %v755_v16, 0.0 }
0x17de   :  { %v757_v31 = vrot.slane %v756_v35, 4 }
0x17e0   :  { %v758_v15 = vadd.f32 %v757_v31, %v756_v35 }
0x17e2   :  { %v759_v8 = vrot.slane %v758_v15, 2 }
0x17e4   :  { %v760_v14 = vadd.f32 %v759_v8, %v758_v15  ;;  %v824_v15 = vmul.f32 0.99, %v2053_v40 }
0x17e6   :  { %v761_v32 = vrot.slane %v760_v14, 1 }
0x17e8   :  { %v762_v42 = vadd.f32 %v761_v32, %v760_v14 }
0x17ea   :  { %v763_v43 = vsub.f32 %v754_v48, %v762_v42 }
0x17ec   :  { %v764_v44 = vmul.f32 %v1653_v60, %v763_v43 }
0x17ee   :  { %v765_v47 = vmul.f32 %v764_v44, %v709_v2  ;;  %v770_v52 = vmul.f32 %v764_v44, %v2084_v46 }
0x17f0   :  { %v766_v50 = vsel %vm22_vm0, %v765_v47, 0.0 }
0x17f1   :  { %767 = vadd.xlane.f32.xlu0 %v766_v50 }
0x187e   :  { %v768_v51 = vpop.xlane.xlu0 %767 }
0x187f   :  { %v771_v56 = vmul.f32 %v2080_v53, %v768_v51  ;;  %v769_v53 = vadd.f32 %v768_v51, %v750_v29 }
0x1881   :  { %v772_v7 = vsub.f32 %v770_v52, %v771_v56 }
0x1883   :  { %v773_v57 = vmul.f32 %v772_v7, %v2076_v33 }
0x1885   :  { %v774_v58 = vsel %vm22_vm0, %v773_v57, 0.0 }
0x1886   :  { %v775_v49 = vrot.slane %v774_v58, 4 }
0x1888   :  { %v776_v61 = vadd.f32 %v775_v49, %v774_v58 }
0x188a   :  { %v777_v62 = vrot.slane %v776_v61, 2 }
0x188c   :  { %v778_v59 = vadd.f32 %v777_v62, %v776_v61 }
0x188e   :  { %v779_v3 = vrot.slane %v778_v59, 1 }
0x1890   :  { %v780_v60 = vadd.f32 %v779_v3, %v778_v59 }
0x1892   :  { %v781_v2 = vsub.f32 %v772_v7, %v780_v60 }
0x1894   :  { %v782_v63 = vmul.f32 %v2072_v0, %v781_v2 }
0x1896   :  { %v783_v1 = vmul.f32 %v782_v63, %v2068_v36  ;;  %v798_v36 = vmul.f32 1.6666666, %v1538_v13 }
0x1898   :  { %v784_v46 = vsel %vm22_vm0, %v783_v1, 0.0 }
0x1899   :  { %785 = vadd.xlane.f32.xlu1 %v784_v46 }
0x1926   :  { %v786_v4 = vpop.xlane.xlu1 %785 }
0x1927   :  { %v787_v45 = vadd.f32 %v786_v4, %v769_v53 }
0x1929   :  { %v788_v33 = vsel %vm52_vm1, %v787_v45, 0.0 }
0x192a   :  { %v789_v9 = vrot.slane %v788_v33, 4 }
0x192c   :  { %v790_v55 = vadd.f32 %v789_v9, %v788_v33 }
0x192e   :  { %v791_v5 = vrot.slane %v790_v55, 2 }
0x1930   :  { %v792_v6 = vadd.f32 %v791_v5, %v790_v55 }
0x1932   :  { %v793_v11 = vrot.slane %v792_v6, 1 }
0x1934   :  { %v794_v12 = vadd.f32 %v793_v11, %v792_v6 }
0x1936   :  { %v795_v0 = vmul.f32 %v794_v12, %v2063_v26 }
0x1938   :  { %v796_v39 = vsub.f32 %v787_v45, %v795_v0 }
0x193a   :  { %v799_v18 = vadd.f32 %v798_v36, %v796_v39 }
0x193c   :  { %v800_v19 = vmul.f32 %v799_v18, %v799_v18 }
0x193e   :  { %v801_v20 = vsel %vm177_vm2, %v800_v19, 0.0 }
0x193f   :  { %802 = vadd.xlane.f32.xlu0 %v801_v20 }
0x19cc   :  { %v803_v38 = vpop.xlane.xlu0 %802 }
0x19cd   :  { %v804_v21 = vrot.slane %v803_v38, 4 }
0x19cf   :  { %v805_v10 = vadd.f32 %v804_v21, %v803_v38 }
0x19d1   :  { %v806_v22 = vrot.slane %v805_v10, 2 }
0x19d3   :  { %v807_v23 = vadd.f32 %v806_v22, %v805_v10 }
0x19d5   :  { %v808_v41 = vrot.slane %v807_v23, 1 }
0x19d7   :  { %v809_v34 = vadd.f32 %v808_v41, %v807_v23 }
0x19d9   :  { %1555 = vpush %v809_v34 }
0x1a0a   :  { %s1556_s23 = spop %1555 }
0x1a0b   :  { %v811_v27 = vstv %s1556_s23 }
0x1a0c   :  { %1658 = vrsqrt.f32 %v811_v27  ;;  %vm814_vm11 = vcmp.eq.f32.partialorder %v811_v27, inf  ;;  %v817_v25 = vand.u32 2147483648, %v811_v27  ;;  %vm816_vm12 = vcmp.eq.f32.partialorder %v811_v27, 0.0 }
0x1a16   :  { %v1659_v28 = vpop.eup %1658 }
0x1a17   :  { %v813_v26 = vmul.f32 %v1659_v28, %v811_v27 }
0x1a19   :  { %v815_v29 = vsel %vm814_vm11, %v811_v27, %v813_v26 }
0x1a1a   :  { %v818_v30 = vsel %vm816_vm12, %v817_v25, %v815_v29 }
0x1a1b   :  { %v819_v48 = vadd.f32 1e-06, %v818_v30 }
0x1a1d   :  { %1660 = vrcp.f32 %v819_v48 }
0x1a27   :  { %v1661_v16 = vpop.eup %1660 }
0x1a28   :  { %v822_v35 = vmin.f32 %v1661_v16, 1.0 }
0x1a2a   :  { %v823_v31 = vmul.f32 %v822_v35, %v799_v18 }
0x1a2c   :  { %v2110_v8 = vadd.f32 %v824_v15, %v823_v31 }
0x1a2e   :  { %v826_v14 = vmul.f32 0.1, %v2110_v8 }
0x1a30   :  { %v2114_v32 = vsub.f32 %v2057_v54, %v826_v14 }
0x1a32   :  { %v828_v42 = vsel %vm52_vm1, %v2114_v32, -inf }
0x1a33   :  { %v829_v43 = vrot.slane %v828_v42, 4 }
0x1a35   :  { %v830_v44 = vmax.f32 %v828_v42, %v829_v43 }
0x1a37   :  { %v831_v47 = vrot.slane %v830_v44, 2 }
0x1a39   :  { %v832_v50 = vmax.f32 %v830_v44, %v831_v47 }
0x1a3b   :  { %v833_v51 = vrot.slane %v832_v50, 1 }
0x1a3d   :  { %v834_v52 = vmax.f32 %v832_v50, %v833_v51 }
0x1a3f   :  { %v835_v56 = vsub.f32 %v2114_v32, %v834_v52 }
0x1a41   :  { %v836_v7 = vmul.f32 1.442695, %v835_v56 }
0x1a43   :  { %1662 = vpow2.f32 %v836_v7 }
0x1a4d   :  { %v1663_v40 = vpop.eup %1662 }
0x1a4e   :  { %v838_v57 = vsel %vm52_vm1, %v1663_v40, 0.0 }
0x1a4f   :  { %v839_v58 = vrot.slane %v838_v57, 4 }
0x1a51   :  { %v840_v49 = vadd.f32 %v839_v58, %v838_v57 }
0x1a53   :  { %v841_v54 = vrot.slane %v840_v49, 2 }
0x1a55   :  { %v842_v61 = vadd.f32 %v841_v54, %v840_v49 }
0x1a57   :  { %v843_v62 = vrot.slane %v842_v61, 1 }
0x1a59   :  { %v844_v59 = vadd.f32 %v843_v62, %v842_v61 }
0x1a5b   :  { %1664 = vrcp.f32 %v844_v59 }
0x1a65   :  { %v1665_v3 = vpop.eup %1664 }
0x1a66   :  { %v2120_v60 = vmul.f32 %v1665_v3, %v1663_v40 }
0x1a68   :  { %v847_v2 = vmul.f32 %v1834_v37, %v2120_v60 }
0x1a6a   :  { %v2125_v63 = vmul.f32 %v847_v2, %v1827_v24 }
0x1a6c   :  { %v849_v1 = vsel %vm22_vm0, %v2125_v63, 0.0 }
0x1a6d   :  { %v850_v46 = vrot.slane %v849_v1, 4 }
0x1a6f   :  { %v851_v53 = vadd.f32 %v850_v46, %v849_v1 }
0x1a71   :  { %v852_v4 = vrot.slane %v851_v53, 2 }
0x1a73   :  { %v853_v45 = vadd.f32 %v852_v4, %v851_v53 }
0x1a75   :  { %v854_v33 = vrot.slane %v853_v45, 1 }
0x1a77   :  { %v855_v9 = vadd.f32 %v854_v33, %v853_v45 }
0x1a79   :  { %v856_v55 = vmax.f32 %v855_v9, 1e-30 }
0x1a7b   :  { %1666 = vrcp.f32 %v856_v55 }
0x1a85   :  { %v2129_v5 = vpop.eup %1666 }
0x1a86   :  { %v2133_v6 = vmul.f32 %v2129_v5, %v2125_v63 }
0x1a88   :  { %v859_v11 = vsel %vm22_vm0, %v2133_v6, 0.0 }
0x1a89   :  { %860 = vadd.xlane.f32.xlu1 %v859_v11 }
0x1b16   :  { %v861_v12 = vpop.xlane.xlu1 %860 }
0x1b17   :  { %v862_v13 = vmax.f32 %v861_v12, 1e-30 }
0x1b19   :  { %1668 = vrcp.f32 %v862_v13 }
0x1b23   :  { %v2137_v0 = vpop.eup %1668 }
0x1b24   :  { %v2141_v39 = vmul.f32 %v2137_v0, %v2120_v60 }
0x1b26   :  { %v865_v36 = vmul.f32 %v2141_v39, %v2133_v6 }
0x1b28   :  { %v866_v18 = vsel %vm22_vm0, %v865_v36, 0.0 }
0x1b29   :  { %v867_v19 = vrot.slane %v866_v18, 4 }
0x1b2b   :  { %v868_v20 = vadd.f32 %v867_v19, %v866_v18 }
0x1b2d   :  { %v869_v38 = vrot.slane %v868_v20, 2 }
0x1b2f   :  { %v870_v21 = vadd.f32 %v869_v38, %v868_v20 }
0x1b31   :  { %v871_v10 = vrot.slane %v870_v21, 1 }
0x1b33   :  { %v872_v22 = vadd.f32 %v871_v10, %v870_v21 }
0x1b35   :  { %v873_v23 = vmax.f32 %v872_v22, 1e-30 }
0x1b37   :  { %1670 = vrcp.f32 %v873_v23 }
0x1b41   :  { %v1671_v41 = vpop.eup %1670 }
0x1b42   :  { %v875_v34 = vmul.f32 %v1671_v41, %v865_v36 }
0x1b44   :  { %v876_v27 = vsel %vm22_vm0, %v875_v34, 0.0 }
0x1b45   :  { %877 = vadd.xlane.f32.xlu0 %v876_v27 }
0x1bd2   :  { %v878_v28 = vpop.xlane.xlu0 %877 }
0x1bd3   :  { %v879_v26 = vmax.f32 %v878_v28, 1e-30 }
0x1bd5   :  { %1672 = vrcp.f32 %v879_v26 }
0x1bdf   :  { %v1673_v25 = vpop.eup %1672 }
0x1be0   :  { %v881_v29 = vmul.f32 %v1673_v25, %v2120_v60 }
0x1be2   :  { %v882_v30 = vmul.f32 %v881_v29, %v875_v34 }
0x1be4   :  { %v883_v48 = vsel %vm22_vm0, %v882_v30, 0.0 }
0x1be5   :  { %v884_v16 = vrot.slane %v883_v48, 4 }
0x1be7   :  { %v885_v35 = vadd.f32 %v884_v16, %v883_v48 }
0x1be9   :  { %v886_v31 = vrot.slane %v885_v35, 2 }
0x1beb   :  { %v887_v15 = vadd.f32 %v886_v31, %v885_v35 }
0x1bed   :  { %v888_v14 = vrot.slane %v887_v15, 1 }
0x1bef   :  { %v889_v42 = vadd.f32 %v888_v14, %v887_v15 }
0x1bf1   :  { %v890_v43 = vmax.f32 %v889_v42, 1e-30 }
0x1bf3   :  { %1674 = vrcp.f32 %v890_v43 }
0x1bfd   :  { %v1675_v44 = vpop.eup %1674 }
0x1bfe   :  { %v892_v47 = vmul.f32 %v1675_v44, %v882_v30 }
0x1c00   :  { %v893_v50 = vmul.f32 %v892_v47, %v1864_v17 }
0x1c02   :  { %v894_v51 = vsel %vm22_vm0, %v893_v50, 0.0 }
0x1c03   :  { %v895_v52 = vrot.slane %v894_v51, 4 }
0x1c05   :  { %v896_v56 = vadd.f32 %v895_v52, %v894_v51 }
0x1c07   :  { %v897_v7 = vrot.slane %v896_v56, 2 }
0x1c09   :  { %v898_v40 = vadd.f32 %v897_v7, %v896_v56 }
0x1c0b   :  { %v899_v57 = vrot.slane %v898_v40, 1 }
0x1c0d   :  { %v900_v58 = vadd.f32 %v899_v57, %v898_v40 }
0x1c0f   :  { %v901_v49 = vsub.f32 %v1864_v17, %v900_v58 }
0x1c11   :  { %v902_v54 = vmul.f32 %v1675_v44, %v901_v49  ;;  %v1539_v44 = vadd.f32 -0.33333334, %v2120_v60 }
0x1c13   :  { %v903_v61 = vmul.f32 %v902_v54, %v882_v30  ;;  %v908_v62 = vmul.f32 %v902_v54, %v881_v29 }
0x1c15   :  { %v904_v59 = vsel %vm22_vm0, %v903_v61, 0.0 }
0x1c16   :  { %905 = vadd.xlane.f32.xlu1 %v904_v59 }
0x1ca3   :  { %v906_v3 = vpop.xlane.xlu1 %905 }
0x1ca4   :  { %v909_v2 = vmul.f32 %v1673_v25, %v906_v3 }
0x1ca6   :  { %v910_v1 = vsub.f32 %v908_v62, %v909_v2 }
0x1ca8   :  { %v911_v46 = vmul.f32 %v910_v1, %v875_v34 }
0x1caa   :  { %v912_v53 = vsel %vm22_vm0, %v911_v46, 0.0 }
0x1cab   :  { %v913_v4 = vrot.slane %v912_v53, 4 }
0x1cad   :  { %v914_v45 = vadd.f32 %v913_v4, %v912_v53 }
0x1caf   :  { %v915_v33 = vrot.slane %v914_v45, 2 }
0x1cb1   :  { %v916_v9 = vadd.f32 %v915_v33, %v914_v45  ;;  %v980_v45 = vmul.f32 0.99, %v2110_v8 }
0x1cb3   :  { %v917_v55 = vrot.slane %v916_v9, 1 }
0x1cb5   :  { %v918_v11 = vadd.f32 %v917_v55, %v916_v9 }
0x1cb7   :  { %v919_v12 = vsub.f32 %v910_v1, %v918_v11 }
0x1cb9   :  { %v920_v13 = vmul.f32 %v1671_v41, %v919_v12 }
0x1cbb   :  { %v921_v18 = vmul.f32 %v920_v13, %v865_v36  ;;  %v926_v38 = vmul.f32 %v920_v13, %v2141_v39 }
0x1cbd   :  { %v922_v19 = vsel %vm22_vm0, %v921_v18, 0.0 }
0x1cbe   :  { %923 = vadd.xlane.f32.xlu0 %v922_v19 }
0x1d4b   :  { %v924_v20 = vpop.xlane.xlu0 %923 }
0x1d4c   :  { %v927_v21 = vmul.f32 %v2137_v0, %v924_v20  ;;  %v925_v0 = vadd.f32 %v924_v20, %v906_v3 }
0x1d4e   :  { %v928_v10 = vsub.f32 %v926_v38, %v927_v21 }
0x1d50   :  { %v929_v22 = vmul.f32 %v928_v10, %v2133_v6 }
0x1d52   :  { %v930_v23 = vsel %vm22_vm0, %v929_v22, 0.0 }
0x1d53   :  { %v931_v34 = vrot.slane %v930_v23, 4 }
0x1d55   :  { %v932_v27 = vadd.f32 %v931_v34, %v930_v23 }
0x1d57   :  { %v933_v28 = vrot.slane %v932_v27, 2 }
0x1d59   :  { %v934_v26 = vadd.f32 %v933_v28, %v932_v27 }
0x1d5b   :  { %v935_v25 = vrot.slane %v934_v26, 1 }
0x1d5d   :  { %v936_v41 = vadd.f32 %v935_v25, %v934_v26 }
0x1d5f   :  { %v937_v36 = vsub.f32 %v928_v10, %v936_v41 }
0x1d61   :  { %v938_v29 = vmul.f32 %v2129_v5, %v937_v36 }
0x1d63   :  { %v939_v30 = vmul.f32 %v938_v29, %v2125_v63  ;;  %v954_v63 = vmul.f32 1.6666666, %v1539_v44 }
0x1d65   :  { %v940_v39 = vsel %vm22_vm0, %v939_v30, 0.0 }
0x1d66   :  { %941 = vadd.xlane.f32.xlu1 %v940_v39 }
0x1df3   :  { %v942_v48 = vpop.xlane.xlu1 %941 }
0x1df4   :  { %v943_v16 = vadd.f32 %v942_v48, %v925_v0 }
0x1df6   :  { %v944_v6 = vsel %vm52_vm1, %v943_v16, 0.0 }
0x1df7   :  { %v945_v35 = vrot.slane %v944_v6, 4 }
0x1df9   :  { %v946_v31 = vadd.f32 %v945_v35, %v944_v6 }
0x1dfb   :  { %v947_v15 = vrot.slane %v946_v31, 2 }
0x1dfd   :  { %v948_v14 = vadd.f32 %v947_v15, %v946_v31 }
0x1dff   :  { %v949_v42 = vrot.slane %v948_v14, 1 }
0x1e01   :  { %v950_v43 = vadd.f32 %v949_v42, %v948_v14 }
0x1e03   :  { %v951_v5 = vmul.f32 %v950_v43, %v2120_v60 }
0x1e05   :  { %v952_v47 = vsub.f32 %v943_v16, %v951_v5 }
0x1e07   :  { %v955_v50 = vadd.f32 %v954_v63, %v952_v47 }
0x1e09   :  { %v956_v51 = vmul.f32 %v955_v50, %v955_v50 }
0x1e0b   :  { %v957_v52 = vsel %vm177_vm2, %v956_v51, 0.0 }
0x1e0c   :  { %958 = vadd.xlane.f32.xlu0 %v957_v52 }
0x1e99   :  { %v959_v56 = vpop.xlane.xlu0 %958 }
0x1e9a   :  { %v960_v7 = vrot.slane %v959_v56, 4 }
0x1e9c   :  { %v961_v40 = vadd.f32 %v960_v7, %v959_v56 }
0x1e9e   :  { %v962_v57 = vrot.slane %v961_v40, 2 }
0x1ea0   :  { %v963_v58 = vadd.f32 %v962_v57, %v961_v40 }
0x1ea2   :  { %v964_v49 = vrot.slane %v963_v58, 1 }
0x1ea4   :  { %v965_v54 = vadd.f32 %v964_v49, %v963_v58 }
0x1ea6   :  { %1557 = vpush %v965_v54 }
0x1ed7   :  { %s1558_s24 = spop %1557 }
0x1ed8   :  { %v967_v61 = vstv %s1558_s24 }
0x1ed9   :  { %1676 = vrsqrt.f32 %v967_v61  ;;  %vm970_vm13 = vcmp.eq.f32.partialorder %v967_v61, inf  ;;  %v973_v59 = vand.u32 2147483648, %v967_v61  ;;  %vm972_vm14 = vcmp.eq.f32.partialorder %v967_v61, 0.0 }
0x1ee3   :  { %v1677_v62 = vpop.eup %1676 }
0x1ee4   :  { %v969_v60 = vmul.f32 %v1677_v62, %v967_v61 }
0x1ee6   :  { %v971_v3 = vsel %vm970_vm13, %v967_v61, %v969_v60 }
0x1ee7   :  { %v974_v2 = vsel %vm972_vm14, %v973_v59, %v971_v3 }
0x1ee8   :  { %v975_v1 = vadd.f32 1e-06, %v974_v2 }
0x1eea   :  { %1678 = vrcp.f32 %v975_v1 }
0x1ef4   :  { %v1679_v46 = vpop.eup %1678 }
0x1ef5   :  { %v978_v53 = vmin.f32 %v1679_v46, 1.0 }
0x1ef7   :  { %v979_v4 = vmul.f32 %v978_v53, %v955_v50 }
0x1ef9   :  { %v2167_v33 = vadd.f32 %v980_v45, %v979_v4 }
0x1efb   :  { %v982_v9 = vmul.f32 0.1, %v2167_v33 }
0x1efd   :  { %v2171_v55 = vsub.f32 %v2114_v32, %v982_v9 }
0x1eff   :  { %v984_v11 = vsel %vm52_vm1, %v2171_v55, -inf }
0x1f00   :  { %v985_v12 = vrot.slane %v984_v11, 4 }
0x1f02   :  { %v986_v13 = vmax.f32 %v984_v11, %v985_v12 }
0x1f04   :  { %v987_v18 = vrot.slane %v986_v13, 2 }
0x1f06   :  { %v988_v19 = vmax.f32 %v986_v13, %v987_v18 }
0x1f08   :  { %v989_v20 = vrot.slane %v988_v19, 1 }
0x1f0a   :  { %v990_v38 = vmax.f32 %v988_v19, %v989_v20 }
0x1f0c   :  { %v991_v21 = vsub.f32 %v2171_v55, %v990_v38 }
0x1f0e   :  { %v992_v10 = vmul.f32 1.442695, %v991_v21 }
0x1f10   :  { %1680 = vpow2.f32 %v992_v10 }
0x1f1a   :  { %v1681_v8 = vpop.eup %1680 }
0x1f1b   :  { %v994_v22 = vsel %vm52_vm1, %v1681_v8, 0.0 }
0x1f1c   :  { %v995_v23 = vrot.slane %v994_v22, 4 }
0x1f1e   :  { %v996_v34 = vadd.f32 %v995_v23, %v994_v22 }
0x1f20   :  { %v997_v32 = vrot.slane %v996_v34, 2 }
0x1f22   :  { %v998_v27 = vadd.f32 %v997_v32, %v996_v34 }
0x1f24   :  { %v999_v28 = vrot.slane %v998_v27, 1 }
0x1f26   :  { %v1000_v26 = vadd.f32 %v999_v28, %v998_v27 }
0x1f28   :  { %1682 = vrcp.f32 %v1000_v26 }
0x1f32   :  { %v1683_v25 = vpop.eup %1682 }
0x1f33   :  { %v2177_v41 = vmul.f32 %v1683_v25, %v1681_v8 }
0x1f35   :  { %v1003_v36 = vmul.f32 %v1834_v37, %v2177_v41 }
0x1f37   :  { %v2182_v29 = vmul.f32 %v1003_v36, %v1827_v24 }
0x1f39   :  { %v1005_v30 = vsel %vm22_vm0, %v2182_v29, 0.0 }
0x1f3a   :  { %v1006_v39 = vrot.slane %v1005_v30, 4 }
0x1f3c   :  { %v1007_v0 = vadd.f32 %v1006_v39, %v1005_v30 }
0x1f3e   :  { %v1008_v48 = vrot.slane %v1007_v0, 2 }
0x1f40   :  { %v1009_v16 = vadd.f32 %v1008_v48, %v1007_v0 }
0x1f42   :  { %v1010_v6 = vrot.slane %v1009_v16, 1 }
0x1f44   :  { %v1011_v35 = vadd.f32 %v1010_v6, %v1009_v16 }
0x1f46   :  { %v1012_v31 = vmax.f32 %v1011_v35, 1e-30 }
0x1f48   :  { %1684 = vrcp.f32 %v1012_v31 }
0x1f52   :  { %v2186_v15 = vpop.eup %1684 }
0x1f53   :  { %v2190_v14 = vmul.f32 %v2186_v15, %v2182_v29 }
0x1f55   :  { %v1015_v42 = vsel %vm22_vm0, %v2190_v14, 0.0 }
0x1f56   :  { %1016 = vadd.xlane.f32.xlu1 %v1015_v42 }
0x1fe3   :  { %v1017_v43 = vpop.xlane.xlu1 %1016 }
0x1fe4   :  { %v1018_v44 = vmax.f32 %v1017_v43, 1e-30 }
0x1fe6   :  { %1686 = vrcp.f32 %v1018_v44 }
0x1ff0   :  { %v2194_v5 = vpop.eup %1686 }
0x1ff1   :  { %v2198_v47 = vmul.f32 %v2194_v5, %v2177_v41 }
0x1ff3   :  { %v1021_v63 = vmul.f32 %v2198_v47, %v2190_v14 }
0x1ff5   :  { %v1022_v50 = vsel %vm22_vm0, %v1021_v63, 0.0 }
0x1ff6   :  { %v1023_v51 = vrot.slane %v1022_v50, 4 }
0x1ff8   :  { %v1024_v52 = vadd.f32 %v1023_v51, %v1022_v50 }
0x1ffa   :  { %v1025_v56 = vrot.slane %v1024_v52, 2 }
0x1ffc   :  { %v1026_v7 = vadd.f32 %v1025_v56, %v1024_v52 }
0x1ffe   :  { %v1027_v40 = vrot.slane %v1026_v7, 1 }
0x2000   :  { %v1028_v57 = vadd.f32 %v1027_v40, %v1026_v7 }
0x2002   :  { %v1029_v58 = vmax.f32 %v1028_v57, 1e-30 }
0x2004   :  { %1688 = vrcp.f32 %v1029_v58 }
0x200e   :  { %v1689_v49 = vpop.eup %1688 }
0x200f   :  { %v1031_v54 = vmul.f32 %v1689_v49, %v1021_v63 }
0x2011   :  { %v1032_v61 = vsel %vm22_vm0, %v1031_v54, 0.0 }
0x2012   :  { %1033 = vadd.xlane.f32.xlu0 %v1032_v61 }
0x209f   :  { %v1034_v62 = vpop.xlane.xlu0 %1033 }
0x20a0   :  { %v1035_v60 = vmax.f32 %v1034_v62, 1e-30 }
0x20a2   :  { %1690 = vrcp.f32 %v1035_v60 }
0x20ac   :  { %v1691_v59 = vpop.eup %1690 }
0x20ad   :  { %v1037_v3 = vmul.f32 %v1691_v59, %v2177_v41 }
0x20af   :  { %v1038_v2 = vmul.f32 %v1037_v3, %v1031_v54 }
0x20b1   :  { %v1039_v1 = vsel %vm22_vm0, %v1038_v2, 0.0 }
0x20b2   :  { %v1040_v46 = vrot.slane %v1039_v1, 4 }
0x20b4   :  { %v1041_v53 = vadd.f32 %v1040_v46, %v1039_v1 }
0x20b6   :  { %v1042_v4 = vrot.slane %v1041_v53, 2 }
0x20b8   :  { %v1043_v45 = vadd.f32 %v1042_v4, %v1041_v53 }
0x20ba   :  { %v1044_v9 = vrot.slane %v1043_v45, 1 }
0x20bc   :  { %v1045_v11 = vadd.f32 %v1044_v9, %v1043_v45 }
0x20be   :  { %v1046_v12 = vmax.f32 %v1045_v11, 1e-30 }
0x20c0   :  { %1692 = vrcp.f32 %v1046_v12 }
0x20ca   :  { %v1693_v13 = vpop.eup %1692 }
0x20cb   :  { %v1048_v18 = vmul.f32 %v1693_v13, %v1038_v2 }
0x20cd   :  { %v1049_v19 = vmul.f32 %v1048_v18, %v1864_v17 }
0x20cf   :  { %v1050_v20 = vsel %vm22_vm0, %v1049_v19, 0.0 }
0x20d0   :  { %v1051_v38 = vrot.slane %v1050_v20, 4 }
0x20d2   :  { %v1052_v21 = vadd.f32 %v1051_v38, %v1050_v20 }
0x20d4   :  { %v1053_v10 = vrot.slane %v1052_v21, 2 }
0x20d6   :  { %v1054_v8 = vadd.f32 %v1053_v10, %v1052_v21 }
0x20d8   :  { %v1055_v22 = vrot.slane %v1054_v8, 1 }
0x20da   :  { %v1056_v23 = vadd.f32 %v1055_v22, %v1054_v8 }
0x20dc   :  { %v1057_v34 = vsub.f32 %v1864_v17, %v1056_v23 }
0x20de   :  { %v1058_v32 = vmul.f32 %v1693_v13, %v1057_v34  ;;  %v1540_v13 = vadd.f32 -0.33333334, %v2177_v41 }
0x20e0   :  { %v1059_v27 = vmul.f32 %v1058_v32, %v1038_v2  ;;  %v1064_v28 = vmul.f32 %v1058_v32, %v1037_v3 }
0x20e2   :  { %v1060_v26 = vsel %vm22_vm0, %v1059_v27, 0.0 }
0x20e3   :  { %1061 = vadd.xlane.f32.xlu1 %v1060_v26 }
0x2170   :  { %v1062_v25 = vpop.xlane.xlu1 %1061 }
0x2171   :  { %v1065_v36 = vmul.f32 %v1691_v59, %v1062_v25 }
0x2173   :  { %v1066_v30 = vsub.f32 %v1064_v28, %v1065_v36 }
0x2175   :  { %v1067_v39 = vmul.f32 %v1066_v30, %v1031_v54 }
0x2177   :  { %v1068_v0 = vsel %vm22_vm0, %v1067_v39, 0.0 }
0x2178   :  { %v1069_v48 = vrot.slane %v1068_v0, 4 }
0x217a   :  { %v1070_v16 = vadd.f32 %v1069_v48, %v1068_v0 }
0x217c   :  { %v1071_v6 = vrot.slane %v1070_v16, 2 }
0x217e   :  { %v1072_v35 = vadd.f32 %v1071_v6, %v1070_v16  ;;  %v1136_v16 = vmul.f32 0.99, %v2167_v33 }
0x2180   :  { %v1073_v31 = vrot.slane %v1072_v35, 1 }
0x2182   :  { %v1074_v42 = vadd.f32 %v1073_v31, %v1072_v35 }
0x2184   :  { %v1075_v43 = vsub.f32 %v1066_v30, %v1074_v42 }
0x2186   :  { %v1076_v44 = vmul.f32 %v1689_v49, %v1075_v43 }
0x2188   :  { %v1077_v50 = vmul.f32 %v1076_v44, %v1021_v63  ;;  %v1082_v56 = vmul.f32 %v1076_v44, %v2198_v47 }
0x218a   :  { %v1078_v51 = vsel %vm22_vm0, %v1077_v50, 0.0 }
0x218b   :  { %1079 = vadd.xlane.f32.xlu0 %v1078_v51 }
0x2218   :  { %v1080_v52 = vpop.xlane.xlu0 %1079 }
0x2219   :  { %v1083_v7 = vmul.f32 %v2194_v5, %v1080_v52  ;;  %v1081_v5 = vadd.f32 %v1080_v52, %v1062_v25 }
0x221b   :  { %v1084_v40 = vsub.f32 %v1082_v56, %v1083_v7 }
0x221d   :  { %v1085_v57 = vmul.f32 %v1084_v40, %v2190_v14 }
0x221f   :  { %v1086_v58 = vsel %vm22_vm0, %v1085_v57, 0.0 }
0x2220   :  { %v1087_v54 = vrot.slane %v1086_v58, 4 }
0x2222   :  { %v1088_v61 = vadd.f32 %v1087_v54, %v1086_v58 }
0x2224   :  { %v1089_v62 = vrot.slane %v1088_v61, 2 }
0x2226   :  { %v1090_v60 = vadd.f32 %v1089_v62, %v1088_v61 }
0x2228   :  { %v1091_v59 = vrot.slane %v1090_v60, 1 }
0x222a   :  { %v1092_v49 = vadd.f32 %v1091_v59, %v1090_v60 }
0x222c   :  { %v1093_v63 = vsub.f32 %v1084_v40, %v1092_v49 }
0x222e   :  { %v1094_v3 = vmul.f32 %v2186_v15, %v1093_v63 }
0x2230   :  { %v1095_v2 = vmul.f32 %v1094_v3, %v2182_v29  ;;  %v1110_v29 = vmul.f32 1.6666666, %v1540_v13 }
0x2232   :  { %v1096_v47 = vsel %vm22_vm0, %v1095_v2, 0.0 }
0x2233   :  { %1097 = vadd.xlane.f32.xlu1 %v1096_v47 }
0x22c0   :  { %v1098_v1 = vpop.xlane.xlu1 %1097 }
0x22c1   :  { %v1099_v46 = vadd.f32 %v1098_v1, %v1081_v5 }
0x22c3   :  { %v1100_v14 = vsel %vm52_vm1, %v1099_v46, 0.0 }
0x22c4   :  { %v1101_v53 = vrot.slane %v1100_v14, 4 }
0x22c6   :  { %v1102_v4 = vadd.f32 %v1101_v53, %v1100_v14 }
0x22c8   :  { %v1103_v45 = vrot.slane %v1102_v4, 2 }
0x22ca   :  { %v1104_v9 = vadd.f32 %v1103_v45, %v1102_v4 }
0x22cc   :  { %v1105_v11 = vrot.slane %v1104_v9, 1 }
0x22ce   :  { %v1106_v12 = vadd.f32 %v1105_v11, %v1104_v9 }
0x22d0   :  { %v1107_v15 = vmul.f32 %v1106_v12, %v2177_v41 }
0x22d2   :  { %v1108_v18 = vsub.f32 %v1099_v46, %v1107_v15 }
0x22d4   :  { %v1111_v19 = vadd.f32 %v1110_v29, %v1108_v18 }
0x22d6   :  { %v1112_v20 = vmul.f32 %v1111_v19, %v1111_v19 }
0x22d8   :  { %v1113_v38 = vsel %vm177_vm2, %v1112_v20, 0.0 }
0x22d9   :  { %1114 = vadd.xlane.f32.xlu0 %v1113_v38 }
0x2366   :  { %v1115_v21 = vpop.xlane.xlu0 %1114 }
0x2367   :  { %v1116_v10 = vrot.slane %v1115_v21, 4 }
0x2369   :  { %v1117_v8 = vadd.f32 %v1116_v10, %v1115_v21 }
0x236b   :  { %v1118_v22 = vrot.slane %v1117_v8, 2 }
0x236d   :  { %v1119_v23 = vadd.f32 %v1118_v22, %v1117_v8 }
0x236f   :  { %v1120_v34 = vrot.slane %v1119_v23, 1 }
0x2371   :  { %v1121_v32 = vadd.f32 %v1120_v34, %v1119_v23 }
0x2373   :  { %1559 = vpush %v1121_v32 }
0x23a4   :  { %s1560_s25 = spop %1559 }
0x23a5   :  { %v1123_v27 = vstv %s1560_s25 }
0x23a6   :  { %1694 = vrsqrt.f32 %v1123_v27  ;;  %vm1126_vm15 = vcmp.eq.f32.partialorder %v1123_v27, inf  ;;  %v1129_v26 = vand.u32 2147483648, %v1123_v27  ;;  %vm1128_vm3 = vcmp.eq.f32.partialorder %v1123_v27, 0.0 }
0x23b0   :  { %v1695_v28 = vpop.eup %1694 }
0x23b1   :  { %v1125_v41 = vmul.f32 %v1695_v28, %v1123_v27 }
0x23b3   :  { %v1127_v25 = vsel %vm1126_vm15, %v1123_v27, %v1125_v41 }
0x23b4   :  { %v1130_v36 = vsel %vm1128_vm3, %v1129_v26, %v1127_v25 }
0x23b5   :  { %v1131_v30 = vadd.f32 1e-06, %v1130_v36 }
0x23b7   :  { %1696 = vrcp.f32 %v1131_v30 }
0x23c1   :  { %v1697_v39 = vpop.eup %1696 }
0x23c2   :  { %v1134_v0 = vmin.f32 %v1697_v39, 1.0 }
0x23c4   :  { %v1135_v48 = vmul.f32 %v1134_v0, %v1111_v19 }
0x23c6   :  { %v2224_v6 = vadd.f32 %v1136_v16, %v1135_v48 }
0x23c8   :  { %v1138_v35 = vmul.f32 0.1, %v2224_v6 }
0x23ca   :  { %v2228_v31 = vsub.f32 %v2171_v55, %v1138_v35 }
0x23cc   :  { %v1140_v42 = vsel %vm52_vm1, %v2228_v31, -inf }
0x23cd   :  { %v1141_v43 = vrot.slane %v1140_v42, 4 }
0x23cf   :  { %v1142_v44 = vmax.f32 %v1140_v42, %v1141_v43 }
0x23d1   :  { %v1143_v50 = vrot.slane %v1142_v44, 2 }
0x23d3   :  { %v1144_v51 = vmax.f32 %v1142_v44, %v1143_v50 }
0x23d5   :  { %v1145_v52 = vrot.slane %v1144_v51, 1 }
0x23d7   :  { %v1146_v56 = vmax.f32 %v1144_v51, %v1145_v52 }
0x23d9   :  { %v1147_v7 = vsub.f32 %v2228_v31, %v1146_v56 }
0x23db   :  { %v1148_v40 = vmul.f32 1.442695, %v1147_v7 }
0x23dd   :  { %1698 = vpow2.f32 %v1148_v40 }
0x23e7   :  { %v1699_v33 = vpop.eup %1698 }
0x23e8   :  { %v1150_v57 = vsel %vm52_vm1, %v1699_v33, 0.0 }
0x23e9   :  { %v1151_v58 = vrot.slane %v1150_v57, 4 }
0x23eb   :  { %v1152_v54 = vadd.f32 %v1151_v58, %v1150_v57 }
0x23ed   :  { %v1153_v55 = vrot.slane %v1152_v54, 2 }
0x23ef   :  { %v1154_v61 = vadd.f32 %v1153_v55, %v1152_v54 }
0x23f1   :  { %v1155_v62 = vrot.slane %v1154_v61, 1 }
0x23f3   :  { %v1156_v60 = vadd.f32 %v1155_v62, %v1154_v61 }
0x23f5   :  { %1700 = vrcp.f32 %v1156_v60 }
0x23ff   :  { %v1701_v59 = vpop.eup %1700 }
0x2400   :  { %v2234_v49 = vmul.f32 %v1701_v59, %v1699_v33 }
0x2402   :  { %v1159_v63 = vmul.f32 %v1834_v37, %v2234_v49 }
0x2404   :  { %v2239_v3 = vmul.f32 %v1159_v63, %v1827_v24 }
0x2406   :  { %v1161_v2 = vsel %vm22_vm0, %v2239_v3, 0.0 }
0x2407   :  { %v1162_v47 = vrot.slane %v1161_v2, 4 }
0x2409   :  { %v1163_v5 = vadd.f32 %v1162_v47, %v1161_v2 }
0x240b   :  { %v1164_v1 = vrot.slane %v1163_v5, 2 }
0x240d   :  { %v1165_v46 = vadd.f32 %v1164_v1, %v1163_v5 }
0x240f   :  { %v1166_v14 = vrot.slane %v1165_v46, 1 }
0x2411   :  { %v1167_v53 = vadd.f32 %v1166_v14, %v1165_v46 }
0x2413   :  { %v1168_v4 = vmax.f32 %v1167_v53, 1e-30 }
0x2415   :  { %1702 = vrcp.f32 %v1168_v4 }
0x241f   :  { %v2243_v45 = vpop.eup %1702 }
0x2420   :  { %v2247_v9 = vmul.f32 %v2243_v45, %v2239_v3 }
0x2422   :  { %v1171_v11 = vsel %vm22_vm0, %v2247_v9, 0.0 }
0x2423   :  { %1172 = vadd.xlane.f32.xlu1 %v1171_v11 }
0x24b0   :  { %v1173_v12 = vpop.xlane.xlu1 %1172 }
0x24b1   :  { %v1174_v13 = vmax.f32 %v1173_v12, 1e-30 }
0x24b3   :  { %1704 = vrcp.f32 %v1174_v13 }
0x24bd   :  { %v2251_v15 = vpop.eup %1704 }
0x24be   :  { %v2255_v18 = vmul.f32 %v2251_v15, %v2234_v49 }
0x24c0   :  { %v1177_v29 = vmul.f32 %v2255_v18, %v2247_v9 }
0x24c2   :  { %v1178_v19 = vsel %vm22_vm0, %v1177_v29, 0.0 }
0x24c3   :  { %v1179_v20 = vrot.slane %v1178_v19, 4 }
0x24c5   :  { %v1180_v38 = vadd.f32 %v1179_v20, %v1178_v19 }
0x24c7   :  { %v1181_v21 = vrot.slane %v1180_v38, 2 }
0x24c9   :  { %v1182_v10 = vadd.f32 %v1181_v21, %v1180_v38 }
0x24cb   :  { %v1183_v8 = vrot.slane %v1182_v10, 1 }
0x24cd   :  { %v1184_v22 = vadd.f32 %v1183_v8, %v1182_v10 }
0x24cf   :  { %v1185_v23 = vmax.f32 %v1184_v22, 1e-30 }
0x24d1   :  { %1706 = vrcp.f32 %v1185_v23 }
0x24db   :  { %v1707_v34 = vpop.eup %1706 }
0x24dc   :  { %v1187_v32 = vmul.f32 %v1707_v34, %v1177_v29 }
0x24de   :  { %v1188_v27 = vsel %vm22_vm0, %v1187_v32, 0.0 }
0x24df   :  { %1189 = vadd.xlane.f32.xlu0 %v1188_v27 }
0x256c   :  { %v1190_v28 = vpop.xlane.xlu0 %1189 }
0x256d   :  { %v1191_v41 = vmax.f32 %v1190_v28, 1e-30 }
0x256f   :  { %1708 = vrcp.f32 %v1191_v41 }
0x2579   :  { %v1709_v26 = vpop.eup %1708 }
0x257a   :  { %v1193_v25 = vmul.f32 %v1709_v26, %v2234_v49 }
0x257c   :  { %v1194_v36 = vmul.f32 %v1193_v25, %v1187_v32 }
0x257e   :  { %v1195_v30 = vsel %vm22_vm0, %v1194_v36, 0.0 }
0x257f   :  { %v1196_v39 = vrot.slane %v1195_v30, 4 }
0x2581   :  { %v1197_v0 = vadd.f32 %v1196_v39, %v1195_v30 }
0x2583   :  { %v1198_v48 = vrot.slane %v1197_v0, 2 }
0x2585   :  { %v1199_v16 = vadd.f32 %v1198_v48, %v1197_v0 }
0x2587   :  { %v1200_v35 = vrot.slane %v1199_v16, 1 }
0x2589   :  { %v1201_v42 = vadd.f32 %v1200_v35, %v1199_v16 }
0x258b   :  { %v1202_v43 = vmax.f32 %v1201_v42, 1e-30 }
0x258d   :  { %1710 = vrcp.f32 %v1202_v43 }
0x2597   :  { %v1711_v44 = vpop.eup %1710 }
0x2598   :  { %v1204_v50 = vmul.f32 %v1711_v44, %v1194_v36 }
0x259a   :  { %v1205_v51 = vmul.f32 %v1204_v50, %v1864_v17 }
0x259c   :  { %v1206_v52 = vsel %vm22_vm0, %v1205_v51, 0.0 }
0x259d   :  { %v1207_v56 = vrot.slane %v1206_v52, 4 }
0x259f   :  { %v1208_v7 = vadd.f32 %v1207_v56, %v1206_v52 }
0x25a1   :  { %v1209_v40 = vrot.slane %v1208_v7, 2 }
0x25a3   :  { %v1210_v33 = vadd.f32 %v1209_v40, %v1208_v7 }
0x25a5   :  { %v1211_v57 = vrot.slane %v1210_v33, 1 }
0x25a7   :  { %v1212_v58 = vadd.f32 %v1211_v57, %v1210_v33 }
0x25a9   :  { %v1213_v54 = vsub.f32 %v1864_v17, %v1212_v58 }
0x25ab   :  { %v1214_v55 = vmul.f32 %v1711_v44, %v1213_v54  ;;  %v1541_v44 = vadd.f32 -0.33333334, %v2234_v49 }
0x25ad   :  { %v1215_v61 = vmul.f32 %v1214_v55, %v1194_v36  ;;  %v1220_v62 = vmul.f32 %v1214_v55, %v1193_v25 }
0x25af   :  { %v1216_v60 = vsel %vm22_vm0, %v1215_v61, 0.0 }
0x25b0   :  { %1217 = vadd.xlane.f32.xlu1 %v1216_v60 }
0x263d   :  { %v1218_v59 = vpop.xlane.xlu1 %1217 }
0x263e   :  { %v1221_v63 = vmul.f32 %v1709_v26, %v1218_v59 }
0x2640   :  { %v1222_v2 = vsub.f32 %v1220_v62, %v1221_v63 }
0x2642   :  { %v1223_v47 = vmul.f32 %v1222_v2, %v1187_v32 }
0x2644   :  { %v1224_v5 = vsel %vm22_vm0, %v1223_v47, 0.0 }
0x2645   :  { %v1225_v1 = vrot.slane %v1224_v5, 4 }
0x2647   :  { %v1226_v46 = vadd.f32 %v1225_v1, %v1224_v5 }
0x2649   :  { %v1227_v14 = vrot.slane %v1226_v46, 2 }
0x264b   :  { %v1228_v53 = vadd.f32 %v1227_v14, %v1226_v46  ;;  %v1292_v46 = vmul.f32 0.99, %v2224_v6 }
0x264d   :  { %v1229_v4 = vrot.slane %v1228_v53, 1 }
0x264f   :  { %v1230_v11 = vadd.f32 %v1229_v4, %v1228_v53 }
0x2651   :  { %v1231_v12 = vsub.f32 %v1222_v2, %v1230_v11 }
0x2653   :  { %v1232_v13 = vmul.f32 %v1707_v34, %v1231_v12 }
0x2655   :  { %v1233_v19 = vmul.f32 %v1232_v13, %v1177_v29  ;;  %v1238_v21 = vmul.f32 %v1232_v13, %v2255_v18 }
0x2657   :  { %v1234_v20 = vsel %vm22_vm0, %v1233_v19, 0.0 }
0x2658   :  { %1235 = vadd.xlane.f32.xlu0 %v1234_v20 }
0x26e5   :  { %v1236_v38 = vpop.xlane.xlu0 %1235 }
0x26e6   :  { %v1239_v10 = vmul.f32 %v2251_v15, %v1236_v38  ;;  %v1237_v15 = vadd.f32 %v1236_v38, %v1218_v59 }
0x26e8   :  { %v1240_v8 = vsub.f32 %v1238_v21, %v1239_v10 }
0x26ea   :  { %v1241_v22 = vmul.f32 %v1240_v8, %v2247_v9 }
0x26ec   :  { %v1242_v23 = vsel %vm22_vm0, %v1241_v22, 0.0 }
0x26ed   :  { %v1243_v32 = vrot.slane %v1242_v23, 4 }
0x26ef   :  { %v1244_v27 = vadd.f32 %v1243_v32, %v1242_v23 }
0x26f1   :  { %v1245_v28 = vrot.slane %v1244_v27, 2 }
0x26f3   :  { %v1246_v41 = vadd.f32 %v1245_v28, %v1244_v27 }
0x26f5   :  { %v1247_v26 = vrot.slane %v1246_v41, 1 }
0x26f7   :  { %v1248_v34 = vadd.f32 %v1247_v26, %v1246_v41 }
0x26f9   :  { %v1249_v29 = vsub.f32 %v1240_v8, %v1248_v34 }
0x26fb   :  { %v1250_v25 = vmul.f32 %v2243_v45, %v1249_v29 }
0x26fd   :  { %v1251_v36 = vmul.f32 %v1250_v25, %v2239_v3  ;;  %v1266_v3 = vmul.f32 1.6666666, %v1541_v44 }
0x26ff   :  { %v1252_v18 = vsel %vm22_vm0, %v1251_v36, 0.0 }
0x2700   :  { %1253 = vadd.xlane.f32.xlu1 %v1252_v18 }
0x278d   :  { %v1254_v30 = vpop.xlane.xlu1 %1253 }
0x278e   :  { %v1255_v39 = vadd.f32 %v1254_v30, %v1237_v15 }
0x2790   :  { %v1256_v9 = vsel %vm52_vm1, %v1255_v39, 0.0 }
0x2791   :  { %v1257_v0 = vrot.slane %v1256_v9, 4 }
0x2793   :  { %v1258_v48 = vadd.f32 %v1257_v0, %v1256_v9 }
0x2795   :  { %v1259_v16 = vrot.slane %v1258_v48, 2 }
0x2797   :  { %v1260_v35 = vadd.f32 %v1259_v16, %v1258_v48 }
0x2799   :  { %v1261_v42 = vrot.slane %v1260_v35, 1 }
0x279b   :  { %v1262_v43 = vadd.f32 %v1261_v42, %v1260_v35 }
0x279d   :  { %v1263_v45 = vmul.f32 %v1262_v43, %v2234_v49 }
0x279f   :  { %v1264_v50 = vsub.f32 %v1255_v39, %v1263_v45 }
0x27a1   :  { %v1267_v51 = vadd.f32 %v1266_v3, %v1264_v50 }
0x27a3   :  { %v1268_v52 = vmul.f32 %v1267_v51, %v1267_v51 }
0x27a5   :  { %v1269_v56 = vsel %vm177_vm2, %v1268_v52, 0.0 }
0x27a6   :  { %1270 = vadd.xlane.f32.xlu0 %v1269_v56 }
0x2833   :  { %v1271_v7 = vpop.xlane.xlu0 %1270 }
0x2834   :  { %v1272_v40 = vrot.slane %v1271_v7, 4 }
0x2836   :  { %v1273_v33 = vadd.f32 %v1272_v40, %v1271_v7 }
0x2838   :  { %v1274_v57 = vrot.slane %v1273_v33, 2 }
0x283a   :  { %v1275_v58 = vadd.f32 %v1274_v57, %v1273_v33 }
0x283c   :  { %v1276_v54 = vrot.slane %v1275_v58, 1 }
0x283e   :  { %v1277_v55 = vadd.f32 %v1276_v54, %v1275_v58 }
0x2840   :  { %1561 = vpush %v1277_v55 }
0x2871   :  { %s1562_s26 = spop %1561 }
0x2872   :  { %v1279_v61 = vstv %s1562_s26 }
0x2873   :  { %1712 = vrsqrt.f32 %v1279_v61  ;;  %vm1282_vm4 = vcmp.eq.f32.partialorder %v1279_v61, inf  ;;  %v1285_v60 = vand.u32 2147483648, %v1279_v61  ;;  %vm1284_vm5 = vcmp.eq.f32.partialorder %v1279_v61, 0.0 }
0x287d   :  { %v1713_v62 = vpop.eup %1712 }
0x287e   :  { %v1281_v49 = vmul.f32 %v1713_v62, %v1279_v61 }
0x2880   :  { %v1283_v59 = vsel %vm1282_vm4, %v1279_v61, %v1281_v49 }
0x2881   :  { %v1286_v63 = vsel %vm1284_vm5, %v1285_v60, %v1283_v59 }
0x2882   :  { %v1287_v2 = vadd.f32 1e-06, %v1286_v63 }
0x2884   :  { %1714 = vrcp.f32 %v1287_v2 }
0x288e   :  { %v1715_v47 = vpop.eup %1714 }
0x288f   :  { %v1290_v5 = vmin.f32 %v1715_v47, 1.0 }
0x2891   :  { %v1291_v1 = vmul.f32 %v1290_v5, %v1267_v51 }
0x2893   :  { %v2281_v14 = vadd.f32 %v1292_v46, %v1291_v1 }
0x2895   :  { %v1294_v53 = vmul.f32 0.1, %v2281_v14 }
0x2897   :  { %v2285_v4 = vsub.f32 %v2228_v31, %v1294_v53 }
0x2899   :  { %v1296_v11 = vsel %vm52_vm1, %v2285_v4, -inf }
0x289a   :  { %v1297_v12 = vrot.slane %v1296_v11, 4 }
0x289c   :  { %v1298_v13 = vmax.f32 %v1296_v11, %v1297_v12 }
0x289e   :  { %v1299_v19 = vrot.slane %v1298_v13, 2 }
0x28a0   :  { %v1300_v20 = vmax.f32 %v1298_v13, %v1299_v19 }
0x28a2   :  { %v1301_v38 = vrot.slane %v1300_v20, 1 }
0x28a4   :  { %v1302_v21 = vmax.f32 %v1300_v20, %v1301_v38 }
0x28a6   :  { %v1303_v10 = vsub.f32 %v2285_v4, %v1302_v21 }
0x28a8   :  { %v1304_v8 = vmul.f32 1.442695, %v1303_v10 }
0x28aa   :  { %1716 = vpow2.f32 %v1304_v8 }
0x28b4   :  { %v1717_v6 = vpop.eup %1716 }
0x28b5   :  { %v1306_v22 = vsel %vm52_vm1, %v1717_v6, 0.0 }
0x28b6   :  { %v1307_v23 = vrot.slane %v1306_v22, 4 }
0x28b8   :  { %v1308_v32 = vadd.f32 %v1307_v23, %v1306_v22 }
0x28ba   :  { %v1309_v31 = vrot.slane %v1308_v32, 2 }
0x28bc   :  { %v1310_v27 = vadd.f32 %v1309_v31, %v1308_v32 }
0x28be   :  { %v1311_v28 = vrot.slane %v1310_v27, 1 }
0x28c0   :  { %v1312_v41 = vadd.f32 %v1311_v28, %v1310_v27 }
0x28c2   :  { %1718 = vrcp.f32 %v1312_v41 }
0x28cc   :  { %v1719_v26 = vpop.eup %1718 }
0x28cd   :  { %v2291_v34 = vmul.f32 %v1719_v26, %v1717_v6 }
0x28cf   :  { %v1315_v29 = vmul.f32 %v1834_v37, %v2291_v34 }
0x28d1   :  { %v2296_v25 = vmul.f32 %v1315_v29, %v1827_v24 }
0x28d3   :  { %v1317_v36 = vsel %vm22_vm0, %v2296_v25, 0.0 }
0x28d4   :  { %v1318_v18 = vrot.slane %v1317_v36, 4 }
0x28d6   :  { %v1319_v15 = vadd.f32 %v1318_v18, %v1317_v36 }
0x28d8   :  { %v1320_v30 = vrot.slane %v1319_v15, 2 }
0x28da   :  { %v1321_v39 = vadd.f32 %v1320_v30, %v1319_v15 }
0x28dc   :  { %v1322_v9 = vrot.slane %v1321_v39, 1 }
0x28de   :  { %v1323_v0 = vadd.f32 %v1322_v9, %v1321_v39 }
0x28e0   :  { %v1324_v48 = vmax.f32 %v1323_v0, 1e-30 }
0x28e2   :  { %1720 = vrcp.f32 %v1324_v48 }
0x28ec   :  { %v2300_v16 = vpop.eup %1720 }
0x28ed   :  { %v2304_v35 = vmul.f32 %v2300_v16, %v2296_v25 }
0x28ef   :  { %v1327_v42 = vsel %vm22_vm0, %v2304_v35, 0.0 }
0x28f0   :  { %1328 = vadd.xlane.f32.xlu1 %v1327_v42 }
0x297d   :  { %v1329_v43 = vpop.xlane.xlu1 %1328 }
0x297e   :  { %v1330_v44 = vmax.f32 %v1329_v43, 1e-30 }
0x2980   :  { %1722 = vrcp.f32 %v1330_v44 }
0x298a   :  { %v2308_v45 = vpop.eup %1722 }
0x298b   :  { %v2312_v50 = vmul.f32 %v2308_v45, %v2291_v34 }
0x298d   :  { %v1333_v3 = vmul.f32 %v2312_v50, %v2304_v35 }
0x298f   :  { %v1334_v51 = vsel %vm22_vm0, %v1333_v3, 0.0 }
0x2990   :  { %v1335_v52 = vrot.slane %v1334_v51, 4 }
0x2992   :  { %v1336_v56 = vadd.f32 %v1335_v52, %v1334_v51 }
0x2994   :  { %v1337_v7 = vrot.slane %v1336_v56, 2 }
0x2996   :  { %v1338_v40 = vadd.f32 %v1337_v7, %v1336_v56 }
0x2998   :  { %v1339_v33 = vrot.slane %v1338_v40, 1 }
0x299a   :  { %v1340_v57 = vadd.f32 %v1339_v33, %v1338_v40 }
0x299c   :  { %v1341_v58 = vmax.f32 %v1340_v57, 1e-30 }
0x299e   :  { %1724 = vrcp.f32 %v1341_v58 }
0x29a8   :  { %v1725_v54 = vpop.eup %1724 }
0x29a9   :  { %v1343_v55 = vmul.f32 %v1725_v54, %v1333_v3 }
0x29ab   :  { %v1344_v61 = vsel %vm22_vm0, %v1343_v55, 0.0 }
0x29ac   :  { %1345 = vadd.xlane.f32.xlu0 %v1344_v61 }
0x2a39   :  { %v1346_v62 = vpop.xlane.xlu0 %1345 }
0x2a3a   :  { %v1347_v49 = vmax.f32 %v1346_v62, 1e-30 }
0x2a3c   :  { %1726 = vrcp.f32 %v1347_v49 }
0x2a46   :  { %v1727_v60 = vpop.eup %1726 }
0x2a47   :  { %v1349_v59 = vmul.f32 %v1727_v60, %v2291_v34 }
0x2a49   :  { %v1350_v63 = vmul.f32 %v1349_v59, %v1343_v55 }
0x2a4b   :  { %v1351_v2 = vsel %vm22_vm0, %v1350_v63, 0.0 }
0x2a4c   :  { %v1352_v47 = vrot.slane %v1351_v2, 4 }
0x2a4e   :  { %v1353_v5 = vadd.f32 %v1352_v47, %v1351_v2 }
0x2a50   :  { %v1354_v1 = vrot.slane %v1353_v5, 2 }
0x2a52   :  { %v1355_v46 = vadd.f32 %v1354_v1, %v1353_v5 }
0x2a54   :  { %v1356_v53 = vrot.slane %v1355_v46, 1 }
0x2a56   :  { %v1357_v11 = vadd.f32 %v1356_v53, %v1355_v46 }
0x2a58   :  { %v1358_v12 = vmax.f32 %v1357_v11, 1e-30 }
0x2a5a   :  { %1728 = vrcp.f32 %v1358_v12  ;;  %v1542_v12 = vadd.f32 -0.33333334, %v2291_v34 }
0x2a64   :  { %v1729_v13 = vpop.eup %1728 }
0x2a65   :  { %v1360_v19 = vmul.f32 %v1729_v13, %v1350_v63 }
0x2a67   :  { %v1361_v20 = vmul.f32 %v1360_v19, %v1864_v17 }
0x2a69   :  { %v1362_v38 = vsel %vm22_vm0, %v1361_v20, 0.0 }
0x2a6a   :  { %v1363_v21 = vrot.slane %v1362_v38, 4 }
0x2a6c   :  { %v1364_v10 = vadd.f32 %v1363_v21, %v1362_v38 }
0x2a6e   :  { %v1365_v8 = vrot.slane %v1364_v10, 2 }
0x2a70   :  { %v1366_v6 = vadd.f32 %v1365_v8, %v1364_v10 }
0x2a72   :  { %v1367_v22 = vrot.slane %v1366_v6, 1 }
0x2a74   :  { %v1368_v23 = vadd.f32 %v1367_v22, %v1366_v6 }
0x2a76   :  { %v1369_v32 = vsub.f32 %v1864_v17, %v1368_v23 }
0x2a78   :  { %v1370_v31 = vmul.f32 %v1729_v13, %v1369_v32 }
0x2a7a   :  { %v1371_v27 = vmul.f32 %v1370_v31, %v1350_v63  ;;  %v1376_v28 = vmul.f32 %v1370_v31, %v1349_v59 }
0x2a7c   :  { %v1372_v41 = vsel %vm22_vm0, %v1371_v27, 0.0 }
0x2a7d   :  { %1373 = vadd.xlane.f32.xlu1 %v1372_v41 }
0x2b0a   :  { %v1374_v26 = vpop.xlane.xlu1 %1373 }
0x2b0b   :  { %v1377_v29 = vmul.f32 %v1727_v60, %v1374_v26 }
0x2b0d   :  { %v1378_v36 = vsub.f32 %v1376_v28, %v1377_v29 }
0x2b0f   :  { %v1379_v18 = vmul.f32 %v1378_v36, %v1343_v55 }
0x2b11   :  { %v1380_v15 = vsel %vm22_vm0, %v1379_v18, 0.0 }
0x2b12   :  { %v1381_v30 = vrot.slane %v1380_v15, 4 }
0x2b14   :  { %v1382_v39 = vadd.f32 %v1381_v30, %v1380_v15  ;;  %v1448_v30 = vmul.f32 0.99, %v2281_v14 }
0x2b16   :  { %v1383_v9 = vrot.slane %v1382_v39, 2 }
0x2b18   :  { %v1384_v0 = vadd.f32 %v1383_v9, %v1382_v39 }
0x2b1a   :  { %v1385_v48 = vrot.slane %v1384_v0, 1 }
0x2b1c   :  { %v1386_v42 = vadd.f32 %v1385_v48, %v1384_v0 }
0x2b1e   :  { %v1387_v43 = vsub.f32 %v1378_v36, %v1386_v42 }
0x2b20   :  { %v1388_v17 = vmul.f32 %v1725_v54, %v1387_v43 }
0x2b22   :  { %v1389_v44 = vmul.f32 %v1388_v17, %v1333_v3  ;;  %v1394_v56 = vmul.f32 %v1388_v17, %v2312_v50 }
0x2b24   :  { %v1390_v51 = vsel %vm22_vm0, %v1389_v44, 0.0 }
0x2b25   :  { %1391 = vadd.xlane.f32.xlu0 %v1390_v51 }
0x2bb2   :  { %v1392_v52 = vpop.xlane.xlu0 %1391 }
0x2bb3   :  { %v1395_v7 = vmul.f32 %v2308_v45, %v1392_v52  ;;  %v1393_v45 = vadd.f32 %v1392_v52, %v1374_v26 }
0x2bb5   :  { %v1396_v40 = vsub.f32 %v1394_v56, %v1395_v7 }
0x2bb7   :  { %v1397_v33 = vmul.f32 %v1396_v40, %v2304_v35 }
0x2bb9   :  { %v1398_v57 = vsel %vm22_vm0, %v1397_v33, 0.0 }
0x2bba   :  { %v1399_v58 = vrot.slane %v1398_v57, 4 }
0x2bbc   :  { %v1400_v55 = vadd.f32 %v1399_v58, %v1398_v57 }
0x2bbe   :  { %v1401_v61 = vrot.slane %v1400_v55, 2 }
0x2bc0   :  { %v1402_v62 = vadd.f32 %v1401_v61, %v1400_v55 }
0x2bc2   :  { %v1403_v49 = vrot.slane %v1402_v62, 1 }
0x2bc4   :  { %v1404_v54 = vadd.f32 %v1403_v49, %v1402_v62 }
0x2bc6   :  { %v1405_v3 = vsub.f32 %v1396_v40, %v1404_v54 }
0x2bc8   :  { %v1406_v60 = vmul.f32 %v2300_v16, %v1405_v3 }
0x2bca   :  { %v1407_v59 = vmul.f32 %v1406_v60, %v2296_v25  ;;  %v1422_v25 = vmul.f32 1.6666666, %v1542_v12 }
0x2bcc   :  { %v1408_v50 = vsel %vm22_vm0, %v1407_v59, 0.0 }
0x2bcd   :  { %1409 = vadd.xlane.f32.xlu1 %v1408_v50 }
0x2c5a   :  { %v1410_v63 = vpop.xlane.xlu1 %1409 }
0x2c5b   :  { %v1411_v2 = vadd.f32 %v1410_v63, %v1393_v45 }
0x2c5d   :  { %v1412_v35 = vsel %vm52_vm1, %v1411_v2, 0.0 }
0x2c5e   :  { %v1413_v47 = vrot.slane %v1412_v35, 4 }
0x2c60   :  { %v1414_v5 = vadd.f32 %v1413_v47, %v1412_v35 }
0x2c62   :  { %v1415_v1 = vrot.slane %v1414_v5, 2 }
0x2c64   :  { %v1416_v46 = vadd.f32 %v1415_v1, %v1414_v5 }
0x2c66   :  { %v1417_v53 = vrot.slane %v1416_v46, 1 }
0x2c68   :  { %v1418_v11 = vadd.f32 %v1417_v53, %v1416_v46 }
0x2c6a   :  { %v1419_v16 = vmul.f32 %v1418_v11, %v2291_v34 }
0x2c6c   :  { %v1420_v13 = vsub.f32 %v1411_v2, %v1419_v16 }
0x2c6e   :  { %v1423_v19 = vadd.f32 %v1422_v25, %v1420_v13 }
0x2c70   :  { %v1424_v20 = vmul.f32 %v1423_v19, %v1423_v19 }
0x2c72   :  { %v1425_v38 = vsel %vm177_vm2, %v1424_v20, 0.0 }
0x2c73   :  { %1426 = vadd.xlane.f32.xlu0 %v1425_v38 }
0x2d00   :  { %v1427_v21 = vpop.xlane.xlu0 %1426 }
0x2d01   :  { %v1428_v10 = vrot.slane %v1427_v21, 4 }
0x2d03   :  { %v1429_v8 = vadd.f32 %v1428_v10, %v1427_v21 }
0x2d05   :  { %v1430_v6 = vrot.slane %v1429_v8, 2 }
0x2d07   :  { %v1431_v22 = vadd.f32 %v1430_v6, %v1429_v8 }
0x2d09   :  { %v1432_v23 = vrot.slane %v1431_v22, 1 }
0x2d0b   :  { %v1433_v32 = vadd.f32 %v1432_v23, %v1431_v22 }
0x2d0d   :  { %1563 = vpush %v1433_v32 }
0x2d3e   :  { %s1564_s27 = spop %1563 }
0x2d3f   :  { %v1435_v31 = vstv %s1564_s27 }
0x2d40   :  { %1730 = vrsqrt.f32 %v1435_v31  ;;  %vm1438_vm6 = vcmp.eq.f32.partialorder %v1435_v31, inf  ;;  %v1441_v28 = vand.u32 2147483648, %v1435_v31  ;;  %vm1440_vm7 = vcmp.eq.f32.partialorder %v1435_v31, 0.0 }
0x2d4a   :  { %v1731_v27 = vpop.eup %1730 }
0x2d4b   :  { %v1437_v34 = vmul.f32 %v1731_v27, %v1435_v31 }
0x2d4d   :  { %v1439_v41 = vsel %vm1438_vm6, %v1435_v31, %v1437_v34 }
0x2d4e   :  { %v1442_v26 = vsel %vm1440_vm7, %v1441_v28, %v1439_v41 }
0x2d4f   :  { %v1443_v29 = vadd.f32 1e-06, %v1442_v26 }
0x2d51   :  { %1732 = vrcp.f32 %v1443_v29 }
0x2d5b   :  { %v1733_v36 = vpop.eup %1732 }
0x2d5c   :  { %v1446_v18 = vmin.f32 %v1733_v36, 1.0 }
0x2d5e   :  { %v1447_v15 = vmul.f32 %v1446_v18, %v1423_v19 }
0x2d60   :  { %v1449_v39 = vadd.f32 %v1448_v30, %v1447_v15 }
0x2d62   :  { %v1450_v9 = vmul.f32 0.1, %v1449_v39 }
0x2d64   :  { %v1451_v0 = vsub.f32 %v2285_v4, %v1450_v9 }
0x2d66   :  { %v1452_v48 = vsel %vm52_vm1, %v1451_v0, -inf }
0x2d67   :  { %v1453_v42 = vrot.slane %v1452_v48, 4 }
0x2d69   :  { %v1454_v43 = vmax.f32 %v1452_v48, %v1453_v42 }
0x2d6b   :  { %v1455_v17 = vrot.slane %v1454_v43, 2 }
0x2d6d   :  { %v1456_v44 = vmax.f32 %v1454_v43, %v1455_v17 }
0x2d6f   :  { %v1457_v51 = vrot.slane %v1456_v44, 1 }
0x2d71   :  { %v1458_v52 = vmax.f32 %v1456_v44, %v1457_v51 }
0x2d73   :  { %v1459_v56 = vsub.f32 %v1451_v0, %v1458_v52 }
0x2d75   :  { %v1460_v7 = vmul.f32 1.442695, %v1459_v56 }
0x2d77   :  { %1734 = vpow2.f32 %v1460_v7 }
0x2d81   :  { %v1735_v40 = vpop.eup %1734 }
0x2d82   :  { %v1462_v33 = vsel %vm52_vm1, %v1735_v40, 0.0 }
0x2d83   :  { %v1463_v57 = vrot.slane %v1462_v33, 4 }
0x2d85   :  { %v1464_v14 = vadd.f32 %v1463_v57, %v1462_v33 }
0x2d87   :  { %v1465_v58 = vrot.slane %v1464_v14, 2 }
0x2d89   :  { %v1466_v55 = vadd.f32 %v1465_v58, %v1464_v14 }
0x2d8b   :  { %v1467_v61 = vrot.slane %v1466_v55, 1 }
0x2d8d   :  { %v1468_v4 = vadd.f32 %v1467_v61, %v1466_v55 }
0x2d8f   :  { %1736 = vrcp.f32 %v1468_v4 }
0x2d99   :  { %v1737_v62 = vpop.eup %1736 }
0x2d9a   :  { %v1470_v49 = vmul.f32 %v1737_v62, %v1735_v40 }
0x2d9c   :  { %v1472_v54 = vmul.f32 %v1834_v37, %v1470_v49 }
0x2d9e   :  { %v1473_v3 = vmul.f32 %v1472_v54, %v1827_v24 }
0x2da0   :  { %v1474_v60 = vsel %vm22_vm0, %v1473_v3, 0.0 }
0x2da1   :  { %v1475_v59 = vrot.slane %v1474_v60, 4 }
0x2da3   :  { %v1476_v50 = vadd.f32 %v1475_v59, %v1474_v60 }
0x2da5   :  { %v1477_v45 = vrot.slane %v1476_v50, 2 }
0x2da7   :  { %v1478_v63 = vadd.f32 %v1477_v45, %v1476_v50 }
0x2da9   :  { %v1479_v2 = vrot.slane %v1478_v63, 1 }
0x2dab   :  { %v1480_v35 = vadd.f32 %v1479_v2, %v1478_v63 }
0x2dad   :  { %v1481_v47 = vmax.f32 %v1480_v35, 1e-30 }
0x2daf   :  { %1738 = vrcp.f32 %v1481_v47 }
0x2db9   :  { %v1739_v5 = vpop.eup %1738 }
0x2dba   :  { %v1483_v1 = vmul.f32 %v1739_v5, %v1473_v3 }
0x2dbc   :  { %v1484_v46 = vsel %vm22_vm0, %v1483_v1, 0.0 }
0x2dbd   :  { %1485 = vadd.xlane.f32.xlu1 %v1484_v46 }
0x2e4a   :  { %v1486_v53 = vpop.xlane.xlu1 %1485 }
0x2e4b   :  { %v1487_v11 = vmax.f32 %v1486_v53, 1e-30 }
0x2e4d   :  { %1740 = vrcp.f32 %v1487_v11 }
0x2e57   :  { %v1741_v37 = vpop.eup %1740 }
0x2e58   :  { %v1489_v24 = vmul.f32 %v1741_v37, %v1470_v49 }
0x2e5a   :  { %v1490_v12 = vmul.f32 %v1489_v24, %v1483_v1 }
0x2e5c   :  { %v1491_v16 = vsel %vm22_vm0, %v1490_v12, 0.0 }
0x2e5d   :  { %v1492_v13 = vrot.slane %v1491_v16, 4 }
0x2e5f   :  { %v1493_v25 = vadd.f32 %v1492_v13, %v1491_v16 }
0x2e61   :  { %v1494_v19 = vrot.slane %v1493_v25, 2 }
0x2e63   :  { %v1495_v20 = vadd.f32 %v1494_v19, %v1493_v25 }
0x2e65   :  { %v1496_v38 = vrot.slane %v1495_v20, 1 }
0x2e67   :  { %v1497_v21 = vadd.f32 %v1496_v38, %v1495_v20 }
0x2e69   :  { %v1498_v10 = vmax.f32 %v1497_v21, 1e-30 }
0x2e6b   :  { %1742 = vrcp.f32 %v1498_v10 }
0x2e75   :  { %v1743_v8 = vpop.eup %1742 }
0x2e76   :  { %v1500_v6 = vmul.f32 %v1743_v8, %v1490_v12 }
0x2e78   :  { %v1501_v22 = vsel %vm22_vm0, %v1500_v6, 0.0 }
0x2e79   :  { %1502 = vadd.xlane.f32.xlu0 %v1501_v22 }
0x2f06   :  { %v1503_v23 = vpop.xlane.xlu0 %1502 }
0x2f07   :  { %v1504_v32 = vmax.f32 %v1503_v23, 1e-30 }
0x2f09   :  { %1744 = vrcp.f32 %v1504_v32 }
0x2f13   :  { %v1745_v31 = vpop.eup %1744 }
0x2f14   :  { %v1506_v27 = vmul.f32 %v1745_v31, %v1470_v49 }
0x2f16   :  { %v1507_v34 = vmul.f32 %v1506_v27, %v1500_v6 }
0x2f18   :  { %v1508_v28 = vsel %vm22_vm0, %v1507_v34, 0.0 }
0x2f19   :  { %v1509_v41 = vrot.slane %v1508_v28, 4 }
0x2f1b   :  { %v1510_v26 = vadd.f32 %v1509_v41, %v1508_v28 }
0x2f1d   :  { %v1511_v29 = vrot.slane %v1510_v26, 2 }
0x2f1f   :  { %v1512_v36 = vadd.f32 %v1511_v29, %v1510_v26 }
0x2f21   :  { %v1513_v18 = vrot.slane %v1512_v36, 1 }
0x2f23   :  { %v1514_v15 = vadd.f32 %v1513_v18, %v1512_v36 }
0x2f25   :  { %v1515_v30 = vmax.f32 %v1514_v15, 1e-30 }
0x2f27   :  { %1746 = vrcp.f32 %v1515_v30 }
0x2f31   :  { %v1747_v39 = vpop.eup %1746 }
0x2f32   :  { %v1517_v9 = vmul.f32 %v1747_v39, %v1507_v34 }
0x2f34   :  { %1518 = vst.msk [vmem:[#allocation5] sm:$0x7] %vm22_vm0, %v1517_v9 }
0x2f35   :  { %1781 = shalt.err (!%p1778_p12)
}
0x2f36   :  { %s1782_s4 = scalar_lea.hbm %s2362_s1, 64 }
0x2f37   :  { %p1783_p13 = scmp.ne.s32.totalorder %s2362_s1, %s1782_s4  ;;  %p1786_p0 = scmp.lt.u32.totalorder %s1782_s4, %s2362_s1 }
0x2f39   :  { %p1788_p1 = pnand %p1786_p0, %p1783_p13 }
0x2f3b   :  { %1791 = shalt.err (!%p1788_p1)
}
0x2f3c   :  { %1528 = dma.vmem_to_hbm [thread:$0]  %s1526_s29, 64, %s2362_s1, [#allocation4]  }
0x2f3d   :  { %1794 = dma.done.wait [#allocation4], 64  }
0x2f3e   :  { %1795 = vsyncadd [#allocation4], 4294967232 }
0x2f3f   :  { %1532 = vsyncpa [#allocation3], 1 }
0x2f40   :  { %1533 = vsyncpa [#allocation4], 1 }

</bundles_post_ra>
